<compile_context>
chip_gen: v5e
topology: v5e:2x2
jax: 0.10.0
libtpu: 0.0.40
codegen_flags: <defaults>
</compile_context>

<pallas_src>
import functools

import jax
import jax.numpy as jnp
from jax.experimental import pallas as pl
from jax.experimental.pallas import tpu as pltpu


_SQRT_HALF = 0.7071067811865476


def _erf(x):
    # Abramowitz & Stegun 7.1.26 rational approximation, |err| < 1.5e-7.
    # Matches PyTorch's exact (erf-based) nn.GELU to ~1e-7 while only using
    # ops that lower in Mosaic; exp() runs on the EUP slot.
    a1 = 0.254829592
    a2 = -0.284496736
    a3 = 1.421413741
    a4 = -1.453152027
    a5 = 1.061405429
    p = 0.3275911
    sign = jnp.where(x >= 0.0, 1.0, -1.0)
    ax = jnp.abs(x)
    t = 1.0 / (1.0 + p * ax)
    poly = t * (a1 + t * (a2 + t * (a3 + t * (a4 + t * a5))))
    return sign * (1.0 - poly * jnp.exp(-ax * ax))


def _gelu_exact(x):
    return 0.5 * x * (1.0 + _erf(x * _SQRT_HALF))


def _round_up(a, b):
    return -(-a // b) * b


def _convnext_block_kernel(x_ref, taps_ref, dwb_ref, lnw_ref, lnb_ref,
                           w1_ref, b1_ref, w2_ref, b2_ref, gamma_ref,
                           o_ref, xp_ref, convp_ref, y_ref,
                           *, h, w, ksize, eps, cv_chunk, mlp_chunk):
    # Layouts (all channels-first; C on sublanes, spatial on lanes):
    #   x_ref     : (C, H*W)      one batch, lane-dense NCHW flattened
    #   o_ref     : (C, H*W)      one batch, lane-dense NCHW flattened
    #   xp_ref    : (C, Xpad)     zero-padded image, flattened (Hp*Wp) lanes
    #   convp_ref : (C, Lpad)     conv output in padded-flat coordinates
    #   y_ref     : (C, H*W)      densified conv output (MLP staging)
    c = x_ref.shape[0]
    hw = h * w
    p = ksize // 2
    wp = w + 2 * p
    lv = (h - 1) * wp + w          # valid length of padded-flat conv output

    # ---- stage 0: build zero-padded image in flattened lane layout ---------
    # Zero ONLY the halo (top band, bottom band, 2p-wide inter-row gaps); the
    # interior is fully overwritten below.  Done every iteration so it is safe
    # under "parallel" grid sharding (each core has its own scratch).
    top = p * wp + p
    xp_ref[:, 0:top] = jnp.zeros((c, top), jnp.float32)
    bot = (h - 1 + p) * wp + p + w
    xp_ref[:, bot:] = jnp.zeros((c, xp_ref.shape[1] - bot), jnp.float32)
    gap = jnp.zeros((c, 2 * p), jnp.float32)                 # hoisted constant
    for r in range(h - 1):
        g0 = (r + p) * wp + p + w
        xp_ref[:, g0:g0 + 2 * p] = gap
    for r in range(h):                                        # interior rows
        dst = (r + p) * wp + p
        xp_ref[:, dst:dst + w] = x_ref[:, r * w:(r + 1) * w].astype(jnp.float32)

    # ---- stage 1: depthwise 7x7 conv = 49 shifted MACs on the flat axis ----
    # For output flat index j = r*Wp + c_col:  out[j] = sum_s xp[j + s] * tap_s
    # with s = kh*Wp + kw.  Accumulate per lane-chunk in registers (bounded
    # vreg pressure), store each chunk once.
    taps = taps_ref[...]                                      # (C, 49), hoisted
    for start in range(0, lv, cv_chunk):
        end = min(start + cv_chunk, lv)
        acc = jnp.zeros((c, end - start), jnp.float32)
        for kh in range(ksize):
            for kw in range(ksize):
                s = kh * wp + kw
                # (C,1) tap column broadcasts along lanes (splat rides the
                # otherwise-idle XLU slot; VALU does only the multiply-adds).
                tap_col = taps[:, kh * ksize + kw:kh * ksize + kw + 1]
                acc = acc + xp_ref[:, start + s:end + s] * tap_col
        convp_ref[:, start:end] = acc

    # Densify padded-flat conv output into the lane-dense (C, H*W) buffer.
    for r in range(h):
        y_ref[:, r * w:(r + 1) * w] = convp_ref[:, r * wp:r * wp + w]

    # ---- stage 2: bias + LayerNorm(channels) + MLP + layer scale -----------
    # Chunked over HW so the (4C, chunk) hidden intermediate stays small.
    dwb = dwb_ref[...]                                        # (C, 1)
    lnw = lnw_ref[...]                                        # (C, 1)
    lnb = lnb_ref[...]                                        # (C, 1)
    w1 = w1_ref[...]                                          # (4C, C) as-is
    b1 = b1_ref[...]                                          # (4C, 1)
    w2 = w2_ref[...]                                          # (C, 4C) as-is
    b2 = b2_ref[...]                                          # (C, 1)
    gam = gamma_ref[...]                                      # (C, 1)
    for c0 in range(0, hw, mlp_chunk):
        c1 = min(c0 + mlp_chunk, hw)
        y = y_ref[:, c0:c1] + dwb                             # (C, chunk)
        # LayerNorm over channels (axis 0), biased variance, eps inside rsqrt.
        mu = jnp.mean(y, axis=0, keepdims=True)
        var = jnp.mean(jnp.square(y - mu), axis=0, keepdims=True)
        yn = (y - mu) * jax.lax.rsqrt(var + eps)
        yn = yn * lnw + lnb
        # pwconv1 (C->4C) + GELU + pwconv2 (4C->C) on the MXU, HW on lanes.
        h1 = jnp.dot(w1, yn, preferred_element_type=jnp.float32) + b1
        g = _gelu_exact(h1)
        z = jnp.dot(w2, g, preferred_element_type=jnp.float32) + b2
        o_ref[:, c0:c1] = (z * gam).astype(o_ref.dtype)       # lane-dense store


def convnext_block(x, conv_w, conv_b, ln_w, ln_b, fc1_w, fc1_b, fc2_w, fc2_b,
                   gamma, *, eps=1e-6):
    """Fused ConvNextBlock forward. x: (N, C, H, W); params in PyTorch layout."""
    n, c, h, w = x.shape
    hw = h * w
    ksize = conv_w.shape[-1]
    hidden = fc1_w.shape[0]
    p = ksize // 2
    hp, wp = h + 2 * p, w + 2 * p

    # Scratch geometry (flattened padded-image coordinates).
    xpad = _round_up(hp * wp, 128)
    lv = (h - 1) * wp + w
    lpad = _round_up(lv, 128)
    c_tiles = -(-c // 8)
    # Conv lane-chunk: keep the register accumulator to <= ~32 vregs.
    cv_chunk = 128 * max(1, min(-(-lv // 128), max(1, 32 // c_tiles)))
    # MLP lane-chunk: bound the (4C, chunk) f32 GELU intermediate.
    mlp_chunk = 128 * max(1, min(-(-hw // 128), 8))

    # Metadata-only reshapes outside the kernel; the Linear weights are used
    # as-is ((4C,C) and (C,4C)) because the MLP is computed weights-first.
    x_flat = x.reshape(n, c, hw)
    taps = conv_w.reshape(c, ksize * ksize)                   # (C, 49)
    dwb = conv_b.reshape(c, 1)
    lnw = ln_w.reshape(c, 1)
    lnb = ln_b.reshape(c, 1)
    w1 = fc1_w                                                # (4C, C)
    b1 = fc1_b.reshape(hidden, 1)
    w2 = fc2_w                                                # (C, 4C)
    b2 = fc2_b.reshape(c, 1)
    gam = gamma.reshape(c, 1)

    kernel = functools.partial(_convnext_block_kernel, h=h, w=w, ksize=ksize,
                               eps=eps, cv_chunk=cv_chunk, mlp_chunk=mlp_chunk)

    full2 = lambda i: (0, 0)
    flops = (2 * n * hw * c * ksize * ksize      # depthwise conv
             + 10 * n * hw * c                   # layernorm
             + 4 * n * hw * c * hidden           # two pointwise matmuls
             + 12 * n * hw * hidden)             # gelu
    param_elems = (conv_w.size + conv_b.size + ln_w.size + ln_b.size
                   + fc1_w.size + fc1_b.size + fc2_w.size + fc2_b.size
                   + gamma.size)
    cost = pl.CostEstimate(flops=int(flops),
                           transcendentals=int(n * hw * hidden),
                           bytes_accessed=int(4 * (2 * x.size + param_elems)))

    # Explicit VMEM budget (double-buffered blocks + params + scratch + MLP
    # intermediates), floored at 32 MiB and capped below v7x's 64 MiB.
    est_bytes = 4 * (4 * c * hw                          # x + out, double-buffered
                     + c * (xpad + lpad + hw)            # kernel scratch
                     + 2 * (2 * hidden * c + ksize * ksize * c + 5 * c + hidden)
                     + 3 * hidden * mlp_chunk)           # MLP intermediates
    vmem_limit = int(min(max(2 * est_bytes, 32 * 1024 * 1024), 60 * 1024 * 1024))

    out_flat = pl.pallas_call(
        kernel,
        out_shape=jax.ShapeDtypeStruct((n, c, hw), x.dtype),
        grid_spec=pltpu.PrefetchScalarGridSpec(
            num_scalar_prefetch=0,
            grid=(n,),
            in_specs=[
                pl.BlockSpec((None, c, hw), lambda i: (i, 0, 0)),  # x (per batch)
                pl.BlockSpec((c, ksize * ksize), full2),           # dw taps
                pl.BlockSpec((c, 1), full2),                       # dw bias
                pl.BlockSpec((c, 1), full2),                       # ln weight
                pl.BlockSpec((c, 1), full2),                       # ln bias
                pl.BlockSpec((hidden, c), full2),                  # pwconv1 W
                pl.BlockSpec((hidden, 1), full2),                  # pwconv1 b
                pl.BlockSpec((c, hidden), full2),                  # pwconv2 W
                pl.BlockSpec((c, 1), full2),                       # pwconv2 b
                pl.BlockSpec((c, 1), full2),                       # gamma
            ],
            out_specs=pl.BlockSpec((None, c, hw), lambda i: (i, 0, 0)),
            scratch_shapes=[
                pltpu.VMEM((c, xpad), jnp.float32),    # padded image (flat)
                pltpu.VMEM((c, lpad), jnp.float32),    # conv out (padded-flat)
                pltpu.VMEM((c, hw), jnp.float32),      # conv out (dense)
            ],
        ),
        compiler_params=pltpu.CompilerParams(
            dimension_semantics=("parallel",),   # shard batches across TCs on v7x
            vmem_limit_bytes=vmem_limit,
        ),
        cost_estimate=cost,
    )(x_flat, taps, dwb, lnw, lnb, w1, b1, w2, b2, gam)

    return out_flat.reshape(n, c, h, w)


def _reference(x, conv_w, conv_b, ln_w, ln_b, fc1_w, fc1_b, fc2_w, fc2_b,
               gamma, eps=1e-6):
    hi = jax.lax.Precision.HIGHEST
    c = x.shape[1]
    y = jax.lax.conv_general_dilated(
        x, conv_w, window_strides=(1, 1), padding=((3, 3), (3, 3)),
        dimension_numbers=("NCHW", "OIHW", "NCHW"),
        feature_group_count=c, precision=hi)
    y = y + conv_b[None, :, None, None]
    y = jnp.transpose(y, (0, 2, 3, 1))                            # NHWC
    mu = jnp.mean(y, axis=-1, keepdims=True)
    var = jnp.mean((y - mu) ** 2, axis=-1, keepdims=True)
    y = (y - mu) / jnp.sqrt(var + eps) * ln_w + ln_b
    y = jnp.einsum("nhwc,fc->nhwf", y, fc1_w, precision=hi) + fc1_b
    y = jax.nn.gelu(y, approximate=False)
    y = jnp.einsum("nhwf,cf->nhwc", y, fc2_w, precision=hi) + fc2_b
    y = jnp.transpose(y, (0, 3, 1, 2))                            # NCHW
    return y * gamma[None]


if __name__ == "__main__":
    key = jax.random.PRNGKey(0)
    keys = jax.random.split(key, 9)
    N, C, H, W = 2, 4, 16, 16
    HID = 4 * C

    x = jax.random.normal(keys[0], (N, C, H, W), dtype=jnp.float32)
    conv_w = 0.1 * jax.random.normal(keys[1], (C, 1, 7, 7), dtype=jnp.float32)
    conv_b = 0.1 * jax.random.normal(keys[2], (C,), dtype=jnp.float32)
    ln_w = 1.0 + 0.1 * jax.random.normal(keys[3], (C,), dtype=jnp.float32)
    ln_b = 0.1 * jax.random.normal(keys[4], (C,), dtype=jnp.float32)
    fc1_w = 0.3 * jax.random.normal(keys[5], (HID, C), dtype=jnp.float32)
    fc1_b = 0.1 * jax.random.normal(keys[6], (HID,), dtype=jnp.float32)
    fc2_w = 0.3 * jax.random.normal(keys[7], (C, HID), dtype=jnp.float32)
    fc2_b = 0.1 * jax.random.normal(keys[8], (C,), dtype=jnp.float32)
    gamma = 1e-6 * jnp.ones((C, 1, 1), dtype=jnp.float32)          # layer_scale

    out = convnext_block(x, conv_w, conv_b, ln_w, ln_b, fc1_w, fc1_b,
                         fc2_w, fc2_b, gamma)
    out = jax.block_until_ready(out)

    ref = _reference(x, conv_w, conv_b, ln_w, ln_b, fc1_w, fc1_b,
                     fc2_w, fc2_b, gamma)

    assert out.shape == ref.shape == (N, C, H, W)
    assert out.dtype == x.dtype
    assert jnp.allclose(out, ref, rtol=1e-3, atol=1e-9), float(
        jnp.max(jnp.abs(out - ref)))

    print("KERNEL_OK")
</pallas_src>

<mosaic_0001>
module attributes {stable_mosaic.version = 11 : i64} {
  func.func @_convnext_block_kernel(%arg0: i32, %arg1: memref<1x4x256xf32, #tpu.memory_space<vmem>>, %arg2: memref<4x49xf32, #tpu.memory_space<vmem>>, %arg3: memref<4x1xf32, #tpu.memory_space<vmem>>, %arg4: memref<4x1xf32, #tpu.memory_space<vmem>>, %arg5: memref<4x1xf32, #tpu.memory_space<vmem>>, %arg6: memref<16x4xf32, #tpu.memory_space<vmem>>, %arg7: memref<16x1xf32, #tpu.memory_space<vmem>>, %arg8: memref<4x16xf32, #tpu.memory_space<vmem>>, %arg9: memref<4x1xf32, #tpu.memory_space<vmem>>, %arg10: memref<4x1xf32, #tpu.memory_space<vmem>>, %arg11: memref<1x4x256xf32, #tpu.memory_space<vmem>>, %arg12: memref<4x512xf32, #tpu.memory_space<vmem>>, %arg13: memref<4x384xf32, #tpu.memory_space<vmem>>, %arg14: memref<4x256xf32, #tpu.memory_space<vmem>>) attributes {dimension_semantics = [#tpu.dimension_semantics<parallel>], iteration_bounds = array<i64: 2>, scalar_prefetch = 0 : i64, scratch_operands = 3 : i64, tpu.core_type = #tpu.core_type<tc>, window_params = [{transform_indices = @transform_0, window_bounds = array<i64: 1, 4, 256>}, {pipeline_mode = #tpu.pipeline_mode<synchronous>, transform_indices = @transform_1, window_bounds = array<i64: 4, 49>}, {pipeline_mode = #tpu.pipeline_mode<synchronous>, transform_indices = @transform_2, window_bounds = array<i64: 4, 1>}, {pipeline_mode = #tpu.pipeline_mode<synchronous>, transform_indices = @transform_3, window_bounds = array<i64: 4, 1>}, {pipeline_mode = #tpu.pipeline_mode<synchronous>, transform_indices = @transform_4, window_bounds = array<i64: 4, 1>}, {pipeline_mode = #tpu.pipeline_mode<synchronous>, transform_indices = @transform_5, window_bounds = array<i64: 16, 4>}, {pipeline_mode = #tpu.pipeline_mode<synchronous>, transform_indices = @transform_6, window_bounds = array<i64: 16, 1>}, {pipeline_mode = #tpu.pipeline_mode<synchronous>, transform_indices = @transform_7, window_bounds = array<i64: 4, 16>}, {pipeline_mode = #tpu.pipeline_mode<synchronous>, transform_indices = @transform_8, window_bounds = array<i64: 4, 1>}, {pipeline_mode = #tpu.pipeline_mode<synchronous>, transform_indices = @transform_9, window_bounds = array<i64: 4, 1>}, {transform_indices = @transform_10, window_bounds = array<i64: 1, 4, 256>}]} {
    %cst = arith.constant 0.000000e+00 : f32
    %0 = vector.broadcast %cst : f32 to vector<4x69xf32>
    %c0 = arith.constant 0 : index
    %c0_0 = arith.constant 0 : index
    %1 = vector.load %arg12[%c0, %c0_0] : memref<4x512xf32, #tpu.memory_space<vmem>>, vector<4x69xf32>
    tpu.vector_store %arg12[%c0, %c0_0], %0 {strides = array<i32>} : memref<4x512xf32, #tpu.memory_space<vmem>>, vector<4x69xf32>,
    %cst_1 = arith.constant 0.000000e+00 : f32
    %2 = vector.broadcast %cst_1 : f32 to vector<4x97xf32>
    %c0_2 = arith.constant 0 : index
    %c415 = arith.constant 415 : index
    %3 = vector.load %arg12[%c0_2, %c415] : memref<4x512xf32, #tpu.memory_space<vmem>>, vector<4x97xf32>
    tpu.vector_store %arg12[%c0_2, %c415], %2 {strides = array<i32>} : memref<4x512xf32, #tpu.memory_space<vmem>>, vector<4x97xf32>,
    %cst_3 = arith.constant 0.000000e+00 : f32
    %4 = vector.broadcast %cst_3 : f32 to vector<4x6xf32>
    %c0_4 = arith.constant 0 : index
    %c85 = arith.constant 85 : index
    %5 = vector.load %arg12[%c0_4, %c85] : memref<4x512xf32, #tpu.memory_space<vmem>>, vector<4x6xf32>
    tpu.vector_store %arg12[%c0_4, %c85], %4 {strides = array<i32>} : memref<4x512xf32, #tpu.memory_space<vmem>>, vector<4x6xf32>,
    %c0_5 = arith.constant 0 : index
    %c107 = arith.constant 107 : index
    %6 = vector.load %arg12[%c0_5, %c107] : memref<4x512xf32, #tpu.memory_space<vmem>>, vector<4x6xf32>
    tpu.vector_store %arg12[%c0_5, %c107], %4 {strides = array<i32>} : memref<4x512xf32, #tpu.memory_space<vmem>>, vector<4x6xf32>,
    %c0_6 = arith.constant 0 : index
    %c129 = arith.constant 129 : index
    %7 = vector.load %arg12[%c0_6, %c129] : memref<4x512xf32, #tpu.memory_space<vmem>>, vector<4x6xf32>
    tpu.vector_store %arg12[%c0_6, %c129], %4 {strides = array<i32>} : memref<4x512xf32, #tpu.memory_space<vmem>>, vector<4x6xf32>,
    %c0_7 = arith.constant 0 : index
    %c151 = arith.constant 151 : index
    %8 = vector.load %arg12[%c0_7, %c151] : memref<4x512xf32, #tpu.memory_space<vmem>>, vector<4x6xf32>
    tpu.vector_store %arg12[%c0_7, %c151], %4 {strides = array<i32>} : memref<4x512xf32, #tpu.memory_space<vmem>>, vector<4x6xf32>,
    %c0_8 = arith.constant 0 : index
    %c173 = arith.constant 173 : index
    %9 = vector.load %arg12[%c0_8, %c173] : memref<4x512xf32, #tpu.memory_space<vmem>>, vector<4x6xf32>
    tpu.vector_store %arg12[%c0_8, %c173], %4 {strides = array<i32>} : memref<4x512xf32, #tpu.memory_space<vmem>>, vector<4x6xf32>,
    %c0_9 = arith.constant 0 : index
    %c195 = arith.constant 195 : index
    %10 = vector.load %arg12[%c0_9, %c195] : memref<4x512xf32, #tpu.memory_space<vmem>>, vector<4x6xf32>
    tpu.vector_store %arg12[%c0_9, %c195], %4 {strides = array<i32>} : memref<4x512xf32, #tpu.memory_space<vmem>>, vector<4x6xf32>,
    %c0_10 = arith.constant 0 : index
    %c217 = arith.constant 217 : index
    %11 = vector.load %arg12[%c0_10, %c217] : memref<4x512xf32, #tpu.memory_space<vmem>>, vector<4x6xf32>
    tpu.vector_store %arg12[%c0_10, %c217], %4 {strides = array<i32>} : memref<4x512xf32, #tpu.memory_space<vmem>>, vector<4x6xf32>,
    %c0_11 = arith.constant 0 : index
    %c239 = arith.constant 239 : index
    %12 = vector.load %arg12[%c0_11, %c239] : memref<4x512xf32, #tpu.memory_space<vmem>>, vector<4x6xf32>
    tpu.vector_store %arg12[%c0_11, %c239], %4 {strides = array<i32>} : memref<4x512xf32, #tpu.memory_space<vmem>>, vector<4x6xf32>,
    %c0_12 = arith.constant 0 : index
    %c261 = arith.constant 261 : index
    %13 = vector.load %arg12[%c0_12, %c261] : memref<4x512xf32, #tpu.memory_space<vmem>>, vector<4x6xf32>
    tpu.vector_store %arg12[%c0_12, %c261], %4 {strides = array<i32>} : memref<4x512xf32, #tpu.memory_space<vmem>>, vector<4x6xf32>,
    %c0_13 = arith.constant 0 : index
    %c283 = arith.constant 283 : index
    %14 = vector.load %arg12[%c0_13, %c283] : memref<4x512xf32, #tpu.memory_space<vmem>>, vector<4x6xf32>
    tpu.vector_store %arg12[%c0_13, %c283], %4 {strides = array<i32>} : memref<4x512xf32, #tpu.memory_space<vmem>>, vector<4x6xf32>,
    %c0_14 = arith.constant 0 : index
    %c305 = arith.constant 305 : index
    %15 = vector.load %arg12[%c0_14, %c305] : memref<4x512xf32, #tpu.memory_space<vmem>>, vector<4x6xf32>
    tpu.vector_store %arg12[%c0_14, %c305], %4 {strides = array<i32>} : memref<4x512xf32, #tpu.memory_space<vmem>>, vector<4x6xf32>,
    %c0_15 = arith.constant 0 : index
    %c327 = arith.constant 327 : index
    %16 = vector.load %arg12[%c0_15, %c327] : memref<4x512xf32, #tpu.memory_space<vmem>>, vector<4x6xf32>
    tpu.vector_store %arg12[%c0_15, %c327], %4 {strides = array<i32>} : memref<4x512xf32, #tpu.memory_space<vmem>>, vector<4x6xf32>,
    %c0_16 = arith.constant 0 : index
    %c349 = arith.constant 349 : index
    %17 = vector.load %arg12[%c0_16, %c349] : memref<4x512xf32, #tpu.memory_space<vmem>>, vector<4x6xf32>
    tpu.vector_store %arg12[%c0_16, %c349], %4 {strides = array<i32>} : memref<4x512xf32, #tpu.memory_space<vmem>>, vector<4x6xf32>,
    %c0_17 = arith.constant 0 : index
    %c371 = arith.constant 371 : index
    %18 = vector.load %arg12[%c0_17, %c371] : memref<4x512xf32, #tpu.memory_space<vmem>>, vector<4x6xf32>
    tpu.vector_store %arg12[%c0_17, %c371], %4 {strides = array<i32>} : memref<4x512xf32, #tpu.memory_space<vmem>>, vector<4x6xf32>,
    %c0_18 = arith.constant 0 : index
    %c393 = arith.constant 393 : index
    %19 = vector.load %arg12[%c0_18, %c393] : memref<4x512xf32, #tpu.memory_space<vmem>>, vector<4x6xf32>
    tpu.vector_store %arg12[%c0_18, %c393], %4 {strides = array<i32>} : memref<4x512xf32, #tpu.memory_space<vmem>>, vector<4x6xf32>,
    %c0_19 = arith.constant 0 : index
    %c0_20 = arith.constant 0 : index
    %c0_21 = arith.constant 0 : index
    %20 = vector.load %arg1[%c0_19, %c0_20, %c0_21] : memref<1x4x256xf32, #tpu.memory_space<vmem>>, vector<1x4x16xf32>
    %21 = vector.shape_cast %20 : vector<1x4x16xf32> to vector<4x16xf32>
    %c0_22 = arith.constant 0 : index
    %c69 = arith.constant 69 : index
    %22 = vector.load %arg12[%c0_22, %c69] : memref<4x512xf32, #tpu.memory_space<vmem>>, vector<4x16xf32>
    tpu.vector_store %arg12[%c0_22, %c69], %21 {strides = array<i32>} : memref<4x512xf32, #tpu.memory_space<vmem>>, vector<4x16xf32>,
    %c0_23 = arith.constant 0 : index
    %c0_24 = arith.constant 0 : index
    %c16 = arith.constant 16 : index
    %23 = vector.load %arg1[%c0_23, %c0_24, %c16] : memref<1x4x256xf32, #tpu.memory_space<vmem>>, vector<1x4x16xf32>
    %24 = vector.shape_cast %23 : vector<1x4x16xf32> to vector<4x16xf32>
    %c0_25 = arith.constant 0 : index
    %c91 = arith.constant 91 : index
    %25 = vector.load %arg12[%c0_25, %c91] : memref<4x512xf32, #tpu.memory_space<vmem>>, vector<4x16xf32>
    tpu.vector_store %arg12[%c0_25, %c91], %24 {strides = array<i32>} : memref<4x512xf32, #tpu.memory_space<vmem>>, vector<4x16xf32>,
    %c0_26 = arith.constant 0 : index
    %c0_27 = arith.constant 0 : index
    %c32 = arith.constant 32 : index
    %26 = vector.load %arg1[%c0_26, %c0_27, %c32] : memref<1x4x256xf32, #tpu.memory_space<vmem>>, vector<1x4x16xf32>
    %27 = vector.shape_cast %26 : vector<1x4x16xf32> to vector<4x16xf32>
    %c0_28 = arith.constant 0 : index
    %c113 = arith.constant 113 : index
    %28 = vector.load %arg12[%c0_28, %c113] : memref<4x512xf32, #tpu.memory_space<vmem>>, vector<4x16xf32>
    tpu.vector_store %arg12[%c0_28, %c113], %27 {strides = array<i32>} : memref<4x512xf32, #tpu.memory_space<vmem>>, vector<4x16xf32>,
    %c0_29 = arith.constant 0 : index
    %c0_30 = arith.constant 0 : index
    %c48 = arith.constant 48 : index
    %29 = vector.load %arg1[%c0_29, %c0_30, %c48] : memref<1x4x256xf32, #tpu.memory_space<vmem>>, vector<1x4x16xf32>
    %30 = vector.shape_cast %29 : vector<1x4x16xf32> to vector<4x16xf32>
    %c0_31 = arith.constant 0 : index
    %c135 = arith.constant 135 : index
    %31 = vector.load %arg12[%c0_31, %c135] : memref<4x512xf32, #tpu.memory_space<vmem>>, vector<4x16xf32>
    tpu.vector_store %arg12[%c0_31, %c135], %30 {strides = array<i32>} : memref<4x512xf32, #tpu.memory_space<vmem>>, vector<4x16xf32>,
    %c0_32 = arith.constant 0 : index
    %c0_33 = arith.constant 0 : index
    %c64 = arith.constant 64 : index
    %32 = vector.load %arg1[%c0_32, %c0_33, %c64] : memref<1x4x256xf32, #tpu.memory_space<vmem>>, vector<1x4x16xf32>
    %33 = vector.shape_cast %32 : vector<1x4x16xf32> to vector<4x16xf32>
    %c0_34 = arith.constant 0 : index
    %c157 = arith.constant 157 : index
    %34 = vector.load %arg12[%c0_34, %c157] : memref<4x512xf32, #tpu.memory_space<vmem>>, vector<4x16xf32>
    tpu.vector_store %arg12[%c0_34, %c157], %33 {strides = array<i32>} : memref<4x512xf32, #tpu.memory_space<vmem>>, vector<4x16xf32>,
    %c0_35 = arith.constant 0 : index
    %c0_36 = arith.constant 0 : index
    %c80 = arith.constant 80 : index
    %35 = vector.load %arg1[%c0_35, %c0_36, %c80] : memref<1x4x256xf32, #tpu.memory_space<vmem>>, vector<1x4x16xf32>
    %36 = vector.shape_cast %35 : vector<1x4x16xf32> to vector<4x16xf32>
    %c0_37 = arith.constant 0 : index
    %c179 = arith.constant 179 : index
    %37 = vector.load %arg12[%c0_37, %c179] : memref<4x512xf32, #tpu.memory_space<vmem>>, vector<4x16xf32>
    tpu.vector_store %arg12[%c0_37, %c179], %36 {strides = array<i32>} : memref<4x512xf32, #tpu.memory_space<vmem>>, vector<4x16xf32>,
    %c0_38 = arith.constant 0 : index
    %c0_39 = arith.constant 0 : index
    %c96 = arith.constant 96 : index
    %38 = vector.load %arg1[%c0_38, %c0_39, %c96] : memref<1x4x256xf32, #tpu.memory_space<vmem>>, vector<1x4x16xf32>
    %39 = vector.shape_cast %38 : vector<1x4x16xf32> to vector<4x16xf32>
    %c0_40 = arith.constant 0 : index
    %c201 = arith.constant 201 : index
    %40 = vector.load %arg12[%c0_40, %c201] : memref<4x512xf32, #tpu.memory_space<vmem>>, vector<4x16xf32>
    tpu.vector_store %arg12[%c0_40, %c201], %39 {strides = array<i32>} : memref<4x512xf32, #tpu.memory_space<vmem>>, vector<4x16xf32>,
    %c0_41 = arith.constant 0 : index
    %c0_42 = arith.constant 0 : index
    %c112 = arith.constant 112 : index
    %41 = vector.load %arg1[%c0_41, %c0_42, %c112] : memref<1x4x256xf32, #tpu.memory_space<vmem>>, vector<1x4x16xf32>
    %42 = vector.shape_cast %41 : vector<1x4x16xf32> to vector<4x16xf32>
    %c0_43 = arith.constant 0 : index
    %c223 = arith.constant 223 : index
    %43 = vector.load %arg12[%c0_43, %c223] : memref<4x512xf32, #tpu.memory_space<vmem>>, vector<4x16xf32>
    tpu.vector_store %arg12[%c0_43, %c223], %42 {strides = array<i32>} : memref<4x512xf32, #tpu.memory_space<vmem>>, vector<4x16xf32>,
    %c0_44 = arith.constant 0 : index
    %c0_45 = arith.constant 0 : index
    %c128 = arith.constant 128 : index
    %44 = vector.load %arg1[%c0_44, %c0_45, %c128] : memref<1x4x256xf32, #tpu.memory_space<vmem>>, vector<1x4x16xf32>
    %45 = vector.shape_cast %44 : vector<1x4x16xf32> to vector<4x16xf32>
    %c0_46 = arith.constant 0 : index
    %c245 = arith.constant 245 : index
    %46 = vector.load %arg12[%c0_46, %c245] : memref<4x512xf32, #tpu.memory_space<vmem>>, vector<4x16xf32>
    tpu.vector_store %arg12[%c0_46, %c245], %45 {strides = array<i32>} : memref<4x512xf32, #tpu.memory_space<vmem>>, vector<4x16xf32>,
    %c0_47 = arith.constant 0 : index
    %c0_48 = arith.constant 0 : index
    %c144 = arith.constant 144 : index
    %47 = vector.load %arg1[%c0_47, %c0_48, %c144] : memref<1x4x256xf32, #tpu.memory_space<vmem>>, vector<1x4x16xf32>
    %48 = vector.shape_cast %47 : vector<1x4x16xf32> to vector<4x16xf32>
    %c0_49 = arith.constant 0 : index
    %c267 = arith.constant 267 : index
    %49 = vector.load %arg12[%c0_49, %c267] : memref<4x512xf32, #tpu.memory_space<vmem>>, vector<4x16xf32>
    tpu.vector_store %arg12[%c0_49, %c267], %48 {strides = array<i32>} : memref<4x512xf32, #tpu.memory_space<vmem>>, vector<4x16xf32>,
    %c0_50 = arith.constant 0 : index
    %c0_51 = arith.constant 0 : index
    %c160 = arith.constant 160 : index
    %50 = vector.load %arg1[%c0_50, %c0_51, %c160] : memref<1x4x256xf32, #tpu.memory_space<vmem>>, vector<1x4x16xf32>
    %51 = vector.shape_cast %50 : vector<1x4x16xf32> to vector<4x16xf32>
    %c0_52 = arith.constant 0 : index
    %c289 = arith.constant 289 : index
    %52 = vector.load %arg12[%c0_52, %c289] : memref<4x512xf32, #tpu.memory_space<vmem>>, vector<4x16xf32>
    tpu.vector_store %arg12[%c0_52, %c289], %51 {strides = array<i32>} : memref<4x512xf32, #tpu.memory_space<vmem>>, vector<4x16xf32>,
    %c0_53 = arith.constant 0 : index
    %c0_54 = arith.constant 0 : index
    %c176 = arith.constant 176 : index
    %53 = vector.load %arg1[%c0_53, %c0_54, %c176] : memref<1x4x256xf32, #tpu.memory_space<vmem>>, vector<1x4x16xf32>
    %54 = vector.shape_cast %53 : vector<1x4x16xf32> to vector<4x16xf32>
    %c0_55 = arith.constant 0 : index
    %c311 = arith.constant 311 : index
    %55 = vector.load %arg12[%c0_55, %c311] : memref<4x512xf32, #tpu.memory_space<vmem>>, vector<4x16xf32>
    tpu.vector_store %arg12[%c0_55, %c311], %54 {strides = array<i32>} : memref<4x512xf32, #tpu.memory_space<vmem>>, vector<4x16xf32>,
    %c0_56 = arith.constant 0 : index
    %c0_57 = arith.constant 0 : index
    %c192 = arith.constant 192 : index
    %56 = vector.load %arg1[%c0_56, %c0_57, %c192] : memref<1x4x256xf32, #tpu.memory_space<vmem>>, vector<1x4x16xf32>
    %57 = vector.shape_cast %56 : vector<1x4x16xf32> to vector<4x16xf32>
    %c0_58 = arith.constant 0 : index
    %c333 = arith.constant 333 : index
    %58 = vector.load %arg12[%c0_58, %c333] : memref<4x512xf32, #tpu.memory_space<vmem>>, vector<4x16xf32>
    tpu.vector_store %arg12[%c0_58, %c333], %57 {strides = array<i32>} : memref<4x512xf32, #tpu.memory_space<vmem>>, vector<4x16xf32>,
    %c0_59 = arith.constant 0 : index
    %c0_60 = arith.constant 0 : index
    %c208 = arith.constant 208 : index
    %59 = vector.load %arg1[%c0_59, %c0_60, %c208] : memref<1x4x256xf32, #tpu.memory_space<vmem>>, vector<1x4x16xf32>
    %60 = vector.shape_cast %59 : vector<1x4x16xf32> to vector<4x16xf32>
    %c0_61 = arith.constant 0 : index
    %c355 = arith.constant 355 : index
    %61 = vector.load %arg12[%c0_61, %c355] : memref<4x512xf32, #tpu.memory_space<vmem>>, vector<4x16xf32>
    tpu.vector_store %arg12[%c0_61, %c355], %60 {strides = array<i32>} : memref<4x512xf32, #tpu.memory_space<vmem>>, vector<4x16xf32>,
    %c0_62 = arith.constant 0 : index
    %c0_63 = arith.constant 0 : index
    %c224 = arith.constant 224 : index
    %62 = vector.load %arg1[%c0_62, %c0_63, %c224] : memref<1x4x256xf32, #tpu.memory_space<vmem>>, vector<1x4x16xf32>
    %63 = vector.shape_cast %62 : vector<1x4x16xf32> to vector<4x16xf32>
    %c0_64 = arith.constant 0 : index
    %c377 = arith.constant 377 : index
    %64 = vector.load %arg12[%c0_64, %c377] : memref<4x512xf32, #tpu.memory_space<vmem>>, vector<4x16xf32>
    tpu.vector_store %arg12[%c0_64, %c377], %63 {strides = array<i32>} : memref<4x512xf32, #tpu.memory_space<vmem>>, vector<4x16xf32>,
    %c0_65 = arith.constant 0 : index
    %c0_66 = arith.constant 0 : index
    %c240 = arith.constant 240 : index
    %65 = vector.load %arg1[%c0_65, %c0_66, %c240] : memref<1x4x256xf32, #tpu.memory_space<vmem>>, vector<1x4x16xf32>
    %66 = vector.shape_cast %65 : vector<1x4x16xf32> to vector<4x16xf32>
    %c0_67 = arith.constant 0 : index
    %c399 = arith.constant 399 : index
    %67 = vector.load %arg12[%c0_67, %c399] : memref<4x512xf32, #tpu.memory_space<vmem>>, vector<4x16xf32>
    tpu.vector_store %arg12[%c0_67, %c399], %66 {strides = array<i32>} : memref<4x512xf32, #tpu.memory_space<vmem>>, vector<4x16xf32>,
    %c0_68 = arith.constant 0 : index
    %c0_69 = arith.constant 0 : index
    %68 = vector.load %arg2[%c0_68, %c0_69] : memref<4x49xf32, #tpu.memory_space<vmem>>, vector<4x49xf32>
    %cst_70 = arith.constant 0.000000e+00 : f32
    %69 = vector.broadcast %cst_70 : f32 to vector<4x346xf32>
    %70 = vector.extract_strided_slice %68 {offsets = [0, 0], sizes = [4, 1], strides = [1, 1]} : vector<4x49xf32> to vector<4x1xf32>
    %c0_71 = arith.constant 0 : index
    %c0_72 = arith.constant 0 : index
    %71 = vector.load %arg12[%c0_71, %c0_72] : memref<4x512xf32, #tpu.memory_space<vmem>>, vector<4x346xf32>
    %72 = vector.broadcast %70 : vector<4x1xf32> to vector<4x346xf32>
    %73 = arith.mulf %71, %72 : vector<4x346xf32>
    %74 = arith.addf %69, %73 : vector<4x346xf32>
    %75 = vector.extract_strided_slice %68 {offsets = [0, 1], sizes = [4, 1], strides = [1, 1]} : vector<4x49xf32> to vector<4x1xf32>
    %c0_73 = arith.constant 0 : index
    %c1 = arith.constant 1 : index
    %76 = vector.load %arg12[%c0_73, %c1] : memref<4x512xf32, #tpu.memory_space<vmem>>, vector<4x346xf32>
    %77 = vector.broadcast %75 : vector<4x1xf32> to vector<4x346xf32>
    %78 = arith.mulf %76, %77 : vector<4x346xf32>
    %79 = arith.addf %74, %78 : vector<4x346xf32>
    %80 = vector.extract_strided_slice %68 {offsets = [0, 2], sizes = [4, 1], strides = [1, 1]} : vector<4x49xf32> to vector<4x1xf32>
    %c0_74 = arith.constant 0 : index
    %c2 = arith.constant 2 : index
    %81 = vector.load %arg12[%c0_74, %c2] : memref<4x512xf32, #tpu.memory_space<vmem>>, vector<4x346xf32>
    %82 = vector.broadcast %80 : vector<4x1xf32> to vector<4x346xf32>
    %83 = arith.mulf %81, %82 : vector<4x346xf32>
    %84 = arith.addf %79, %83 : vector<4x346xf32>
    %85 = vector.extract_strided_slice %68 {offsets = [0, 3], sizes = [4, 1], strides = [1, 1]} : vector<4x49xf32> to vector<4x1xf32>
    %c0_75 = arith.constant 0 : index
    %c3 = arith.constant 3 : index
    %86 = vector.load %arg12[%c0_75, %c3] : memref<4x512xf32, #tpu.memory_space<vmem>>, vector<4x346xf32>
    %87 = vector.broadcast %85 : vector<4x1xf32> to vector<4x346xf32>
    %88 = arith.mulf %86, %87 : vector<4x346xf32>
    %89 = arith.addf %84, %88 : vector<4x346xf32>
    %90 = vector.extract_strided_slice %68 {offsets = [0, 4], sizes = [4, 1], strides = [1, 1]} : vector<4x49xf32> to vector<4x1xf32>
    %c0_76 = arith.constant 0 : index
    %c4 = arith.constant 4 : index
    %91 = vector.load %arg12[%c0_76, %c4] : memref<4x512xf32, #tpu.memory_space<vmem>>, vector<4x346xf32>
    %92 = vector.broadcast %90 : vector<4x1xf32> to vector<4x346xf32>
    %93 = arith.mulf %91, %92 : vector<4x346xf32>
    %94 = arith.addf %89, %93 : vector<4x346xf32>
    %95 = vector.extract_strided_slice %68 {offsets = [0, 5], sizes = [4, 1], strides = [1, 1]} : vector<4x49xf32> to vector<4x1xf32>
    %c0_77 = arith.constant 0 : index
    %c5 = arith.constant 5 : index
    %96 = vector.load %arg12[%c0_77, %c5] : memref<4x512xf32, #tpu.memory_space<vmem>>, vector<4x346xf32>
    %97 = vector.broadcast %95 : vector<4x1xf32> to vector<4x346xf32>
    %98 = arith.mulf %96, %97 : vector<4x346xf32>
    %99 = arith.addf %94, %98 : vector<4x346xf32>
    %100 = vector.extract_strided_slice %68 {offsets = [0, 6], sizes = [4, 1], strides = [1, 1]} : vector<4x49xf32> to vector<4x1xf32>
    %c0_78 = arith.constant 0 : index
    %c6 = arith.constant 6 : index
    %101 = vector.load %arg12[%c0_78, %c6] : memref<4x512xf32, #tpu.memory_space<vmem>>, vector<4x346xf32>
    %102 = vector.broadcast %100 : vector<4x1xf32> to vector<4x346xf32>
    %103 = arith.mulf %101, %102 : vector<4x346xf32>
    %104 = arith.addf %99, %103 : vector<4x346xf32>
    %105 = vector.extract_strided_slice %68 {offsets = [0, 7], sizes = [4, 1], strides = [1, 1]} : vector<4x49xf32> to vector<4x1xf32>
    %c0_79 = arith.constant 0 : index
    %c22 = arith.constant 22 : index
    %106 = vector.load %arg12[%c0_79, %c22] : memref<4x512xf32, #tpu.memory_space<vmem>>, vector<4x346xf32>
    %107 = vector.broadcast %105 : vector<4x1xf32> to vector<4x346xf32>
    %108 = arith.mulf %106, %107 : vector<4x346xf32>
    %109 = arith.addf %104, %108 : vector<4x346xf32>
    %110 = vector.extract_strided_slice %68 {offsets = [0, 8], sizes = [4, 1], strides = [1, 1]} : vector<4x49xf32> to vector<4x1xf32>
    %c0_80 = arith.constant 0 : index
    %c23 = arith.constant 23 : index
    %111 = vector.load %arg12[%c0_80, %c23] : memref<4x512xf32, #tpu.memory_space<vmem>>, vector<4x346xf32>
    %112 = vector.broadcast %110 : vector<4x1xf32> to vector<4x346xf32>
    %113 = arith.mulf %111, %112 : vector<4x346xf32>
    %114 = arith.addf %109, %113 : vector<4x346xf32>
    %115 = vector.extract_strided_slice %68 {offsets = [0, 9], sizes = [4, 1], strides = [1, 1]} : vector<4x49xf32> to vector<4x1xf32>
    %c0_81 = arith.constant 0 : index
    %c24 = arith.constant 24 : index
    %116 = vector.load %arg12[%c0_81, %c24] : memref<4x512xf32, #tpu.memory_space<vmem>>, vector<4x346xf32>
    %117 = vector.broadcast %115 : vector<4x1xf32> to vector<4x346xf32>
    %118 = arith.mulf %116, %117 : vector<4x346xf32>
    %119 = arith.addf %114, %118 : vector<4x346xf32>
    %120 = vector.extract_strided_slice %68 {offsets = [0, 10], sizes = [4, 1], strides = [1, 1]} : vector<4x49xf32> to vector<4x1xf32>
    %c0_82 = arith.constant 0 : index
    %c25 = arith.constant 25 : index
    %121 = vector.load %arg12[%c0_82, %c25] : memref<4x512xf32, #tpu.memory_space<vmem>>, vector<4x346xf32>
    %122 = vector.broadcast %120 : vector<4x1xf32> to vector<4x346xf32>
    %123 = arith.mulf %121, %122 : vector<4x346xf32>
    %124 = arith.addf %119, %123 : vector<4x346xf32>
    %125 = vector.extract_strided_slice %68 {offsets = [0, 11], sizes = [4, 1], strides = [1, 1]} : vector<4x49xf32> to vector<4x1xf32>
    %c0_83 = arith.constant 0 : index
    %c26 = arith.constant 26 : index
    %126 = vector.load %arg12[%c0_83, %c26] : memref<4x512xf32, #tpu.memory_space<vmem>>, vector<4x346xf32>
    %127 = vector.broadcast %125 : vector<4x1xf32> to vector<4x346xf32>
    %128 = arith.mulf %126, %127 : vector<4x346xf32>
    %129 = arith.addf %124, %128 : vector<4x346xf32>
    %130 = vector.extract_strided_slice %68 {offsets = [0, 12], sizes = [4, 1], strides = [1, 1]} : vector<4x49xf32> to vector<4x1xf32>
    %c0_84 = arith.constant 0 : index
    %c27 = arith.constant 27 : index
    %131 = vector.load %arg12[%c0_84, %c27] : memref<4x512xf32, #tpu.memory_space<vmem>>, vector<4x346xf32>
    %132 = vector.broadcast %130 : vector<4x1xf32> to vector<4x346xf32>
    %133 = arith.mulf %131, %132 : vector<4x346xf32>
    %134 = arith.addf %129, %133 : vector<4x346xf32>
    %135 = vector.extract_strided_slice %68 {offsets = [0, 13], sizes = [4, 1], strides = [1, 1]} : vector<4x49xf32> to vector<4x1xf32>
    %c0_85 = arith.constant 0 : index
    %c28 = arith.constant 28 : index
    %136 = vector.load %arg12[%c0_85, %c28] : memref<4x512xf32, #tpu.memory_space<vmem>>, vector<4x346xf32>
    %137 = vector.broadcast %135 : vector<4x1xf32> to vector<4x346xf32>
    %138 = arith.mulf %136, %137 : vector<4x346xf32>
    %139 = arith.addf %134, %138 : vector<4x346xf32>
    %140 = vector.extract_strided_slice %68 {offsets = [0, 14], sizes = [4, 1], strides = [1, 1]} : vector<4x49xf32> to vector<4x1xf32>
    %c0_86 = arith.constant 0 : index
    %c44 = arith.constant 44 : index
    %141 = vector.load %arg12[%c0_86, %c44] : memref<4x512xf32, #tpu.memory_space<vmem>>, vector<4x346xf32>
    %142 = vector.broadcast %140 : vector<4x1xf32> to vector<4x346xf32>
    %143 = arith.mulf %141, %142 : vector<4x346xf32>
    %144 = arith.addf %139, %143 : vector<4x346xf32>
    %145 = vector.extract_strided_slice %68 {offsets = [0, 15], sizes = [4, 1], strides = [1, 1]} : vector<4x49xf32> to vector<4x1xf32>
    %c0_87 = arith.constant 0 : index
    %c45 = arith.constant 45 : index
    %146 = vector.load %arg12[%c0_87, %c45] : memref<4x512xf32, #tpu.memory_space<vmem>>, vector<4x346xf32>
    %147 = vector.broadcast %145 : vector<4x1xf32> to vector<4x346xf32>
    %148 = arith.mulf %146, %147 : vector<4x346xf32>
    %149 = arith.addf %144, %148 : vector<4x346xf32>
    %150 = vector.extract_strided_slice %68 {offsets = [0, 16], sizes = [4, 1], strides = [1, 1]} : vector<4x49xf32> to vector<4x1xf32>
    %c0_88 = arith.constant 0 : index
    %c46 = arith.constant 46 : index
    %151 = vector.load %arg12[%c0_88, %c46] : memref<4x512xf32, #tpu.memory_space<vmem>>, vector<4x346xf32>
    %152 = vector.broadcast %150 : vector<4x1xf32> to vector<4x346xf32>
    %153 = arith.mulf %151, %152 : vector<4x346xf32>
    %154 = arith.addf %149, %153 : vector<4x346xf32>
    %155 = vector.extract_strided_slice %68 {offsets = [0, 17], sizes = [4, 1], strides = [1, 1]} : vector<4x49xf32> to vector<4x1xf32>
    %c0_89 = arith.constant 0 : index
    %c47 = arith.constant 47 : index
    %156 = vector.load %arg12[%c0_89, %c47] : memref<4x512xf32, #tpu.memory_space<vmem>>, vector<4x346xf32>
    %157 = vector.broadcast %155 : vector<4x1xf32> to vector<4x346xf32>
    %158 = arith.mulf %156, %157 : vector<4x346xf32>
    %159 = arith.addf %154, %158 : vector<4x346xf32>
    %160 = vector.extract_strided_slice %68 {offsets = [0, 18], sizes = [4, 1], strides = [1, 1]} : vector<4x49xf32> to vector<4x1xf32>
    %c0_90 = arith.constant 0 : index
    %c48_91 = arith.constant 48 : index
    %161 = vector.load %arg12[%c0_90, %c48_91] : memref<4x512xf32, #tpu.memory_space<vmem>>, vector<4x346xf32>
    %162 = vector.broadcast %160 : vector<4x1xf32> to vector<4x346xf32>
    %163 = arith.mulf %161, %162 : vector<4x346xf32>
    %164 = arith.addf %159, %163 : vector<4x346xf32>
    %165 = vector.extract_strided_slice %68 {offsets = [0, 19], sizes = [4, 1], strides = [1, 1]} : vector<4x49xf32> to vector<4x1xf32>
    %c0_92 = arith.constant 0 : index
    %c49 = arith.constant 49 : index
    %166 = vector.load %arg12[%c0_92, %c49] : memref<4x512xf32, #tpu.memory_space<vmem>>, vector<4x346xf32>
    %167 = vector.broadcast %165 : vector<4x1xf32> to vector<4x346xf32>
    %168 = arith.mulf %166, %167 : vector<4x346xf32>
    %169 = arith.addf %164, %168 : vector<4x346xf32>
    %170 = vector.extract_strided_slice %68 {offsets = [0, 20], sizes = [4, 1], strides = [1, 1]} : vector<4x49xf32> to vector<4x1xf32>
    %c0_93 = arith.constant 0 : index
    %c50 = arith.constant 50 : index
    %171 = vector.load %arg12[%c0_93, %c50] : memref<4x512xf32, #tpu.memory_space<vmem>>, vector<4x346xf32>
    %172 = vector.broadcast %170 : vector<4x1xf32> to vector<4x346xf32>
    %173 = arith.mulf %171, %172 : vector<4x346xf32>
    %174 = arith.addf %169, %173 : vector<4x346xf32>
    %175 = vector.extract_strided_slice %68 {offsets = [0, 21], sizes = [4, 1], strides = [1, 1]} : vector<4x49xf32> to vector<4x1xf32>
    %c0_94 = arith.constant 0 : index
    %c66 = arith.constant 66 : index
    %176 = vector.load %arg12[%c0_94, %c66] : memref<4x512xf32, #tpu.memory_space<vmem>>, vector<4x346xf32>
    %177 = vector.broadcast %175 : vector<4x1xf32> to vector<4x346xf32>
    %178 = arith.mulf %176, %177 : vector<4x346xf32>
    %179 = arith.addf %174, %178 : vector<4x346xf32>
    %180 = vector.extract_strided_slice %68 {offsets = [0, 22], sizes = [4, 1], strides = [1, 1]} : vector<4x49xf32> to vector<4x1xf32>
    %c0_95 = arith.constant 0 : index
    %c67 = arith.constant 67 : index
    %181 = vector.load %arg12[%c0_95, %c67] : memref<4x512xf32, #tpu.memory_space<vmem>>, vector<4x346xf32>
    %182 = vector.broadcast %180 : vector<4x1xf32> to vector<4x346xf32>
    %183 = arith.mulf %181, %182 : vector<4x346xf32>
    %184 = arith.addf %179, %183 : vector<4x346xf32>
    %185 = vector.extract_strided_slice %68 {offsets = [0, 23], sizes = [4, 1], strides = [1, 1]} : vector<4x49xf32> to vector<4x1xf32>
    %c0_96 = arith.constant 0 : index
    %c68 = arith.constant 68 : index
    %186 = vector.load %arg12[%c0_96, %c68] : memref<4x512xf32, #tpu.memory_space<vmem>>, vector<4x346xf32>
    %187 = vector.broadcast %185 : vector<4x1xf32> to vector<4x346xf32>
    %188 = arith.mulf %186, %187 : vector<4x346xf32>
    %189 = arith.addf %184, %188 : vector<4x346xf32>
    %190 = vector.extract_strided_slice %68 {offsets = [0, 24], sizes = [4, 1], strides = [1, 1]} : vector<4x49xf32> to vector<4x1xf32>
    %c0_97 = arith.constant 0 : index
    %c69_98 = arith.constant 69 : index
    %191 = vector.load %arg12[%c0_97, %c69_98] : memref<4x512xf32, #tpu.memory_space<vmem>>, vector<4x346xf32>
    %192 = vector.broadcast %190 : vector<4x1xf32> to vector<4x346xf32>
    %193 = arith.mulf %191, %192 : vector<4x346xf32>
    %194 = arith.addf %189, %193 : vector<4x346xf32>
    %195 = vector.extract_strided_slice %68 {offsets = [0, 25], sizes = [4, 1], strides = [1, 1]} : vector<4x49xf32> to vector<4x1xf32>
    %c0_99 = arith.constant 0 : index
    %c70 = arith.constant 70 : index
    %196 = vector.load %arg12[%c0_99, %c70] : memref<4x512xf32, #tpu.memory_space<vmem>>, vector<4x346xf32>
    %197 = vector.broadcast %195 : vector<4x1xf32> to vector<4x346xf32>
    %198 = arith.mulf %196, %197 : vector<4x346xf32>
    %199 = arith.addf %194, %198 : vector<4x346xf32>
    %200 = vector.extract_strided_slice %68 {offsets = [0, 26], sizes = [4, 1], strides = [1, 1]} : vector<4x49xf32> to vector<4x1xf32>
    %c0_100 = arith.constant 0 : index
    %c71 = arith.constant 71 : index
    %201 = vector.load %arg12[%c0_100, %c71] : memref<4x512xf32, #tpu.memory_space<vmem>>, vector<4x346xf32>
    %202 = vector.broadcast %200 : vector<4x1xf32> to vector<4x346xf32>
    %203 = arith.mulf %201, %202 : vector<4x346xf32>
    %204 = arith.addf %199, %203 : vector<4x346xf32>
    %205 = vector.extract_strided_slice %68 {offsets = [0, 27], sizes = [4, 1], strides = [1, 1]} : vector<4x49xf32> to vector<4x1xf32>
    %c0_101 = arith.constant 0 : index
    %c72 = arith.constant 72 : index
    %206 = vector.load %arg12[%c0_101, %c72] : memref<4x512xf32, #tpu.memory_space<vmem>>, vector<4x346xf32>
    %207 = vector.broadcast %205 : vector<4x1xf32> to vector<4x346xf32>
    %208 = arith.mulf %206, %207 : vector<4x346xf32>
    %209 = arith.addf %204, %208 : vector<4x346xf32>
    %210 = vector.extract_strided_slice %68 {offsets = [0, 28], sizes = [4, 1], strides = [1, 1]} : vector<4x49xf32> to vector<4x1xf32>
    %c0_102 = arith.constant 0 : index
    %c88 = arith.constant 88 : index
    %211 = vector.load %arg12[%c0_102, %c88] : memref<4x512xf32, #tpu.memory_space<vmem>>, vector<4x346xf32>
    %212 = vector.broadcast %210 : vector<4x1xf32> to vector<4x346xf32>
    %213 = arith.mulf %211, %212 : vector<4x346xf32>
    %214 = arith.addf %209, %213 : vector<4x346xf32>
    %215 = vector.extract_strided_slice %68 {offsets = [0, 29], sizes = [4, 1], strides = [1, 1]} : vector<4x49xf32> to vector<4x1xf32>
    %c0_103 = arith.constant 0 : index
    %c89 = arith.constant 89 : index
    %216 = vector.load %arg12[%c0_103, %c89] : memref<4x512xf32, #tpu.memory_space<vmem>>, vector<4x346xf32>
    %217 = vector.broadcast %215 : vector<4x1xf32> to vector<4x346xf32>
    %218 = arith.mulf %216, %217 : vector<4x346xf32>
    %219 = arith.addf %214, %218 : vector<4x346xf32>
    %220 = vector.extract_strided_slice %68 {offsets = [0, 30], sizes = [4, 1], strides = [1, 1]} : vector<4x49xf32> to vector<4x1xf32>
    %c0_104 = arith.constant 0 : index
    %c90 = arith.constant 90 : index
    %221 = vector.load %arg12[%c0_104, %c90] : memref<4x512xf32, #tpu.memory_space<vmem>>, vector<4x346xf32>
    %222 = vector.broadcast %220 : vector<4x1xf32> to vector<4x346xf32>
    %223 = arith.mulf %221, %222 : vector<4x346xf32>
    %224 = arith.addf %219, %223 : vector<4x346xf32>
    %225 = vector.extract_strided_slice %68 {offsets = [0, 31], sizes = [4, 1], strides = [1, 1]} : vector<4x49xf32> to vector<4x1xf32>
    %c0_105 = arith.constant 0 : index
    %c91_106 = arith.constant 91 : index
    %226 = vector.load %arg12[%c0_105, %c91_106] : memref<4x512xf32, #tpu.memory_space<vmem>>, vector<4x346xf32>
    %227 = vector.broadcast %225 : vector<4x1xf32> to vector<4x346xf32>
    %228 = arith.mulf %226, %227 : vector<4x346xf32>
    %229 = arith.addf %224, %228 : vector<4x346xf32>
    %230 = vector.extract_strided_slice %68 {offsets = [0, 32], sizes = [4, 1], strides = [1, 1]} : vector<4x49xf32> to vector<4x1xf32>
    %c0_107 = arith.constant 0 : index
    %c92 = arith.constant 92 : index
    %231 = vector.load %arg12[%c0_107, %c92] : memref<4x512xf32, #tpu.memory_space<vmem>>, vector<4x346xf32>
    %232 = vector.broadcast %230 : vector<4x1xf32> to vector<4x346xf32>
    %233 = arith.mulf %231, %232 : vector<4x346xf32>
    %234 = arith.addf %229, %233 : vector<4x346xf32>
    %235 = vector.extract_strided_slice %68 {offsets = [0, 33], sizes = [4, 1], strides = [1, 1]} : vector<4x49xf32> to vector<4x1xf32>
    %c0_108 = arith.constant 0 : index
    %c93 = arith.constant 93 : index
    %236 = vector.load %arg12[%c0_108, %c93] : memref<4x512xf32, #tpu.memory_space<vmem>>, vector<4x346xf32>
    %237 = vector.broadcast %235 : vector<4x1xf32> to vector<4x346xf32>
    %238 = arith.mulf %236, %237 : vector<4x346xf32>
    %239 = arith.addf %234, %238 : vector<4x346xf32>
    %240 = vector.extract_strided_slice %68 {offsets = [0, 34], sizes = [4, 1], strides = [1, 1]} : vector<4x49xf32> to vector<4x1xf32>
    %c0_109 = arith.constant 0 : index
    %c94 = arith.constant 94 : index
    %241 = vector.load %arg12[%c0_109, %c94] : memref<4x512xf32, #tpu.memory_space<vmem>>, vector<4x346xf32>
    %242 = vector.broadcast %240 : vector<4x1xf32> to vector<4x346xf32>
    %243 = arith.mulf %241, %242 : vector<4x346xf32>
    %244 = arith.addf %239, %243 : vector<4x346xf32>
    %245 = vector.extract_strided_slice %68 {offsets = [0, 35], sizes = [4, 1], strides = [1, 1]} : vector<4x49xf32> to vector<4x1xf32>
    %c0_110 = arith.constant 0 : index
    %c110 = arith.constant 110 : index
    %246 = vector.load %arg12[%c0_110, %c110] : memref<4x512xf32, #tpu.memory_space<vmem>>, vector<4x346xf32>
    %247 = vector.broadcast %245 : vector<4x1xf32> to vector<4x346xf32>
    %248 = arith.mulf %246, %247 : vector<4x346xf32>
    %249 = arith.addf %244, %248 : vector<4x346xf32>
    %250 = vector.extract_strided_slice %68 {offsets = [0, 36], sizes = [4, 1], strides = [1, 1]} : vector<4x49xf32> to vector<4x1xf32>
    %c0_111 = arith.constant 0 : index
    %c111 = arith.constant 111 : index
    %251 = vector.load %arg12[%c0_111, %c111] : memref<4x512xf32, #tpu.memory_space<vmem>>, vector<4x346xf32>
    %252 = vector.broadcast %250 : vector<4x1xf32> to vector<4x346xf32>
    %253 = arith.mulf %251, %252 : vector<4x346xf32>
    %254 = arith.addf %249, %253 : vector<4x346xf32>
    %255 = vector.extract_strided_slice %68 {offsets = [0, 37], sizes = [4, 1], strides = [1, 1]} : vector<4x49xf32> to vector<4x1xf32>
    %c0_112 = arith.constant 0 : index
    %c112_113 = arith.constant 112 : index
    %256 = vector.load %arg12[%c0_112, %c112_113] : memref<4x512xf32, #tpu.memory_space<vmem>>, vector<4x346xf32>
    %257 = vector.broadcast %255 : vector<4x1xf32> to vector<4x346xf32>
    %258 = arith.mulf %256, %257 : vector<4x346xf32>
    %259 = arith.addf %254, %258 : vector<4x346xf32>
    %260 = vector.extract_strided_slice %68 {offsets = [0, 38], sizes = [4, 1], strides = [1, 1]} : vector<4x49xf32> to vector<4x1xf32>
    %c0_114 = arith.constant 0 : index
    %c113_115 = arith.constant 113 : index
    %261 = vector.load %arg12[%c0_114, %c113_115] : memref<4x512xf32, #tpu.memory_space<vmem>>, vector<4x346xf32>
    %262 = vector.broadcast %260 : vector<4x1xf32> to vector<4x346xf32>
    %263 = arith.mulf %261, %262 : vector<4x346xf32>
    %264 = arith.addf %259, %263 : vector<4x346xf32>
    %265 = vector.extract_strided_slice %68 {offsets = [0, 39], sizes = [4, 1], strides = [1, 1]} : vector<4x49xf32> to vector<4x1xf32>
    %c0_116 = arith.constant 0 : index
    %c114 = arith.constant 114 : index
    %266 = vector.load %arg12[%c0_116, %c114] : memref<4x512xf32, #tpu.memory_space<vmem>>, vector<4x346xf32>
    %267 = vector.broadcast %265 : vector<4x1xf32> to vector<4x346xf32>
    %268 = arith.mulf %266, %267 : vector<4x346xf32>
    %269 = arith.addf %264, %268 : vector<4x346xf32>
    %270 = vector.extract_strided_slice %68 {offsets = [0, 40], sizes = [4, 1], strides = [1, 1]} : vector<4x49xf32> to vector<4x1xf32>
    %c0_117 = arith.constant 0 : index
    %c115 = arith.constant 115 : index
    %271 = vector.load %arg12[%c0_117, %c115] : memref<4x512xf32, #tpu.memory_space<vmem>>, vector<4x346xf32>
    %272 = vector.broadcast %270 : vector<4x1xf32> to vector<4x346xf32>
    %273 = arith.mulf %271, %272 : vector<4x346xf32>
    %274 = arith.addf %269, %273 : vector<4x346xf32>
    %275 = vector.extract_strided_slice %68 {offsets = [0, 41], sizes = [4, 1], strides = [1, 1]} : vector<4x49xf32> to vector<4x1xf32>
    %c0_118 = arith.constant 0 : index
    %c116 = arith.constant 116 : index
    %276 = vector.load %arg12[%c0_118, %c116] : memref<4x512xf32, #tpu.memory_space<vmem>>, vector<4x346xf32>
    %277 = vector.broadcast %275 : vector<4x1xf32> to vector<4x346xf32>
    %278 = arith.mulf %276, %277 : vector<4x346xf32>
    %279 = arith.addf %274, %278 : vector<4x346xf32>
    %280 = vector.extract_strided_slice %68 {offsets = [0, 42], sizes = [4, 1], strides = [1, 1]} : vector<4x49xf32> to vector<4x1xf32>
    %c0_119 = arith.constant 0 : index
    %c132 = arith.constant 132 : index
    %281 = vector.load %arg12[%c0_119, %c132] : memref<4x512xf32, #tpu.memory_space<vmem>>, vector<4x346xf32>
    %282 = vector.broadcast %280 : vector<4x1xf32> to vector<4x346xf32>
    %283 = arith.mulf %281, %282 : vector<4x346xf32>
    %284 = arith.addf %279, %283 : vector<4x346xf32>
    %285 = vector.extract_strided_slice %68 {offsets = [0, 43], sizes = [4, 1], strides = [1, 1]} : vector<4x49xf32> to vector<4x1xf32>
    %c0_120 = arith.constant 0 : index
    %c133 = arith.constant 133 : index
    %286 = vector.load %arg12[%c0_120, %c133] : memref<4x512xf32, #tpu.memory_space<vmem>>, vector<4x346xf32>
    %287 = vector.broadcast %285 : vector<4x1xf32> to vector<4x346xf32>
    %288 = arith.mulf %286, %287 : vector<4x346xf32>
    %289 = arith.addf %284, %288 : vector<4x346xf32>
    %290 = vector.extract_strided_slice %68 {offsets = [0, 44], sizes = [4, 1], strides = [1, 1]} : vector<4x49xf32> to vector<4x1xf32>
    %c0_121 = arith.constant 0 : index
    %c134 = arith.constant 134 : index
    %291 = vector.load %arg12[%c0_121, %c134] : memref<4x512xf32, #tpu.memory_space<vmem>>, vector<4x346xf32>
    %292 = vector.broadcast %290 : vector<4x1xf32> to vector<4x346xf32>
    %293 = arith.mulf %291, %292 : vector<4x346xf32>
    %294 = arith.addf %289, %293 : vector<4x346xf32>
    %295 = vector.extract_strided_slice %68 {offsets = [0, 45], sizes = [4, 1], strides = [1, 1]} : vector<4x49xf32> to vector<4x1xf32>
    %c0_122 = arith.constant 0 : index
    %c135_123 = arith.constant 135 : index
    %296 = vector.load %arg12[%c0_122, %c135_123] : memref<4x512xf32, #tpu.memory_space<vmem>>, vector<4x346xf32>
    %297 = vector.broadcast %295 : vector<4x1xf32> to vector<4x346xf32>
    %298 = arith.mulf %296, %297 : vector<4x346xf32>
    %299 = arith.addf %294, %298 : vector<4x346xf32>
    %300 = vector.extract_strided_slice %68 {offsets = [0, 46], sizes = [4, 1], strides = [1, 1]} : vector<4x49xf32> to vector<4x1xf32>
    %c0_124 = arith.constant 0 : index
    %c136 = arith.constant 136 : index
    %301 = vector.load %arg12[%c0_124, %c136] : memref<4x512xf32, #tpu.memory_space<vmem>>, vector<4x346xf32>
    %302 = vector.broadcast %300 : vector<4x1xf32> to vector<4x346xf32>
    %303 = arith.mulf %301, %302 : vector<4x346xf32>
    %304 = arith.addf %299, %303 : vector<4x346xf32>
    %305 = vector.extract_strided_slice %68 {offsets = [0, 47], sizes = [4, 1], strides = [1, 1]} : vector<4x49xf32> to vector<4x1xf32>
    %c0_125 = arith.constant 0 : index
    %c137 = arith.constant 137 : index
    %306 = vector.load %arg12[%c0_125, %c137] : memref<4x512xf32, #tpu.memory_space<vmem>>, vector<4x346xf32>
    %307 = vector.broadcast %305 : vector<4x1xf32> to vector<4x346xf32>
    %308 = arith.mulf %306, %307 : vector<4x346xf32>
    %309 = arith.addf %304, %308 : vector<4x346xf32>
    %310 = vector.extract_strided_slice %68 {offsets = [0, 48], sizes = [4, 1], strides = [1, 1]} : vector<4x49xf32> to vector<4x1xf32>
    %c0_126 = arith.constant 0 : index
    %c138 = arith.constant 138 : index
    %311 = vector.load %arg12[%c0_126, %c138] : memref<4x512xf32, #tpu.memory_space<vmem>>, vector<4x346xf32>
    %312 = vector.broadcast %310 : vector<4x1xf32> to vector<4x346xf32>
    %313 = arith.mulf %311, %312 : vector<4x346xf32>
    %314 = arith.addf %309, %313 : vector<4x346xf32>
    %c0_127 = arith.constant 0 : index
    %c0_128 = arith.constant 0 : index
    %315 = vector.load %arg13[%c0_127, %c0_128] : memref<4x384xf32, #tpu.memory_space<vmem>>, vector<4x346xf32>
    tpu.vector_store %arg13[%c0_127, %c0_128], %314 {strides = array<i32>} : memref<4x384xf32, #tpu.memory_space<vmem>>, vector<4x346xf32>,
    %c0_129 = arith.constant 0 : index
    %c0_130 = arith.constant 0 : index
    %316 = vector.load %arg13[%c0_129, %c0_130] : memref<4x384xf32, #tpu.memory_space<vmem>>, vector<4x16xf32>
    %c0_131 = arith.constant 0 : index
    %c0_132 = arith.constant 0 : index
    %317 = vector.load %arg14[%c0_131, %c0_132] : memref<4x256xf32, #tpu.memory_space<vmem>>, vector<4x16xf32>
    tpu.vector_store %arg14[%c0_131, %c0_132], %316 {strides = array<i32>} : memref<4x256xf32, #tpu.memory_space<vmem>>, vector<4x16xf32>,
    %c0_133 = arith.constant 0 : index
    %c22_134 = arith.constant 22 : index
    %318 = vector.load %arg13[%c0_133, %c22_134] : memref<4x384xf32, #tpu.memory_space<vmem>>, vector<4x16xf32>
    %c0_135 = arith.constant 0 : index
    %c16_136 = arith.constant 16 : index
    %319 = vector.load %arg14[%c0_135, %c16_136] : memref<4x256xf32, #tpu.memory_space<vmem>>, vector<4x16xf32>
    tpu.vector_store %arg14[%c0_135, %c16_136], %318 {strides = array<i32>} : memref<4x256xf32, #tpu.memory_space<vmem>>, vector<4x16xf32>,
    %c0_137 = arith.constant 0 : index
    %c44_138 = arith.constant 44 : index
    %320 = vector.load %arg13[%c0_137, %c44_138] : memref<4x384xf32, #tpu.memory_space<vmem>>, vector<4x16xf32>
    %c0_139 = arith.constant 0 : index
    %c32_140 = arith.constant 32 : index
    %321 = vector.load %arg14[%c0_139, %c32_140] : memref<4x256xf32, #tpu.memory_space<vmem>>, vector<4x16xf32>
    tpu.vector_store %arg14[%c0_139, %c32_140], %320 {strides = array<i32>} : memref<4x256xf32, #tpu.memory_space<vmem>>, vector<4x16xf32>,
    %c0_141 = arith.constant 0 : index
    %c66_142 = arith.constant 66 : index
    %322 = vector.load %arg13[%c0_141, %c66_142] : memref<4x384xf32, #tpu.memory_space<vmem>>, vector<4x16xf32>
    %c0_143 = arith.constant 0 : index
    %c48_144 = arith.constant 48 : index
    %323 = vector.load %arg14[%c0_143, %c48_144] : memref<4x256xf32, #tpu.memory_space<vmem>>, vector<4x16xf32>
    tpu.vector_store %arg14[%c0_143, %c48_144], %322 {strides = array<i32>} : memref<4x256xf32, #tpu.memory_space<vmem>>, vector<4x16xf32>,
    %c0_145 = arith.constant 0 : index
    %c88_146 = arith.constant 88 : index
    %324 = vector.load %arg13[%c0_145, %c88_146] : memref<4x384xf32, #tpu.memory_space<vmem>>, vector<4x16xf32>
    %c0_147 = arith.constant 0 : index
    %c64_148 = arith.constant 64 : index
    %325 = vector.load %arg14[%c0_147, %c64_148] : memref<4x256xf32, #tpu.memory_space<vmem>>, vector<4x16xf32>
    tpu.vector_store %arg14[%c0_147, %c64_148], %324 {strides = array<i32>} : memref<4x256xf32, #tpu.memory_space<vmem>>, vector<4x16xf32>,
    %c0_149 = arith.constant 0 : index
    %c110_150 = arith.constant 110 : index
    %326 = vector.load %arg13[%c0_149, %c110_150] : memref<4x384xf32, #tpu.memory_space<vmem>>, vector<4x16xf32>
    %c0_151 = arith.constant 0 : index
    %c80_152 = arith.constant 80 : index
    %327 = vector.load %arg14[%c0_151, %c80_152] : memref<4x256xf32, #tpu.memory_space<vmem>>, vector<4x16xf32>
    tpu.vector_store %arg14[%c0_151, %c80_152], %326 {strides = array<i32>} : memref<4x256xf32, #tpu.memory_space<vmem>>, vector<4x16xf32>,
    %c0_153 = arith.constant 0 : index
    %c132_154 = arith.constant 132 : index
    %328 = vector.load %arg13[%c0_153, %c132_154] : memref<4x384xf32, #tpu.memory_space<vmem>>, vector<4x16xf32>
    %c0_155 = arith.constant 0 : index
    %c96_156 = arith.constant 96 : index
    %329 = vector.load %arg14[%c0_155, %c96_156] : memref<4x256xf32, #tpu.memory_space<vmem>>, vector<4x16xf32>
    tpu.vector_store %arg14[%c0_155, %c96_156], %328 {strides = array<i32>} : memref<4x256xf32, #tpu.memory_space<vmem>>, vector<4x16xf32>,
    %c0_157 = arith.constant 0 : index
    %c154 = arith.constant 154 : index
    %330 = vector.load %arg13[%c0_157, %c154] : memref<4x384xf32, #tpu.memory_space<vmem>>, vector<4x16xf32>
    %c0_158 = arith.constant 0 : index
    %c112_159 = arith.constant 112 : index
    %331 = vector.load %arg14[%c0_158, %c112_159] : memref<4x256xf32, #tpu.memory_space<vmem>>, vector<4x16xf32>
    tpu.vector_store %arg14[%c0_158, %c112_159], %330 {strides = array<i32>} : memref<4x256xf32, #tpu.memory_space<vmem>>, vector<4x16xf32>,
    %c0_160 = arith.constant 0 : index
    %c176_161 = arith.constant 176 : index
    %332 = vector.load %arg13[%c0_160, %c176_161] : memref<4x384xf32, #tpu.memory_space<vmem>>, vector<4x16xf32>
    %c0_162 = arith.constant 0 : index
    %c128_163 = arith.constant 128 : index
    %333 = vector.load %arg14[%c0_162, %c128_163] : memref<4x256xf32, #tpu.memory_space<vmem>>, vector<4x16xf32>
    tpu.vector_store %arg14[%c0_162, %c128_163], %332 {strides = array<i32>} : memref<4x256xf32, #tpu.memory_space<vmem>>, vector<4x16xf32>,
    %c0_164 = arith.constant 0 : index
    %c198 = arith.constant 198 : index
    %334 = vector.load %arg13[%c0_164, %c198] : memref<4x384xf32, #tpu.memory_space<vmem>>, vector<4x16xf32>
    %c0_165 = arith.constant 0 : index
    %c144_166 = arith.constant 144 : index
    %335 = vector.load %arg14[%c0_165, %c144_166] : memref<4x256xf32, #tpu.memory_space<vmem>>, vector<4x16xf32>
    tpu.vector_store %arg14[%c0_165, %c144_166], %334 {strides = array<i32>} : memref<4x256xf32, #tpu.memory_space<vmem>>, vector<4x16xf32>,
    %c0_167 = arith.constant 0 : index
    %c220 = arith.constant 220 : index
    %336 = vector.load %arg13[%c0_167, %c220] : memref<4x384xf32, #tpu.memory_space<vmem>>, vector<4x16xf32>
    %c0_168 = arith.constant 0 : index
    %c160_169 = arith.constant 160 : index
    %337 = vector.load %arg14[%c0_168, %c160_169] : memref<4x256xf32, #tpu.memory_space<vmem>>, vector<4x16xf32>
    tpu.vector_store %arg14[%c0_168, %c160_169], %336 {strides = array<i32>} : memref<4x256xf32, #tpu.memory_space<vmem>>, vector<4x16xf32>,
    %c0_170 = arith.constant 0 : index
    %c242 = arith.constant 242 : index
    %338 = vector.load %arg13[%c0_170, %c242] : memref<4x384xf32, #tpu.memory_space<vmem>>, vector<4x16xf32>
    %c0_171 = arith.constant 0 : index
    %c176_172 = arith.constant 176 : index
    %339 = vector.load %arg14[%c0_171, %c176_172] : memref<4x256xf32, #tpu.memory_space<vmem>>, vector<4x16xf32>
    tpu.vector_store %arg14[%c0_171, %c176_172], %338 {strides = array<i32>} : memref<4x256xf32, #tpu.memory_space<vmem>>, vector<4x16xf32>,
    %c0_173 = arith.constant 0 : index
    %c264 = arith.constant 264 : index
    %340 = vector.load %arg13[%c0_173, %c264] : memref<4x384xf32, #tpu.memory_space<vmem>>, vector<4x16xf32>
    %c0_174 = arith.constant 0 : index
    %c192_175 = arith.constant 192 : index
    %341 = vector.load %arg14[%c0_174, %c192_175] : memref<4x256xf32, #tpu.memory_space<vmem>>, vector<4x16xf32>
    tpu.vector_store %arg14[%c0_174, %c192_175], %340 {strides = array<i32>} : memref<4x256xf32, #tpu.memory_space<vmem>>, vector<4x16xf32>,
    %c0_176 = arith.constant 0 : index
    %c286 = arith.constant 286 : index
    %342 = vector.load %arg13[%c0_176, %c286] : memref<4x384xf32, #tpu.memory_space<vmem>>, vector<4x16xf32>
    %c0_177 = arith.constant 0 : index
    %c208_178 = arith.constant 208 : index
    %343 = vector.load %arg14[%c0_177, %c208_178] : memref<4x256xf32, #tpu.memory_space<vmem>>, vector<4x16xf32>
    tpu.vector_store %arg14[%c0_177, %c208_178], %342 {strides = array<i32>} : memref<4x256xf32, #tpu.memory_space<vmem>>, vector<4x16xf32>,
    %c0_179 = arith.constant 0 : index
    %c308 = arith.constant 308 : index
    %344 = vector.load %arg13[%c0_179, %c308] : memref<4x384xf32, #tpu.memory_space<vmem>>, vector<4x16xf32>
    %c0_180 = arith.constant 0 : index
    %c224_181 = arith.constant 224 : index
    %345 = vector.load %arg14[%c0_180, %c224_181] : memref<4x256xf32, #tpu.memory_space<vmem>>, vector<4x16xf32>
    tpu.vector_store %arg14[%c0_180, %c224_181], %344 {strides = array<i32>} : memref<4x256xf32, #tpu.memory_space<vmem>>, vector<4x16xf32>,
    %c0_182 = arith.constant 0 : index
    %c330 = arith.constant 330 : index
    %346 = vector.load %arg13[%c0_182, %c330] : memref<4x384xf32, #tpu.memory_space<vmem>>, vector<4x16xf32>
    %c0_183 = arith.constant 0 : index
    %c240_184 = arith.constant 240 : index
    %347 = vector.load %arg14[%c0_183, %c240_184] : memref<4x256xf32, #tpu.memory_space<vmem>>, vector<4x16xf32>
    tpu.vector_store %arg14[%c0_183, %c240_184], %346 {strides = array<i32>} : memref<4x256xf32, #tpu.memory_space<vmem>>, vector<4x16xf32>,
    %c0_185 = arith.constant 0 : index
    %c0_186 = arith.constant 0 : index
    %348 = vector.load %arg3[%c0_185, %c0_186] : memref<4x1xf32, #tpu.memory_space<vmem>>, vector<4x1xf32>
    %c0_187 = arith.constant 0 : index
    %c0_188 = arith.constant 0 : index
    %349 = vector.load %arg4[%c0_187, %c0_188] : memref<4x1xf32, #tpu.memory_space<vmem>>, vector<4x1xf32>
    %c0_189 = arith.constant 0 : index
    %c0_190 = arith.constant 0 : index
    %350 = vector.load %arg5[%c0_189, %c0_190] : memref<4x1xf32, #tpu.memory_space<vmem>>, vector<4x1xf32>
    %c0_191 = arith.constant 0 : index
    %c0_192 = arith.constant 0 : index
    %351 = vector.load %arg6[%c0_191, %c0_192] : memref<16x4xf32, #tpu.memory_space<vmem>>, vector<16x4xf32>
    %c0_193 = arith.constant 0 : index
    %c0_194 = arith.constant 0 : index
    %352 = vector.load %arg7[%c0_193, %c0_194] : memref<16x1xf32, #tpu.memory_space<vmem>>, vector<16x1xf32>
    %c0_195 = arith.constant 0 : index
    %c0_196 = arith.constant 0 : index
    %353 = vector.load %arg8[%c0_195, %c0_196] : memref<4x16xf32, #tpu.memory_space<vmem>>, vector<4x16xf32>
    %c0_197 = arith.constant 0 : index
    %c0_198 = arith.constant 0 : index
    %354 = vector.load %arg9[%c0_197, %c0_198] : memref<4x1xf32, #tpu.memory_space<vmem>>, vector<4x1xf32>
    %c0_199 = arith.constant 0 : index
    %c0_200 = arith.constant 0 : index
    %355 = vector.load %arg10[%c0_199, %c0_200] : memref<4x1xf32, #tpu.memory_space<vmem>>, vector<4x1xf32>
    %c0_201 = arith.constant 0 : index
    %c0_202 = arith.constant 0 : index
    %356 = vector.load %arg14[%c0_201, %c0_202] : memref<4x256xf32, #tpu.memory_space<vmem>>, vector<4x256xf32>
    %357 = vector.broadcast %348 : vector<4x1xf32> to vector<4x256xf32>
    %358 = arith.addf %356, %357 : vector<4x256xf32>
    %cst_203 = arith.constant dense<0.000000e+00> : vector<256xf32>
    %359 = vector.multi_reduction <add>, %358, %cst_203 [0] : vector<4x256xf32> to vector<256xf32>
    %360 = vector.shape_cast %359 : vector<256xf32> to vector<1x256xf32>
    %cst_204 = arith.constant 4.000000e+00 : f32
    %361 = vector.broadcast %cst_204 : f32 to vector<1x256xf32>
    %362 = arith.divf %360, %361 : vector<1x256xf32>
    %363 = vector.broadcast %362 : vector<1x256xf32> to vector<4x256xf32>
    %364 = arith.subf %358, %363 : vector<4x256xf32>
    %365 = arith.mulf %364, %364 : vector<4x256xf32>
    %cst_205 = arith.constant dense<0.000000e+00> : vector<256xf32>
    %366 = vector.multi_reduction <add>, %365, %cst_205 [0] : vector<4x256xf32> to vector<256xf32>
    %367 = vector.shape_cast %366 : vector<256xf32> to vector<1x256xf32>
    %cst_206 = arith.constant 4.000000e+00 : f32
    %368 = vector.broadcast %cst_206 : f32 to vector<1x256xf32>
    %369 = arith.divf %367, %368 : vector<1x256xf32>
    %370 = vector.broadcast %362 : vector<1x256xf32> to vector<4x256xf32>
    %371 = arith.subf %358, %370 : vector<4x256xf32>
    %cst_207 = arith.constant 9.99999997E-7 : f32
    %372 = vector.broadcast %cst_207 : f32 to vector<1x256xf32>
    %373 = arith.addf %369, %372 : vector<1x256xf32>
    %374 = math.rsqrt %373 : vector<1x256xf32>
    %375 = vector.broadcast %374 : vector<1x256xf32> to vector<4x256xf32>
    %376 = arith.mulf %371, %375 : vector<4x256xf32>
    %377 = vector.broadcast %349 : vector<4x1xf32> to vector<4x256xf32>
    %378 = arith.mulf %376, %377 : vector<4x256xf32>
    %379 = vector.broadcast %350 : vector<4x1xf32> to vector<4x256xf32>
    %380 = arith.addf %378, %379 : vector<4x256xf32>
    %cst_208 = arith.constant dense<0.000000e+00> : vector<16x256xf32>
    %381 = tpu.matmul %351, %380, %cst_208 {dimension_numbers = #tpu.dot_dimension_numbers<[1], [0], [0], [1], [0, 0, 1, 1], [], []>} : vector<16x4xf32>, vector<4x256xf32>, vector<16x256xf32> -> vector<16x256xf32>
    %382 = vector.broadcast %352 : vector<16x1xf32> to vector<16x256xf32>
    %383 = arith.addf %381, %382 : vector<16x256xf32>
    %cst_209 = arith.constant 5.000000e-01 : f32
    %384 = vector.broadcast %cst_209 : f32 to vector<16x256xf32>
    %385 = arith.mulf %384, %383 : vector<16x256xf32>
    %cst_210 = arith.constant 0.707106769 : f32
    %386 = vector.broadcast %cst_210 : f32 to vector<16x256xf32>
    %387 = arith.mulf %383, %386 : vector<16x256xf32>
    %cst_211 = arith.constant 0.000000e+00 : f32
    %388 = vector.broadcast %cst_211 : f32 to vector<16x256xf32>
    %389 = arith.cmpf oge, %387, %388 : vector<16x256xf32>
    %cst_212 = arith.constant 1.000000e+00 : f32
    %cst_213 = arith.constant -1.000000e+00 : f32
    %390 = vector.broadcast %cst_212 : f32 to vector<16x256xf32>
    %391 = vector.broadcast %cst_213 : f32 to vector<16x256xf32>
    %392 = arith.select %389, %390, %391 : vector<16x256xi1>, vector<16x256xf32>
    %393 = math.absf %387 : vector<16x256xf32>
    %cst_214 = arith.constant 0.327591091 : f32
    %394 = vector.broadcast %cst_214 : f32 to vector<16x256xf32>
    %395 = arith.mulf %394, %393 : vector<16x256xf32>
    %cst_215 = arith.constant 1.000000e+00 : f32
    %396 = vector.broadcast %cst_215 : f32 to vector<16x256xf32>
    %397 = arith.addf %396, %395 : vector<16x256xf32>
    %cst_216 = arith.constant 1.000000e+00 : f32
    %398 = vector.broadcast %cst_216 : f32 to vector<16x256xf32>
    %399 = arith.divf %398, %397 : vector<16x256xf32>
    %cst_217 = arith.constant 1.06140542 : f32
    %400 = vector.broadcast %cst_217 : f32 to vector<16x256xf32>
    %401 = arith.mulf %399, %400 : vector<16x256xf32>
    %cst_218 = arith.constant -1.45315206 : f32
    %402 = vector.broadcast %cst_218 : f32 to vector<16x256xf32>
    %403 = arith.addf %402, %401 : vector<16x256xf32>
    %404 = arith.mulf %399, %403 : vector<16x256xf32>
    %cst_219 = arith.constant 1.42141378 : f32
    %405 = vector.broadcast %cst_219 : f32 to vector<16x256xf32>
    %406 = arith.addf %405, %404 : vector<16x256xf32>
    %407 = arith.mulf %399, %406 : vector<16x256xf32>
    %cst_220 = arith.constant -0.284496725 : f32
    %408 = vector.broadcast %cst_220 : f32 to vector<16x256xf32>
    %409 = arith.addf %408, %407 : vector<16x256xf32>
    %410 = arith.mulf %399, %409 : vector<16x256xf32>
    %cst_221 = arith.constant 0.254829586 : f32
    %411 = vector.broadcast %cst_221 : f32 to vector<16x256xf32>
    %412 = arith.addf %411, %410 : vector<16x256xf32>
    %413 = arith.mulf %399, %412 : vector<16x256xf32>
    %cst_222 = arith.constant 0.000000e+00 : f32
    %414 = vector.broadcast %cst_222 : f32 to vector<16x256xf32>
    %415 = arith.subf %414, %393 : vector<16x256xf32>
    %416 = arith.mulf %415, %393 : vector<16x256xf32>
    %417 = math.exp %416 : vector<16x256xf32>
    %418 = arith.mulf %413, %417 : vector<16x256xf32>
    %cst_223 = arith.constant 1.000000e+00 : f32
    %419 = vector.broadcast %cst_223 : f32 to vector<16x256xf32>
    %420 = arith.subf %419, %418 : vector<16x256xf32>
    %421 = arith.mulf %392, %420 : vector<16x256xf32>
    %cst_224 = arith.constant 1.000000e+00 : f32
    %422 = vector.broadcast %cst_224 : f32 to vector<16x256xf32>
    %423 = arith.addf %422, %421 : vector<16x256xf32>
    %424 = arith.mulf %385, %423 : vector<16x256xf32>
    %cst_225 = arith.constant dense<0.000000e+00> : vector<4x256xf32>
    %425 = tpu.matmul %353, %424, %cst_225 {dimension_numbers = #tpu.dot_dimension_numbers<[1], [0], [0], [1], [0, 0, 1, 1], [], []>} : vector<4x16xf32>, vector<16x256xf32>, vector<4x256xf32> -> vector<4x256xf32>
    %426 = vector.broadcast %354 : vector<4x1xf32> to vector<4x256xf32>
    %427 = arith.addf %425, %426 : vector<4x256xf32>
    %428 = vector.broadcast %355 : vector<4x1xf32> to vector<4x256xf32>
    %429 = arith.mulf %427, %428 : vector<4x256xf32>
    %c0_226 = arith.constant 0 : index
    %c0_227 = arith.constant 0 : index
    %c0_228 = arith.constant 0 : index
    %430 = vector.load %arg11[%c0_226, %c0_227, %c0_228] : memref<1x4x256xf32, #tpu.memory_space<vmem>>, vector<1x4x256xf32>
    %431 = vector.shape_cast %430 : vector<1x4x256xf32> to vector<4x256xf32>
    %432 = vector.shape_cast %429 : vector<4x256xf32> to vector<1x4x256xf32>
    tpu.vector_store %arg11[%c0_226, %c0_227, %c0_228], %432 {strides = array<i32>} : memref<1x4x256xf32, #tpu.memory_space<vmem>>, vector<1x4x256xf32>,
    return
  }
  func.func @transform_0(%arg0: i32) -> (i32, i32, i32) {
    %c0_i32 = arith.constant 0 : i32
    %c0_i32_0 = arith.constant 0 : i32
    %c0_i32_1 = arith.constant 0 : i32
    return %arg0, %c0_i32, %c0_i32_0 : i32, i32, i32
  }
  func.func @transform_1(%arg0: i32) -> (i32, i32) {
    %c0_i32 = arith.constant 0 : i32
    %c0_i32_0 = arith.constant 0 : i32
    %c0_i32_1 = arith.constant 0 : i32
    return %c0_i32, %c0_i32_0 : i32, i32
  }
  func.func @transform_2(%arg0: i32) -> (i32, i32) {
    %c0_i32 = arith.constant 0 : i32
    %c0_i32_0 = arith.constant 0 : i32
    %c0_i32_1 = arith.constant 0 : i32
    return %c0_i32, %c0_i32_0 : i32, i32
  }
  func.func @transform_3(%arg0: i32) -> (i32, i32) {
    %c0_i32 = arith.constant 0 : i32
    %c0_i32_0 = arith.constant 0 : i32
    %c0_i32_1 = arith.constant 0 : i32
    return %c0_i32, %c0_i32_0 : i32, i32
  }
  func.func @transform_4(%arg0: i32) -> (i32, i32) {
    %c0_i32 = arith.constant 0 : i32
    %c0_i32_0 = arith.constant 0 : i32
    %c0_i32_1 = arith.constant 0 : i32
    return %c0_i32, %c0_i32_0 : i32, i32
  }
  func.func @transform_5(%arg0: i32) -> (i32, i32) {
    %c0_i32 = arith.constant 0 : i32
    %c0_i32_0 = arith.constant 0 : i32
    %c0_i32_1 = arith.constant 0 : i32
    return %c0_i32, %c0_i32_0 : i32, i32
  }
  func.func @transform_6(%arg0: i32) -> (i32, i32) {
    %c0_i32 = arith.constant 0 : i32
    %c0_i32_0 = arith.constant 0 : i32
    %c0_i32_1 = arith.constant 0 : i32
    return %c0_i32, %c0_i32_0 : i32, i32
  }
  func.func @transform_7(%arg0: i32) -> (i32, i32) {
    %c0_i32 = arith.constant 0 : i32
    %c0_i32_0 = arith.constant 0 : i32
    %c0_i32_1 = arith.constant 0 : i32
    return %c0_i32, %c0_i32_0 : i32, i32
  }
  func.func @transform_8(%arg0: i32) -> (i32, i32) {
    %c0_i32 = arith.constant 0 : i32
    %c0_i32_0 = arith.constant 0 : i32
    %c0_i32_1 = arith.constant 0 : i32
    return %c0_i32, %c0_i32_0 : i32, i32
  }
  func.func @transform_9(%arg0: i32) -> (i32, i32) {
    %c0_i32 = arith.constant 0 : i32
    %c0_i32_0 = arith.constant 0 : i32
    %c0_i32_1 = arith.constant 0 : i32
    return %c0_i32, %c0_i32_0 : i32, i32
  }
  func.func @transform_10(%arg0: i32) -> (i32, i32, i32) {
    %c0_i32 = arith.constant 0 : i32
    %c0_i32_0 = arith.constant 0 : i32
    %c0_i32_1 = arith.constant 0 : i32
    return %arg0, %c0_i32, %c0_i32_0 : i32, i32, i32
  }
}

</mosaic_0001>

<bundles_post_ra>
// kernel: tpu_custom_call.1
= control target key start
LH: loop header
LB: loop body
LE: loop exit
PB: predicated region body
PF: predicated region fallthrough
CT: control target
= control target key end

     0   :  { %15 = vsyncpa [#allocation6], 0  ;;  %s3582_s0 = inlined_call_operand.vmem [shape: f32[2,4,256], index: 0, kind: input, shape index: {}]   ;;  %s3583_s1 = inlined_call_operand.vmem [shape: f32[4,49], index: 1, kind: input, shape index: {}]   ;;  %s3584_s2 = inlined_call_operand.vmem [shape: f32[4,1], index: 2, kind: input, shape index: {}]   ;;  %s3585_s3 = inlined_call_operand.vmem [shape: f32[4,1], index: 3, kind: input, shape index: {}]   ;;  %s3586_s4 = inlined_call_operand.vmem [shape: f32[4,1], index: 4, kind: input, shape index: {}]   ;;  %s3587_s5 = inlined_call_operand.vmem [shape: f32[16,4], index: 5, kind: input, shape index: {}]   ;;  %s3588_s6 = inlined_call_operand.vmem [shape: f32[16,1], index: 6, kind: input, shape index: {}]   ;;  %s3589_s7 = inlined_call_operand.vmem [shape: f32[4,16], index: 7, kind: input, shape index: {}]   ;;  %s3590_s8 = inlined_call_operand.vmem [shape: f32[4,1], index: 8, kind: input, shape index: {}]   ;;  %s3591_s9 = inlined_call_operand.vmem [shape: f32[4,1], index: 9, kind: input, shape index: {}]   ;;  %s3592_s10 = inlined_call_operand.hbm [shape: f32[2,4,256], index: 10, kind: output, shape index: {}]  }
   0x1   :  { %17 = vsyncpa [#allocation6 + $0x1], 0  ;;  %s2857_s13 = smov 0   ;;  %s2859_s14 = smov 0  }
   0x2   :  { %s2861_s15 = smov 0   ;;  %s2863_s16 = smov 0  }
   0x3 LB: > { %s2878_s17 = sadd.s32 4294967295, %s2681_s16   ;;  %s2364_s18 = sadd.s32 4294967294, %s2681_s16   ;;  %s2681_s16 = sphi %s2863_s16, %s3600_s16   ;;  %s2677_s15 = sphi %s2861_s15, %s3599_s15   ;;  %s2673_s14 = sphi %s2859_s14, %s3598_s14   ;;  %s2669_s13 = sphi %s2857_s13, %s3597_s13  }
   0x4   : > { %s2882_s19 = sadd.s32 1, %s2681_s16   ;;  %s245_s20 = sadd.s32 1, %s2677_s15 }
   0x5   : > { %s242_s21 = ssub.s32 %s2681_s16, %s2882_s19  ;;  %p255_p0 = scmp.ne.s32.totalorder %s2677_s15, %s2673_s14 }
   0x6   : > { %p243_p1 = scmp.eq.s32.totalorder %s242_s21, 0  ;;  %p256_p2 = scmp.eq.s32.totalorder %s2878_s17, 1 }
   0x7   : > { %p261_p3 = scmp.ne.s32.totalorder %s2673_s14, %s2669_s13  ;;  %p262_p4 = scmp.eq.s32.totalorder %s2364_s18, 1 }
   0x8   : > { %s2893_s22 = scalar_select %p243_p1, %s2677_s15, %s245_s20  }
   0x9   : > { %p2895_p5 = por %p256_p2, %p255_p0  ;;  %p2899_p6 = por %p262_p4, %p261_p3 }
   0xa   : > { %p2367_p7 = scmp.ge.s32.totalorder %s2681_s16, 1  ;;  %p315_p8 = scmp.lt.s32.totalorder %s2681_s16, 3 }
   0xc   : > { %p316_p9 = pnand %p2367_p7, %p315_p8 }
   0xd   : > { %p353_p10 = scmp.lt.s32.totalorder (!%p316_p9), %s2878_s17, 1  ;;  %s2683_s30 = smov (!%p316_p9), 93  }
   0xe   : > { %319 = sbr.rel (%p316_p9) target bundleno = 1225 (0x4c9), region = 60  ;;  %s2684_s11 = smov (!%p316_p9), 81  }
   0xf   : > { %s2685_s12 = smov (!%p316_p9), 69   ;;  %s2688_s18 = smov (!%p316_p9), 99  }
  0x10   : > { %s2689_s20 = smov (!%p316_p9), 87   ;;  %s2690_s21 = smov (!%p316_p9), 75  }
  0x11   : > { %s2694_s27 = smov (!%p316_p9), 105   ;;  %s2695_s28 = smov (!%p316_p9), 7  }
  0x13   : > { %s354_s25 = scalar_select %p353_p10, %s2878_s17, 1  ;;  %v2686_v6 = vmov 2   ;;  %v2687_v7 = vmov 1   ;;  %v2691_v8 = vmov 3   ;;  %v2934_v18 = vld [vmem:[%s3583_s1] sm:$0xf] }
  0x14   : > { %2545 = vset.pattern.permute.xlu2 %v2686_v6  ;;  %2544 = vset.pattern.permute.xlu1 %v2687_v7  ;;  %v2702_v20 = vmov 5   ;;  %v2703_v21 = vmov 4   ;;  %v2704_v22 = vmov 8   ;;  %v2705_v23 = vmov 7  }
  0x15   : > { %s2384_s26 = sshll.u32 %s354_s25, 3  ;;  %2546 = vset.pattern.permute.xlu0 %v2691_v8  ;;  %s2692_s25 = smov 117   ;;  %v2706_v24 = vmov 6   ;;  %v2707_v25 = vmov 13   ;;  %v2708_v26 = vmov 10   ;;  %v2709_v27 = vmov 9  }
  0x16   : > { %s2910_s29 = scalar_lea.vmem %s3582_s0, %s2384_s26  ;;  %s2693_s26 = smov 111   ;;  %v2710_v28 = vmov 18   ;;  %v2711_v29 = vmov 12   ;;  %v2712_v30 = vmov 11   ;;  %v2713_v31 = vmov 0  }
  0x17   : > { %v425_v0 = vld [vmem:[%s2910_s29] sm:$0xf]  ;;  %v453_v9 = vld [vmem:[%s2910_s29 + $0x4] sm:$0xf]  ;;  %vm358_vm0 = vcmask 560128   ;;  %vm362_vm1 = vcmask 741032  }
  0x18   : > { %v406_v1 = vld [vmem:[%s2910_s29] sm:$0xf]  ;;  %427 = vrot.lane.b32.xlu2 %v425_v0, %s2683_s30  ;;  %v479_v12 = vld [vmem:[%s2910_s29 + $0x4] sm:$0xf]  ;;  %s2696_s30 = smov 1   ;;  %vm364_vm2 = vcmask 921432  }
  0x19   : > { %v392_v2 = vld [vmem:[%s2910_s29] sm:$0xf]  ;;  %408 = vrot.lane.b32.xlu1 %v406_v1, %s2684_s11  ;;  %v472_v13 = vld [vmem:[%s2910_s29 + $0x4] sm:$0xf]  ;;  %v2714_v32 = vmov 15   ;;  %v2715_v33 = vmov 14  }
  0x1a   : > { %394 = vrot.lane.b32.xlu0 %v392_v2, %s2685_s12  ;;  %v432_v3 = vld [vmem:[%s2910_s29] sm:$0xf]  ;;  %v465_v14 = vld [vmem:[%s2910_s29 + $0x4] sm:$0xf]  ;;  %s2697_s12 = smov 123   ;;  %v2716_v34 = vmov 0.0  }
  0x1b   : > { %v418_v4 = vld [vmem:[%s2910_s29] sm:$0xf]  ;;  %v493_v15 = vld [vmem:[%s2910_s29 + $0x4] sm:$0xf]  ;;  %359 = vst.msk [vmem:[#allocation2] sm:$0xf] %vm358_vm0, %v2716_v34 }
  0x1c   : > { %v399_v5 = vld [vmem:[%s2910_s29] sm:$0xf]  ;;  %v500_v16 = vld [vmem:[%s2910_s29 + $0x4] sm:$0xf]  ;;  %363 = vst.msk [vmem:[#allocation2] sm:$0xf] %vm362_vm1, %v2716_v34 }
  0x1d   : > { %v446_v10 = vld [vmem:[%s2910_s29] sm:$0xf]  ;;  %v486_v17 = vld [vmem:[%s2910_s29 + $0x4] sm:$0xf]  ;;  %365 = vst.msk [vmem:[#allocation2] sm:$0xf] %vm364_vm2, %v2716_v34 }
  0x1e   : > { %v439_v11 = vld [vmem:[%s2910_s29] sm:$0xf]  ;;  %v512_v19 = vld [vmem:[%s2910_s29 + $0x4] sm:$0xf]  ;;  %vm366_vm3 = vcmask 52232   ;;  %vm368_vm4 = vcmask 232632  }
  0x1f   : > { %367 = vst.msk [vmem:[#allocation2 + $0x4] sm:$0xf] %vm366_vm3, %v2716_v34  ;;  %vm370_vm5 = vcmask 413032   ;;  %vm372_vm6 = vcmask 593432   ;;  %vm374_vm7 = vcmask 773832   ;;  %vm376_vm8 = vcmask 954232  }
  0x20   : > { %434 = vrot.lane.b32.xlu2 %v432_v3, %s2688_s18  ;;  %s2698_s18 = smov 19   ;;  %369 = vst.msk [vmem:[#allocation2 + $0x4] sm:$0xf] %vm368_vm4, %v2716_v34  ;;  %v2717_v36 = vmov 17   ;;  %v2718_v37 = vmov 16   ;;  %vm378_vm9 = vcmask 85032  }
  0x21   : > { %420 = vrot.lane.b32.xlu1 %v418_v4, %s2689_s20  ;;  %s2699_s20 = smov 25   ;;  %371 = vst.msk [vmem:[#allocation2 + $0x4] sm:$0xf] %vm370_vm5, %v2716_v34  ;;  %vm380_vm10 = vcmask 265432   ;;  %vm382_vm11 = vcmask 445832   ;;  %vm384_vm12 = vcmask 626232  }
  0x22   : > { %401 = vrot.lane.b32.xlu0 %v399_v5, %s2690_s21  ;;  %s2700_s21 = smov 13   ;;  %373 = vst.msk [vmem:[#allocation2 + $0x4] sm:$0xf] %vm372_vm6, %v2716_v34  ;;  %vm386_vm13 = vcmask 806632   ;;  %vm388_vm14 = vcmask 987032   ;;  %v2719_v39 = vmov 20  }
  0x23   : > { %375 = vst.msk [vmem:[#allocation2 + $0x4] sm:$0xf] %vm374_vm7, %v2716_v34  ;;  %v2720_v40 = vmov 19   ;;  %v2721_v42 = vmov 22   ;;  %vm397_vm15 = vcmask 691752   ;;  %v2722_v43 = vmov 21  }
  0x24   : > { %377 = vst.msk [vmem:[#allocation2 + $0x4] sm:$0xf] %vm376_vm8, %v2716_v34  ;;  %vm360_vm0 = vcmask 1043704   ;;  %vm390_vm1 = vcmask 117832   ;;  %vm414_vm2 = vcmask 1044360   ;;  %vm415_vm3 = vcmask 7172  }
  0x25   : > { %379 = vst.msk [vmem:[#allocation2 + $0x8] sm:$0xf] %vm378_vm9, %v2716_v34  ;;  %vm411_vm4 = vcmask 662528   ;;  %vm404_vm5 = vcmask 872152   ;;  %vm416_vm6 = vmor %vm415_vm3, %vm414_vm2  ;;  %v2723_v49 = vmov 23   ;;  %vm423_vm7 = vcmask 183352  }
  0x26   : > { %381 = vst.msk [vmem:[#allocation2 + $0x8] sm:$0xf] %vm380_vm10, %v2716_v34  ;;  %vm430_vm8 = vcmask 363752   ;;  %vm437_vm9 = vcmask 544152   ;;  %vm458_vm10 = vcmask 957440   ;;  %v2725_v59 = vmov 24  }
  0x27   : > { %383 = vst.msk [vmem:[#allocation2 + $0x8] sm:$0xf] %vm382_vm11, %v2716_v34  ;;  %vm461_vm11 = vcmask 1044392   ;;  %v2724_v55 = vmov 839922192   ;;  %vm484_vm2 = vcmask 576952  }
  0x28   : > { %455 = vrot.lane.b32.xlu2 %v453_v9, %s2692_s25  ;;  %385 = vst.msk [vmem:[#allocation2 + $0x8] sm:$0xf] %vm384_vm12, %v2716_v34  ;;  %vm462_vm12 = vcmask 39940   ;;  %v527_v56 = vunpack.c.l.s4 %v2724_v55  ;;  %v2726_v2 = vmov 25   ;;  %s2727_s29 = smov 126   ;;  %vm508_vm3 = vcmask 1044424  }
  0x29   : > { %448 = vrot.lane.b32.xlu1 %v446_v10, %s2693_s26  ;;  %387 = vst.msk [vmem:[#allocation2 + $0x8] sm:$0xf] %vm386_vm13, %v2716_v34  ;;  %vm444_vm13 = vcmask 724552   ;;  %v2728_v8 = vmov 26   ;;  %s2734_s25 = smov 122   ;;  %s2736_s26 = smov 106  }
  0x2a   : > { %441 = vrot.lane.b32.xlu0 %v439_v11, %s2694_s27  ;;  %389 = vst.msk [vmem:[#allocation2 + $0x8] sm:$0xf] %vm388_vm14, %v2716_v34  ;;  %vm451_vm14 = vcmask 904952   ;;  %v2985_v60 = vunpack.c.0.s8 %v527_v56 }
  0x2b   : > { %361 = vst.msk [vmem:[#allocation2 + $0xc] sm:$0xf] %vm360_vm0, %v2716_v34  ;;  %vm470_vm0 = vcmask 216152  }
  0x2c   : > { %391 = vst.msk [vmem:[#allocation2 + $0xc] sm:$0xf] %vm390_vm1, %v2716_v34  ;;  %vm477_vm1 = vcmask 396552  }
  0x30   : > { %481 = vrot.lane.b32.xlu2 %v479_v12, %s2695_s28  ;;  %s2701_s28 = smov 31  }
  0x31   : > { %474 = vrot.lane.b32.xlu1 %v472_v13, %s2696_s30  ;;  %s2729_s30 = smov 127  }
  0x32   : > { %467 = vrot.lane.b32.xlu0 %v465_v14, %s2697_s12 }
  0x38   : > { %495 = vrot.lane.b32.xlu2 %v493_v15, %s2698_s18  ;;  %s2730_s18 = smov 125  }
  0x39   : > { %502 = vrot.lane.b32.xlu1 %v500_v16, %s2699_s20  ;;  %s2732_s20 = smov 124  }
  0x3a   : > { %488 = vrot.lane.b32.xlu0 %v486_v17, %s2700_s21 }
  0x40   : > { %562 = vperm.xlu2 %2545, %v2934_v18  }
  0x41   : > { %536 = vperm.xlu1 %2544, %v2934_v18  }
  0x42   : > { %514 = vrot.lane.b32.xlu0 %v512_v19, %s2701_s28  ;;  %s2739_s28 = smov 104  }
  0x48   : > { %2548 = vset.pattern.permute.xlu2 %v2702_v20 }
  0x49   : > { %2547 = vset.pattern.permute.xlu1 %v2703_v21  ;;  %637 = vperm.xlu2 %2548, %v2934_v18  }
  0x4a   : > { %587 = vperm.xlu0 %2546, %v2934_v18   ;;  %612 = vperm.xlu1 %2547, %v2934_v18  }
  0x51   : > { %2550 = vset.pattern.permute.xlu2 %v2705_v23 }
  0x52   : > { %2551 = vset.pattern.permute.xlu0 %v2704_v22  ;;  %2549 = vset.pattern.permute.xlu1 %v2706_v24 }
  0x53   : > { %712 = vperm.xlu0 %2551, %v2934_v18   ;;  %687 = vperm.xlu2 %2550, %v2934_v18  }
  0x54   : > { %662 = vperm.xlu1 %2549, %v2934_v18  }
  0x5b   : > { %2556 = vset.pattern.permute.xlu0 %v2707_v25  ;;  %2553 = vset.pattern.permute.xlu2 %v2708_v26  ;;  %v2731_v26 = vmov 27  }
  0x5c   : > { %2552 = vset.pattern.permute.xlu1 %v2709_v27  ;;  %837 = vperm.xlu0 %2556, %v2934_v18  }
  0x5d   : > { %762 = vperm.xlu2 %2553, %v2934_v18   ;;  %737 = vperm.xlu1 %2552, %v2934_v18  }
  0x64   : > { %2561 = vset.pattern.permute.xlu0 %v2710_v28 }
  0x65   : > { %2555 = vset.pattern.permute.xlu2 %v2711_v29  ;;  %2554 = vset.pattern.permute.xlu1 %v2712_v30 }
  0x66   : > { %967 = vperm.xlu0 %2561, %v2934_v18   ;;  %812 = vperm.xlu2 %2555, %v2934_v18  }
  0x67   : > { %787 = vperm.xlu1 %2554, %v2934_v18  }
  0x6e   : > { %2566 = vset.pattern.permute.xlu0 %v2713_v31  ;;  %2558 = vset.pattern.permute.xlu2 %v2714_v32  ;;  %v2733_v32 = vmov 28  }
  0x6f   : > { %2557 = vset.pattern.permute.xlu1 %v2715_v33  ;;  %524 = vperm.xlu0 %2566, %v2934_v18  }
  0x70   : > { %890 = vperm.xlu2 %2558, %v2934_v18   ;;  %864 = vperm.xlu1 %2557, %v2934_v18  }
  0x72   : > { %v2959_v35 = vpop.permute.xlu2 %427 }
  0x78   : > { %2560 = vset.pattern.permute.xlu2 %v2717_v36  ;;  %2559 = vset.pattern.permute.xlu1 %v2718_v37 }
  0x79   : > { %942 = vperm.xlu2 %2560, %v2934_v18   ;;  %916 = vperm.xlu1 %2559, %v2934_v18  }
  0x7a   : > { %v435_v38 = vpop.permute.xlu2 %434 }
  0x81   : > { %2563 = vset.pattern.permute.xlu2 %v2719_v39  ;;  %2562 = vset.pattern.permute.xlu1 %v2720_v40 }
  0x82   : > { %1019 = vperm.xlu2 %2563, %v2934_v18   ;;  %993 = vperm.xlu1 %2562, %v2934_v18   ;;  %v456_v41 = vpop.permute.xlu2 %455 }
  0x83   : > { %v457_v52 = vrot.slane %v456_v41, 4 }
  0x85   : > { %v459_v57 = vsel %vm458_vm10, %v457_v52, %v456_v41  ;;  %vm517_vm10 = vcmask 248952  }
  0x8a   : > { %2565 = vset.pattern.permute.xlu2 %v2721_v42  ;;  %2564 = vset.pattern.permute.xlu1 %v2722_v43  ;;  %v482_v46 = vpop.permute.xlu2 %481 }
  0x8b   : > { %1071 = vperm.xlu2 %2565, %v2934_v18   ;;  %v409_v44 = vpop.permute.xlu1 %408  ;;  %1045 = vperm.xlu1 %2564, %v2934_v18  }
  0x8c   : > { %v395_v45 = vpop.permute.xlu0 %394  ;;  %v410_v47 = vrot.slane %v409_v44, 4 }
  0x8d   : > { %398 = vst.msk [vmem:[#allocation2] sm:$0xf] %vm397_vm15, %v395_v45  ;;  %vm463_vm15 = vmor %vm462_vm12, %vm461_vm11  ;;  %v2737_v45 = vmov 30   ;;  %vm553_vm11 = vcmask 1043456   ;;  %vm580_vm12 = vcmask 1031168  }
  0x8e   : > { %v412_v51 = vsel %vm411_vm4, %v410_v47, %v409_v44 }
  0x92   : > { %v496_v53 = vpop.permute.xlu2 %495 }
  0x93   : > { %v421_v48 = vpop.permute.xlu1 %420  ;;  %2594 = vset.pattern.permute.xlu2 %v2713_v31  ;;  %2567 = vset.pattern.permute.xlu1 %v2723_v49 }
  0x94   : > { %v402_v50 = vpop.permute.xlu0 %401  ;;  %1097 = vperm.xlu1 %2567, %v2934_v18  }
  0x95   : > { %405 = vst.msk [vmem:[#allocation2] sm:$0xf] %vm404_vm5, %v402_v50  ;;  %vm509_vm5 = vcmask 72708  }
  0x96   : > { %417 = vst.msk [vmem:[#allocation2] sm:$0xff] %vm416_vm6, %v412_v51  ;;  %vm491_vm6 = vcmask 757352   ;;  %v2738_v51 = vmov 31  }
  0x97   : > { %424 = vst.msk [vmem:[#allocation2 + $0x4] sm:$0xf] %vm423_vm7, %v421_v48  ;;  %vm505_vm7 = vcmask 203776  }
  0x98   : > { %431 = vst.msk [vmem:[#allocation2 + $0x4] sm:$0xf] %vm430_vm8, %v2959_v35  ;;  %vm498_vm8 = vcmask 937752  }
  0x99   : > { %438 = vst.msk [vmem:[#allocation2 + $0x4] sm:$0xf] %vm437_vm9, %v435_v38  ;;  %vm510_vm9 = vmor %vm509_vm5, %vm508_vm3  ;;  %v2735_v38 = vmov 29   ;;  %vm730_vm3 = vcmask 859136   ;;  %vm755_vm5 = vcmask 850944  }
  0x9a   : > { %v563_v61 = vpop.permute.xlu2 %562 }
  0x9b   : > { %v449_v54 = vpop.permute.xlu1 %448  ;;  %v567_v62 = vperm.slane %v563_v61, %v2985_v60 }
  0x9c   : > { %v442_v58 = vpop.permute.xlu0 %441  ;;  %2568 = vset.pattern.permute.xlu1 %v2725_v59 }
  0x9d   : > { %445 = vst.msk [vmem:[#allocation2 + $0x4] sm:$0xf] %vm444_vm13, %v442_v58  ;;  %1123 = vperm.xlu1 %2568, %v2934_v18   ;;  %vm555_vm13 = vcmask 1039360  }
  0x9e   : > { %452 = vst.msk [vmem:[#allocation2 + $0x4] sm:$0xf] %vm451_vm14, %v449_v54  ;;  %vm605_vm14 = vcmask 1022976  }
  0x9f   : > { %464 = vst.msk [vmem:[#allocation2 + $0x4] sm:$0xff] %vm463_vm15, %v459_v57  ;;  %v2740_v57 = vmov 32   ;;  %vm630_vm15 = vcmask 1014784  }
  0xa3   : > { %v475_v63 = vpop.permute.xlu1 %474  ;;  %v638_v22 = vpop.permute.xlu2 %637 }
  0xa4   : > { %v468_v0 = vpop.permute.xlu0 %467  ;;  %v642_v27 = vperm.slane %v638_v22, %v2985_v60 }
  0xa5   : > { %471 = vst.msk [vmem:[#allocation2 + $0x8] sm:$0xf] %vm470_vm0, %v468_v0  ;;  %2569 = vset.pattern.permute.xlu1 %v2726_v2  ;;  %v2742_v0 = vmov 33   ;;  %vm655_vm0 = vcmask 1006592  }
  0xa6   : > { %v2988_v1 = vld [vmem:[#allocation2] sm:$0xff]  ;;  %478 = vst.msk [vmem:[#allocation2 + $0x8] sm:$0xf] %vm477_vm1, %v475_v63  ;;  %1149 = vperm.xlu1 %2569, %v2934_v18   ;;  %vm680_vm1 = vcmask 998400  }
  0xa7   : > { %v569_v3 = vmul.f32 %v567_v62, %v2988_v1  ;;  %485 = vst.msk [vmem:[#allocation2 + $0x8] sm:$0xf] %vm484_vm2, %v482_v46  ;;  %v644_v28 = vmul.f32 %v642_v27, %v2988_v1  ;;  %vm705_vm2 = vcmask 867328  }
  0xa9   : > { %573 = vrot.lane.b32.xlu2 %v569_v3, %s2727_s29 }
  0xab   : > { %v503_v4 = vpop.permute.xlu1 %502 }
  0xac   : > { %v504_v5 = vrot.slane %v503_v4, 4  ;;  %v489_v6 = vpop.permute.xlu0 %488 }
  0xad   : > { %492 = vst.msk [vmem:[#allocation2 + $0x8] sm:$0xf] %vm491_vm6, %v489_v6  ;;  %v688_v29 = vpop.permute.xlu2 %687  ;;  %vm780_vm6 = vcmask 842752  }
  0xae   : > { %v506_v7 = vsel %vm505_vm7, %v504_v5, %v503_v4  ;;  %499 = vst.msk [vmem:[#allocation2 + $0x8] sm:$0xf] %vm498_vm8, %v496_v53  ;;  %2570 = vset.pattern.permute.xlu1 %v2728_v8  ;;  %v692_v40 = vperm.slane %v688_v29, %v2985_v60  ;;  %v2744_v8 = vmov 34   ;;  %vm805_vm7 = vcmask 834560  }
  0xaf   : > { %511 = vst.msk [vmem:[#allocation2 + $0x8] sm:$0xff] %vm510_vm9, %v506_v7  ;;  %vm830_vm8 = vcmask 826368   ;;  %vm855_vm9 = vcmask 818176  }
  0xb0   : > { %v694_v48 = vmul.f32 %v692_v40, %v2988_v1 }
  0xb3   : > { %v537_v9 = vpop.permute.xlu1 %536 }
  0xb4   : > { %v541_v10 = vperm.slane %v537_v9, %v2985_v60  ;;  %v515_v11 = vpop.permute.xlu0 %514 }
  0xb5   : > { %518 = vst.msk [vmem:[#allocation2 + $0xc] sm:$0xf] %vm517_vm10, %v515_v11  ;;  %vm882_vm10 = vcmask 687104  }
  0xb6   : > { %v2993_v12 = vld [vmem:[#allocation2 + $0x8] sm:$0xf]  ;;  %v543_v13 = vmul.f32 %v541_v10, %v2988_v1 }
  0xb7   : > { %v570_v14 = vmul.f32 %v567_v62, %v2993_v12  ;;  %v645_v30 = vmul.f32 %v642_v27, %v2993_v12  ;;  %v544_v35 = vmul.f32 %v541_v10, %v2993_v12  ;;  %v763_v37 = vpop.permute.xlu2 %762  ;;  %v695_v42 = vmul.f32 %v692_v40, %v2993_v12 }
  0xb8   : > { %547 = vrot.lane.b32.xlu1 %v543_v13, %s2729_s30  ;;  %v767_v56 = vperm.slane %v763_v37, %v2985_v60 }
  0xb9   : > { %575 = vrot.lane.b32.xlu0 %v570_v14, %s2727_s29  ;;  %s2743_s29 = smov 102  }
  0xba   : > { %v770_v61 = vmul.f32 %v767_v56, %v2993_v12  ;;  %v769_v2 = vmul.f32 %v767_v56, %v2988_v1 }
  0xbc   : > { %v588_v15 = vpop.permute.xlu0 %587  ;;  %v613_v17 = vpop.permute.xlu1 %612 }
  0xbd   : > { %v592_v16 = vperm.slane %v588_v15, %v2985_v60  ;;  %v617_v21 = vperm.slane %v613_v17, %v2985_v60  ;;  %v2746_v17 = vmov 35  }
  0xbf   : > { %v594_v19 = vmul.f32 %v592_v16, %v2988_v1  ;;  %v595_v20 = vmul.f32 %v592_v16, %v2993_v12  ;;  %v619_v23 = vmul.f32 %v617_v21, %v2988_v1  ;;  %v620_v24 = vmul.f32 %v617_v21, %v2993_v12  ;;  %v3069_v21 = vld [vmem:[#allocation2 + $0x8] sm:$0xff] }
  0xc0   : > { %1175 = vperm.xlu1 %2570, %v2934_v18   ;;  %v813_v44 = vpop.permute.xlu2 %812 }
  0xc1   : > { %598 = vrot.lane.b32.xlu2 %v594_v19, %s2730_s18  ;;  %600 = vrot.lane.b32.xlu0 %v595_v20, %s2730_s18  ;;  %v817_v5 = vperm.slane %v813_v44, %v2985_v60  ;;  %s2747_s18 = smov 100  }
  0xc3   : > { %v820_v9 = vmul.f32 %v817_v5, %v2993_v12  ;;  %v819_v15 = vmul.f32 %v817_v5, %v2988_v1 }
  0xc5   : > { %v713_v43 = vpop.permute.xlu0 %712 }
  0xc6   : > { %v663_v25 = vpop.permute.xlu1 %662  ;;  %v717_v46 = vperm.slane %v713_v43, %v2985_v60 }
  0xc7   : > { %v667_v34 = vperm.slane %v663_v25, %v2985_v60 }
  0xc8   : > { %2571 = vset.pattern.permute.xlu1 %v2731_v26  ;;  %v720_v49 = vmul.f32 %v717_v46, %v2993_v12  ;;  %v719_v53 = vmul.f32 %v717_v46, %v2988_v1  ;;  %v2748_v26 = vmov 36  }
  0xc9   : > { %623 = vrot.lane.b32.xlu2 %v619_v23, %s2732_s20  ;;  %1201 = vperm.xlu1 %2571, %v2934_v18   ;;  %v670_v36 = vmul.f32 %v667_v34, %v2993_v12  ;;  %v669_v41 = vmul.f32 %v667_v34, %v2988_v1 }
  0xca   : > { %625 = vrot.lane.b32.xlu0 %v620_v24, %s2732_s20  ;;  %v3030_v52 = vpop.permute.xlu2 %890 }
  0xce   : > { %v838_v10 = vpop.permute.xlu0 %837 }
  0xcf   : > { %v738_v33 = vpop.permute.xlu1 %737  ;;  %v842_v13 = vperm.slane %v838_v10, %v2985_v60 }
  0xd0   : > { %v742_v50 = vperm.slane %v738_v33, %v2985_v60  ;;  %v2751_v33 = vmov 37  }
  0xd1   : > { %648 = vrot.lane.b32.xlu2 %v644_v28, %s2697_s12  ;;  %2572 = vset.pattern.permute.xlu1 %v2733_v32  ;;  %v845_v16 = vmul.f32 %v842_v13, %v2993_v12  ;;  %v844_v22 = vmul.f32 %v842_v13, %v2988_v1  ;;  %v895_v28 = vperm.slane %v3030_v52, %v2985_v60 }
  0xd2   : > { %650 = vrot.lane.b32.xlu0 %v645_v30, %s2697_s12  ;;  %1227 = vperm.xlu1 %2572, %v2934_v18   ;;  %v745_v54 = vmul.f32 %v742_v50, %v2993_v12  ;;  %v744_v58 = vmul.f32 %v742_v50, %v2988_v1 }
  0xd3   : > { %v3042_v59 = vpop.permute.xlu2 %942  ;;  %v898_v30 = vmul.f32 %v895_v28, %v3069_v21  ;;  %v897_v37 = vmul.f32 %v895_v28, %v2988_v1 }
  0xd4   : > { %v947_v43 = vperm.slane %v3042_v59, %v2985_v60 }
  0xd6   : > { %v950_v50 = vmul.f32 %v947_v43, %v3069_v21  ;;  %v949_v5 = vmul.f32 %v947_v43, %v2988_v1  ;;  %v2758_v43 = vmov 41  }
  0xd8   : > { %v968_v25 = vpop.permute.xlu0 %967 }
  0xd9   : > { %549 = vrot.lane.b32.xlu2 %v544_v35, %s2729_s30  ;;  %v788_v39 = vpop.permute.xlu1 %787  ;;  %s2745_s30 = smov 101  }
  0xda   : > { %675 = vrot.lane.b32.xlu0 %v670_v36, %s2734_s25  ;;  %2573 = vset.pattern.permute.xlu1 %v2735_v38  ;;  %v792_v63 = vperm.slane %v788_v39, %v2985_v60 }
  0xdb   : > { %1253 = vperm.xlu1 %2573, %v2934_v18  }
  0xdc   : > { %v795_v3 = vmul.f32 %v792_v63, %v2993_v12  ;;  %v3052_v4 = vpop.permute.xlu2 %1019  ;;  %v794_v7 = vmul.f32 %v792_v63, %v2988_v1  ;;  %v2754_v63 = vmov 39  }
  0xe1   : > { %673 = vrot.lane.b32.xlu2 %v669_v41, %s2734_s25  ;;  %v525_v34 = vpop.permute.xlu0 %524  ;;  %v2753_v41 = vmov 38  }
  0xe2   : > { %700 = vrot.lane.b32.xlu0 %v695_v42, %s2736_s26  ;;  %v865_v47 = vpop.permute.xlu1 %864  ;;  %v529_v46 = vperm.slane %v525_v34, %v2985_v60 }
  0xe3   : > { %2574 = vset.pattern.permute.xlu1 %v2737_v45  ;;  %v869_v20 = vperm.slane %v865_v47, %v2985_v60 }
  0xe4   : > { %1279 = vperm.xlu1 %2574, %v2934_v18  }
  0xe5   : > { %v3060_v11 = vpop.permute.xlu2 %1071  ;;  %v872_v23 = vmul.f32 %v869_v20, %v3069_v21  ;;  %v871_v29 = vmul.f32 %v869_v20, %v2988_v1 }
  0xe9   : > { %698 = vrot.lane.b32.xlu2 %v694_v48, %s2736_s26  ;;  %s2749_s26 = smov 84  }
  0xea   : > { %725 = vrot.lane.b32.xlu0 %v720_v49, %s2694_s27 }
  0xeb   : > { %v3035_v55 = vpop.permute.xlu1 %916 }
  0xec   : > { %2575 = vset.pattern.permute.xlu1 %v2738_v51  ;;  %v921_v36 = vperm.slane %v3035_v55, %v2985_v60  ;;  %v532_v51 = vmul.f32 %v529_v46, %v2993_v12  ;;  %v531_v12 = vmul.f32 %v529_v46, %v2988_v1 }
  0xed   : > { %1305 = vperm.xlu1 %2575, %v2934_v18  }
  0xee   : > { %v924_v38 = vmul.f32 %v921_v36, %v3069_v21  ;;  %v923_v48 = vmul.f32 %v921_v36, %v2988_v1  ;;  %v1024_v36 = vperm.slane %v3052_v4, %v2985_v60 }
  0xf1   : > { %723 = vrot.lane.b32.xlu2 %v719_v53, %s2694_s27  ;;  %s2741_s27 = smov 103   ;;  %v972_v53 = vperm.slane %v968_v25, %v2985_v60 }
  0xf2   : > { %750 = vrot.lane.b32.xlu0 %v745_v54, %s2739_s28 }
  0xf3   : > { %v974_v28 = vmul.f32 %v972_v53, %v2988_v1 }
  0xf4   : > { %v3046_v62 = vpop.permute.xlu1 %993 }
  0xf5   : > { %2576 = vset.pattern.permute.xlu1 %v2740_v57 }
  0xf6   : > { %1331 = vperm.xlu1 %2576, %v2934_v18  }
  0xf9   : > { %748 = vrot.lane.b32.xlu2 %v744_v58, %s2739_s28 }
  0xfa   : > { %775 = vrot.lane.b32.xlu0 %v770_v61, %s2741_s27 }
  0xfd   : > { %v3055_v6 = vpop.permute.xlu1 %1045 }
  0xfe   : > { %2577 = vset.pattern.permute.xlu1 %v2742_v0 }
  0xff   : > { %1357 = vperm.xlu1 %2577, %v2934_v18  }
 0x101   : > { %773 = vrot.lane.b32.xlu2 %v769_v2, %s2741_s27  ;;  %s2750_s27 = smov 83  }
 0x102   : > { %800 = vrot.lane.b32.xlu0 %v795_v3, %s2743_s29 }
 0x103   : > { %v574_v19 = vpop.permute.xlu2 %573 }
 0x104   : > { %v577_v44 = vrot.slane %v574_v19, 4 }
 0x106   : > { %v3063_v14 = vpop.permute.xlu1 %1097 }
 0x107   : > { %2578 = vset.pattern.permute.xlu1 %v2744_v8 }
 0x108   : > { %1383 = vperm.xlu1 %2578, %v2934_v18  }
 0x109   : > { %798 = vrot.lane.b32.xlu2 %v794_v7, %s2743_s29  ;;  %s2752_s29 = smov 82  }
 0x10a   : > { %825 = vrot.lane.b32.xlu0 %v820_v9, %s2745_s30  ;;  %v975_v9 = vmul.f32 %v972_v53, %v3069_v21 }
 0x10f   : > { %v3073_v24 = vpop.permute.xlu1 %1123 }
 0x110   : > { %2579 = vset.pattern.permute.xlu1 %v2746_v17 }
 0x111   : > { %823 = vrot.lane.b32.xlu2 %v819_v15, %s2745_s30  ;;  %1409 = vperm.xlu1 %2579, %v2934_v18   ;;  %s2755_s30 = smov 80  }
 0x112   : > { %850 = vrot.lane.b32.xlu0 %v845_v16, %s2747_s18 }
 0x118   : > { %v3080_v32 = vpop.permute.xlu1 %1149 }
 0x119   : > { %848 = vrot.lane.b32.xlu2 %v844_v22, %s2747_s18  ;;  %2580 = vset.pattern.permute.xlu1 %v2748_v26  ;;  %s2759_s18 = smov 78  }
 0x11a   : > { %877 = vrot.lane.b32.xlu0 %v872_v23, %s2749_s26  ;;  %1435 = vperm.xlu1 %2580, %v2934_v18  }
 0x11b   : > { %v599_v27 = vpop.permute.xlu2 %598 }
 0x11c   : > { %v602_v54 = vrot.slane %v599_v27, 4 }
 0x121   : > { %875 = vrot.lane.b32.xlu2 %v871_v29, %s2749_s26  ;;  %s2761_s26 = smov 62  }
 0x122   : > { %903 = vrot.lane.b32.xlu0 %v898_v30, %s2750_s27  ;;  %2581 = vset.pattern.permute.xlu1 %v2751_v33 }
 0x123   : > { %v3082_v35 = vpop.permute.xlu2 %623  ;;  %1461 = vperm.xlu1 %2581, %v2934_v18  }
 0x124   : > { %v627_v23 = vrot.slane %v3082_v35, 4 }
 0x129   : > { %901 = vrot.lane.b32.xlu2 %v897_v37, %s2750_s27  ;;  %s2763_s27 = smov 61  }
 0x12a   : > { %929 = vrot.lane.b32.xlu0 %v924_v38, %s2752_s29  ;;  %v548_v39 = vpop.permute.xlu1 %547 }
 0x12b   : > { %v3089_v40 = vpop.permute.xlu2 %648  ;;  %2582 = vset.pattern.permute.xlu1 %v2753_v41  ;;  %v576_v42 = vpop.permute.xlu0 %575  ;;  %v551_v57 = vrot.slane %v548_v39, 4 }
 0x12c   : > { %v578_v45 = vrot.slane %v576_v42, 4  ;;  %1487 = vperm.xlu1 %2582, %v2934_v18  }
 0x12e   : > { %v579_v47 = vsel %vm553_vm11, %v577_v44, %v578_v45  ;;  %v1027_v45 = vmul.f32 %v1024_v36, %v3069_v21 }
 0x12f   : > { %v581_v49 = vsel %vm580_vm12, %v574_v19, %v579_v47  ;;  %v998_v19 = vperm.slane %v3046_v62, %v2985_v60  ;;  %vm908_vm12 = vcmask 678912  }
 0x131   : > { %927 = vrot.lane.b32.xlu2 %v923_v48, %s2752_s29  ;;  %v1001_v30 = vmul.f32 %v998_v19, %v3069_v21  ;;  %v1050_v48 = vperm.slane %v3055_v6, %v2985_v60  ;;  %s2765_s29 = smov 60  }
 0x132   : > { %955 = vrot.lane.b32.xlu0 %v950_v50, %s2684_s11  ;;  %v3100_v52 = vpop.permute.xlu1 %1175 }
 0x133   : > { %v550_v55 = vpop.permute.xlu2 %549  ;;  %v601_v56 = vpop.permute.xlu0 %600 }
 0x134   : > { %v552_v58 = vrot.slane %v550_v55, 4  ;;  %v560_v59 = vadd.f32 %v550_v55, %v532_v51  ;;  %v603_v61 = vrot.slane %v601_v56, 4  ;;  %2583 = vset.pattern.permute.xlu1 %v2754_v63  ;;  %v1026_v55 = vmul.f32 %v1024_v36, %v2988_v1 }
 0x135   : > { %1513 = vperm.xlu1 %2583, %v2934_v18  }
 0x136   : > { %v554_v0 = vsel %vm553_vm11, %v551_v57, %v552_v58  ;;  %v585_v2 = vadd.f32 %v576_v42, %v560_v59  ;;  %v604_v3 = vsel %vm553_vm11, %v602_v54, %v603_v61  ;;  %v1053_v57 = vmul.f32 %v1050_v48, %v3069_v21 }
 0x137   : > { %v556_v7 = vsel %vm555_vm13, %v548_v39, %v554_v0  ;;  %v606_v8 = vsel %vm605_vm14, %v599_v27, %v604_v3  ;;  %v2756_v27 = vmov 40   ;;  %v652_v39 = vrot.slane %v3089_v40, 4 }
 0x138   : > { %v559_v10 = vadd.f32 %v556_v7, %v531_v12  ;;  %v610_v13 = vadd.f32 %v601_v56, %v585_v2  ;;  %v1076_v61 = vperm.slane %v3060_v11, %v2985_v60  ;;  %vm934_vm13 = vcmask 670720  }
 0x139   : > { %953 = vrot.lane.b32.xlu2 %v949_v5, %s2684_s11  ;;  %s2757_s11 = smov 79   ;;  %v1052_v5 = vmul.f32 %v1050_v48, %v2988_v1  ;;  %vm985_vm14 = vcmask 654336  }
 0x13a   : > { %v584_v15 = vadd.f32 %v581_v49, %v559_v10  ;;  %980 = vrot.lane.b32.xlu0 %v975_v9, %s2755_s30  ;;  %v2762_v10 = vmov 43  }
 0x13b   : > { %v674_v16 = vpop.permute.xlu2 %673  ;;  %v3112_v17 = vpop.permute.xlu1 %1201 }
 0x13c   : > { %v609_v20 = vadd.f32 %v606_v8, %v584_v15  ;;  %v626_v22 = vpop.permute.xlu0 %625  ;;  %v677_v50 = vrot.slane %v674_v16, 4  ;;  %v1079_v8 = vmul.f32 %v1076_v61, %v3069_v21  ;;  %v1102_v15 = vperm.slane %v3063_v14, %v2985_v60 }
 0x13d   : > { %v628_v25 = vrot.slane %v626_v22, 4  ;;  %v635_v26 = vadd.f32 %v626_v22, %v610_v13  ;;  %2584 = vset.pattern.permute.xlu1 %v2756_v27 }
 0x13e   : > { %1539 = vperm.xlu1 %2584, %v2934_v18   ;;  %v1105_v27 = vmul.f32 %v1102_v15, %v3069_v21 }
 0x13f   : > { %v629_v29 = vsel %vm553_vm11, %v627_v23, %v628_v25  ;;  %v1078_v23 = vmul.f32 %v1076_v61, %v2988_v1 }
 0x140   : > { %v631_v62 = vsel %vm630_vm15, %v3082_v35, %v629_v29  ;;  %v1000_v35 = vmul.f32 %v998_v19, %v2988_v1  ;;  %v2764_v29 = vmov 44  }
 0x141   : > { %978 = vrot.lane.b32.xlu2 %v974_v28, %s2755_s30  ;;  %v634_v33 = vadd.f32 %v631_v62, %v609_v20  ;;  %v1128_v62 = vperm.slane %v3073_v24, %v2985_v60 }
 0x142   : > { %1006 = vrot.lane.b32.xlu0 %v1001_v30, %s2757_s11 }
 0x143   : > { %v699_v34 = vpop.permute.xlu2 %698 }
 0x144   : > { %v651_v37 = vpop.permute.xlu0 %650  ;;  %v3126_v38 = vpop.permute.xlu1 %1227  ;;  %v702_v12 = vrot.slane %v699_v34, 4 }
 0x145   : > { %v653_v41 = vrot.slane %v651_v37, 4  ;;  %v660_v42 = vadd.f32 %v651_v37, %v635_v26 }
 0x146   : > { %2585 = vset.pattern.permute.xlu1 %v2758_v43 }
 0x147   : > { %v654_v44 = vsel %vm553_vm11, %v652_v39, %v653_v41  ;;  %1565 = vperm.xlu1 %2585, %v2934_v18   ;;  %v1104_v39 = vmul.f32 %v1102_v15, %v2988_v1 }
 0x148   : > { %v656_v4 = vsel %vm655_vm0, %v3089_v40, %v654_v44  ;;  %v2760_v40 = vmov 42  }
 0x149   : > { %1004 = vrot.lane.b32.xlu2 %v1000_v35, %s2757_s11  ;;  %v659_v46 = vadd.f32 %v656_v4, %v634_v33  ;;  %s2766_s11 = smov 59   ;;  %v1154_v4 = vperm.slane %v3080_v32, %v2985_v60  ;;  %v2769_v32 = vmov 46  }
 0x14a   : > { %1032 = vrot.lane.b32.xlu0 %v1027_v45, %s2759_s18  ;;  %v2767_v45 = vmov 45  }
 0x14b   : > { %v724_v47 = vpop.permute.xlu2 %723 }
 0x14c   : > { %v676_v49 = vpop.permute.xlu0 %675  ;;  %v727_v19 = vrot.slane %v724_v47, 4 }
 0x14d   : > { %v678_v51 = vrot.slane %v676_v49, 4  ;;  %v685_v53 = vadd.f32 %v676_v49, %v660_v42  ;;  %v3137_v54 = vpop.permute.xlu1 %1253  ;;  %v1131_v42 = vmul.f32 %v1128_v62, %v3069_v21 }
 0x14f   : > { %v679_v56 = vsel %vm553_vm11, %v677_v50, %v678_v51  ;;  %2586 = vset.pattern.permute.xlu1 %v2760_v40  ;;  %v1130_v50 = vmul.f32 %v1128_v62, %v2988_v1 }
 0x150   : > { %v681_v58 = vsel %vm680_vm1, %v674_v16, %v679_v56  ;;  %1593 = vperm.xlu1 %2586, %v2934_v18  }
 0x151   : > { %1030 = vrot.lane.b32.xlu2 %v1026_v55, %s2759_s18  ;;  %v684_v6 = vadd.f32 %v681_v58, %v659_v46  ;;  %s2768_s18 = smov 58  }
 0x152   : > { %1058 = vrot.lane.b32.xlu0 %v1053_v57, %s2761_s26  ;;  %v1180_v57 = vperm.slane %v3100_v52, %v2985_v60 }
 0x153   : > { %v749_v59 = vpop.permute.xlu2 %748 }
 0x154   : > { %v701_v63 = vpop.permute.xlu0 %700 }
 0x155   : > { %v703_v0 = vrot.slane %v701_v63, 4  ;;  %v710_v2 = vadd.f32 %v701_v63, %v685_v53  ;;  %v1157_v53 = vmul.f32 %v1154_v4, %v3069_v21 }
 0x156   : > { %v3147_v3 = vpop.permute.xlu1 %1279 }
 0x157   : > { %v704_v7 = vsel %vm553_vm11, %v702_v12, %v703_v0  ;;  %v1156_v12 = vmul.f32 %v1154_v4, %v2988_v1 }
 0x158   : > { %v706_v9 = vsel %vm705_vm2, %v699_v34, %v704_v7  ;;  %2587 = vset.pattern.permute.xlu1 %v2762_v10  ;;  %v752_v34 = vrot.slane %v749_v59, 4  ;;  %vm1037_vm2 = vcmask 637952  }
 0x159   : > { %1056 = vrot.lane.b32.xlu2 %v1052_v5, %s2761_s26  ;;  %1617 = vperm.xlu1 %2587, %v2934_v18   ;;  %v709_v11 = vadd.f32 %v706_v9, %v684_v6  ;;  %v2617_v6 = vld [vmem:[%s3583_s1] sm:$0xf]  ;;  %v1206_v9 = vperm.slane %v3112_v17, %v2985_v60 }
 0x15a   : > { %1084 = vrot.lane.b32.xlu0 %v1079_v8, %s2763_s27 }
 0x15b   : > { %v774_v13 = vpop.permute.xlu2 %773 }
 0x15c   : > { %v726_v16 = vpop.permute.xlu0 %725 }
 0x15d   : > { %v728_v20 = vrot.slane %v726_v16, 4  ;;  %v735_v22 = vadd.f32 %v726_v16, %v710_v2  ;;  %v1183_v2 = vmul.f32 %v1180_v57, %v3069_v21 }
 0x15f   : > { %v729_v25 = vsel %vm553_vm11, %v727_v19, %v728_v20  ;;  %v3158_v26 = vpop.permute.xlu1 %1305  ;;  %v1182_v19 = vmul.f32 %v1180_v57, %v2988_v1 }
 0x160   : > { %v731_v28 = vsel %vm730_vm3, %v724_v47, %v729_v25  ;;  %v777_v47 = vrot.slane %v774_v13, 4  ;;  %vm1063_vm3 = vcmask 506880  }
 0x161   : > { %1082 = vrot.lane.b32.xlu2 %v1078_v23, %s2763_s27  ;;  %2588 = vset.pattern.permute.xlu1 %v2764_v29  ;;  %v734_v30 = vadd.f32 %v731_v28, %v709_v11  ;;  %v2771_v11 = vmov 47   ;;  %v1258_v28 = vperm.slane %v3137_v54, %v2985_v60  ;;  %s2774_s27 = smov 39  }
 0x162   : > { %1110 = vrot.lane.b32.xlu0 %v1105_v27, %s2765_s29  ;;  %1641 = vperm.xlu1 %2588, %v2934_v18  }
 0x163   : > { %v799_v14 = vpop.permute.xlu2 %798 }
 0x164   : > { %v751_v33 = vpop.permute.xlu0 %750 }
 0x165   : > { %v753_v36 = vrot.slane %v751_v33, 4  ;;  %v760_v37 = vadd.f32 %v751_v33, %v735_v22  ;;  %v1209_v22 = vmul.f32 %v1206_v9, %v3069_v21  ;;  %v2773_v33 = vmov 48  }
 0x167   : > { %v754_v41 = vsel %vm553_vm11, %v752_v34, %v753_v36  ;;  %v1208_v34 = vmul.f32 %v1206_v9, %v2988_v1 }
 0x168   : > { %v756_v43 = vsel %vm755_vm5, %v749_v59, %v754_v41  ;;  %v3167_v35 = vpop.permute.xlu1 %1331  ;;  %v802_v59 = vrot.slane %v799_v14, 4  ;;  %vm1089_vm5 = vcmask 498688  }
 0x169   : > { %1108 = vrot.lane.b32.xlu2 %v1104_v39, %s2765_s29  ;;  %v759_v44 = vadd.f32 %v756_v43, %v734_v30  ;;  %v1260_v39 = vmul.f32 %v1258_v28, %v2988_v1  ;;  %s2775_s29 = smov 40  }
 0x16a   : > { %1136 = vrot.lane.b32.xlu0 %v1131_v42, %s2766_s11  ;;  %2589 = vset.pattern.permute.xlu1 %v2767_v45 }
 0x16b   : > { %v824_v24 = vpop.permute.xlu2 %823  ;;  %1665 = vperm.xlu1 %2589, %v2934_v18  }
 0x16c   : > { %v776_v46 = vpop.permute.xlu0 %775 }
 0x16d   : > { %v778_v48 = vrot.slane %v776_v46, 4  ;;  %v785_v49 = vadd.f32 %v776_v46, %v760_v37  ;;  %v1232_v37 = vperm.slane %v3126_v38, %v2985_v60 }
 0x16f   : > { %v779_v51 = vsel %vm553_vm11, %v777_v47, %v778_v48  ;;  %v1234_v43 = vmul.f32 %v1232_v37, %v2988_v1  ;;  %v1235_v46 = vmul.f32 %v1232_v37, %v3069_v21 }
 0x170   : > { %v781_v55 = vsel %vm780_vm6, %v774_v13, %v779_v51  ;;  %v827_v13 = vrot.slane %v824_v24, 4  ;;  %vm1115_vm6 = vcmask 490496  }
 0x171   : > { %1134 = vrot.lane.b32.xlu2 %v1130_v50, %s2766_s11  ;;  %v3175_v56 = vpop.permute.xlu1 %1357  ;;  %v784_v40 = vadd.f32 %v781_v55, %v759_v44  ;;  %s2770_s11 = smov 57   ;;  %v1284_v44 = vperm.slane %v3147_v3, %v2985_v60  ;;  %v1261_v55 = vmul.f32 %v1258_v28, %v3069_v21 }
 0x172   : > { %1162 = vrot.lane.b32.xlu0 %v1157_v53, %s2768_s18 }
 0x173   : > { %v849_v18 = vpop.permute.xlu2 %848  ;;  %2590 = vset.pattern.permute.xlu1 %v2769_v32 }
 0x174   : > { %v801_v58 = vpop.permute.xlu0 %800  ;;  %1690 = vperm.xlu1 %2590, %v2617_v6   ;;  %v852_v30 = vrot.slane %v849_v18, 4 }
 0x175   : > { %v803_v61 = vrot.slane %v801_v58, 4  ;;  %v810_v63 = vadd.f32 %v801_v58, %v785_v49  ;;  %v1287_v49 = vmul.f32 %v1284_v44, %v3069_v21  ;;  %v1286_v58 = vmul.f32 %v1284_v44, %v2988_v1 }
 0x177   : > { %v804_v0 = vsel %vm553_vm11, %v802_v59, %v803_v61  ;;  %v1310_v61 = vperm.slane %v3158_v26, %v2985_v60 }
 0x178   : > { %v806_v5 = vsel %vm805_vm7, %v799_v14, %v804_v0  ;;  %vm1141_vm7 = vcmask 482304  }
 0x179   : > { %1160 = vrot.lane.b32.xlu2 %v1156_v12, %s2768_s18  ;;  %v809_v7 = vadd.f32 %v806_v5, %v784_v40  ;;  %s2772_s18 = smov 56   ;;  %v1336_v40 = vperm.slane %v3167_v35, %v2985_v60  ;;  %v1312_v5 = vmul.f32 %v1310_v61, %v2988_v1 }
 0x17a   : > { %1188 = vrot.lane.b32.xlu0 %v1183_v2, %s2770_s11  ;;  %v3185_v52 = vpop.permute.xlu1 %1383 }
 0x17b   : > { %v876_v8 = vpop.permute.xlu2 %875 }
 0x17c   : > { %v826_v10 = vpop.permute.xlu0 %825  ;;  %2591 = vset.pattern.permute.xlu1 %v2771_v11  ;;  %v879_v38 = vrot.slane %v876_v8, 4  ;;  %v1313_v11 = vmul.f32 %v1310_v61, %v3069_v21 }
 0x17d   : > { %v828_v15 = vrot.slane %v826_v10, 4  ;;  %v835_v16 = vadd.f32 %v826_v10, %v810_v63  ;;  %1715 = vperm.xlu1 %2591, %v2617_v6   ;;  %v1338_v63 = vmul.f32 %v1336_v40, %v2988_v1 }
 0x17f   : > { %v829_v20 = vsel %vm553_vm11, %v827_v13, %v828_v15 }
 0x180   : > { %v831_v23 = vsel %vm830_vm8, %v824_v24, %v829_v20  ;;  %vm1167_vm8 = vcmask 474112  }
 0x181   : > { %1186 = vrot.lane.b32.xlu2 %v1182_v19, %s2770_s11  ;;  %v834_v25 = vadd.f32 %v831_v23, %v809_v7  ;;  %s3593_s11 = smov 38   ;;  %v1362_v7 = vperm.slane %v3175_v56, %v2985_v60  ;;  %v1339_v23 = vmul.f32 %v1336_v40, %v3069_v21  ;;  %v2618_v40 = vld [vmem:[#allocation2] sm:$0xff] }
 0x182   : > { %1214 = vrot.lane.b32.xlu0 %v1209_v22, %s2772_s18 }
 0x183   : > { %v902_v17 = vpop.permute.xlu2 %901  ;;  %v3193_v27 = vpop.permute.xlu1 %1409 }
 0x184   : > { %v851_v29 = vpop.permute.xlu0 %850  ;;  %v905_v32 = vrot.slane %v902_v17, 4 }
 0x185   : > { %v853_v14 = vrot.slane %v851_v29, 4  ;;  %v860_v62 = vadd.f32 %v851_v29, %v835_v16  ;;  %2592 = vset.pattern.permute.xlu1 %v2773_v33  ;;  %v1365_v16 = vmul.f32 %v1362_v7, %v3069_v21 }
 0x186   : > { %1740 = vperm.xlu1 %2592, %v2617_v6  }
 0x187   : > { %v854_v36 = vsel %vm553_vm11, %v852_v30, %v853_v14  ;;  %v1364_v30 = vmul.f32 %v1362_v7, %v2988_v1 }
 0x188   : > { %v856_v41 = vsel %vm855_vm9, %v849_v18, %v854_v36  ;;  %vm1193_vm9 = vcmask 465920  }
 0x189   : > { %1212 = vrot.lane.b32.xlu2 %v1208_v34, %s2772_s18  ;;  %v859_v54 = vadd.f32 %v856_v41, %v834_v25  ;;  %v1414_v25 = vperm.slane %v3193_v27, %v2985_v60  ;;  %v1388_v34 = vperm.slane %v3185_v52, %v2985_v60 }
 0x18a   : > { %1264 = vrot.lane.b32.xlu0 %v1260_v39, %s2774_s27 }
 0x18b   : > { %v928_v42 = vpop.permute.xlu2 %927  ;;  %v1416_v36 = vmul.f32 %v1414_v25, %v2988_v1  ;;  %v1391_v52 = vmul.f32 %v1388_v34, %v3069_v21 }
 0x18c   : > { %v878_v45 = vpop.permute.xlu0 %877  ;;  %v3207_v24 = vpop.permute.xlu1 %1435  ;;  %v931_v9 = vrot.slane %v928_v42, 4 }
 0x18d   : > { %v880_v4 = vrot.slane %v878_v45, 4 }
 0x18e   : > { %1238 = vrot.lane.b32.xlu1 %v1234_v43, %s2775_s29 }
 0x18f   : > { %v881_v47 = vsel %vm553_vm11, %v879_v38, %v880_v4  ;;  %v884_v48 = vsel %vm882_vm10, %v878_v45, %v880_v4  ;;  %2593 = vset.pattern.permute.xlu1 %v2713_v31 }
 0x190   : > { %v883_v50 = vsel %vm882_vm10, %v876_v8, %v881_v47  ;;  %v888_v51 = vadd.f32 %v884_v48, %v860_v62  ;;  %vm1219_vm10 = vcmask 457728  }
 0x191   : > { %1240 = vrot.lane.b32.xlu2 %v1235_v46, %s2775_s29  ;;  %v887_v3 = vadd.f32 %v883_v50, %v859_v54  ;;  %s2777_s29 = smov 36   ;;  %v1390_v54 = vmul.f32 %v1388_v34, %v2988_v1  ;;  %v1417_v50 = vmul.f32 %v1414_v25, %v3069_v21 }
 0x192   : > { %1292 = vrot.lane.b32.xlu0 %v1287_v49, %s3593_s11 }
 0x193   : > { %v954_v53 = vpop.permute.xlu2 %953 }
 0x194   : > { %v904_v18 = vpop.permute.xlu0 %903  ;;  %v957_v28 = vrot.slane %v954_v53, 4 }
 0x195   : > { %v906_v57 = vrot.slane %v904_v18, 4  ;;  %v3217_v31 = vpop.permute.xlu1 %1461 }
 0x196   : > { %1266 = vrot.lane.b32.xlu1 %v1261_v55, %s2774_s27  ;;  %s2778_s27 = smov 37  }
 0x197   : > { %v907_v6 = vsel %vm553_vm11, %v905_v32, %v906_v57  ;;  %v910_v59 = vsel %vm908_vm12, %v904_v18, %v906_v57 }
 0x198   : > { %v909_v12 = vsel %vm908_vm12, %v902_v17, %v907_v6  ;;  %v914_v35 = vadd.f32 %v910_v59, %v888_v51  ;;  %vm1245_vm12 = vcmask 326656  }
 0x199   : > { %1290 = vrot.lane.b32.xlu2 %v1286_v58, %s3593_s11  ;;  %v913_v0 = vadd.f32 %v909_v12, %v887_v3  ;;  %s2779_s11 = smov 35   ;;  %v1466_v58 = vperm.slane %v3217_v31, %v2985_v60 }
 0x19a   : > { %1342 = vrot.lane.b32.xlu0 %v1338_v63, %s2777_s29 }
 0x19b   : > { %v979_v2 = vpop.permute.xlu2 %978  ;;  %v1469_v31 = vmul.f32 %v1466_v58, %v3069_v21 }
 0x19c   : > { %v930_v8 = vpop.permute.xlu0 %929  ;;  %v982_v44 = vrot.slane %v979_v2, 4 }
 0x19d   : > { %v932_v10 = vrot.slane %v930_v8, 4 }
 0x19e   : > { %v1488_v26 = vpop.permute.xlu1 %1487  ;;  %1316 = vrot.lane.b32.xlu1 %v1312_v5, %s2778_s27 }
 0x19f   : > { %v933_v13 = vsel %vm553_vm11, %v931_v9, %v932_v10  ;;  %v936_v15 = vsel %vm934_vm13, %v930_v8, %v932_v10  ;;  %v1492_v51 = vperm.slane %v1488_v26, %v2985_v60 }
 0x1a0   : > { %v935_v19 = vsel %vm934_vm13, %v928_v42, %v933_v13  ;;  %v940_v20 = vadd.f32 %v936_v15, %v914_v35  ;;  %v1440_v42 = vperm.slane %v3207_v24, %v2985_v60  ;;  %vm1271_vm13 = vcmask 318464  }
 0x1a1   : > { %1318 = vrot.lane.b32.xlu2 %v1313_v11, %s2778_s27  ;;  %v939_v22 = vadd.f32 %v935_v19, %v913_v0  ;;  %s2780_s27 = smov 18   ;;  %v1494_v6 = vmul.f32 %v2618_v40, %v1492_v51  ;;  %v1468_v0 = vmul.f32 %v2618_v40, %v1466_v58 }
 0x1a2   : > { %1370 = vrot.lane.b32.xlu0 %v1365_v16, %s2779_s11  ;;  %v1443_v46 = vmul.f32 %v1440_v42, %v3069_v21  ;;  %v1442_v18 = vmul.f32 %v2618_v40, %v1440_v42 }
 0x1a3   : > { %v1005_v56 = vpop.permute.xlu2 %1004 }
 0x1a4   : > { %v956_v17 = vpop.permute.xlu0 %955 }
 0x1a5   : > { %v958_v29 = vrot.slane %v956_v17, 4 }
 0x1a6   : > { %1344 = vrot.lane.b32.xlu1 %v1339_v23, %s2777_s29  ;;  %s2781_s29 = smov 34  }
 0x1a7   : > { %v959_v14 = vsel %vm553_vm11, %v957_v28, %v958_v29  ;;  %v961_v62 = vsel %vm411_vm4, %v956_v17, %v958_v29  ;;  %v1514_v33 = vpop.permute.xlu1 %1513 }
 0x1a8   : > { %v960_v37 = vsel %vm411_vm4, %v954_v53, %v959_v14  ;;  %v965_v39 = vadd.f32 %v961_v62, %v940_v20  ;;  %vm1011_vm4 = vcmask 646144   ;;  %v1008_v53 = vrot.slane %v1005_v56, 4 }
 0x1a9   : > { %1368 = vrot.lane.b32.xlu2 %v1364_v30, %s2779_s11  ;;  %v964_v27 = vadd.f32 %v960_v37, %v939_v22  ;;  %s2782_s11 = smov 17   ;;  %v1495_v20 = vmul.f32 %v1492_v51, %v3069_v21 }
 0x1aa   : > { %1420 = vrot.lane.b32.xlu0 %v1416_v36, %s2780_s27 }
 0x1ab   : > { %v1031_v41 = vpop.permute.xlu2 %1030 }
 0x1ac   : > { %v981_v43 = vpop.permute.xlu0 %980  ;;  %v1034_v7 = vrot.slane %v1031_v41, 4 }
 0x1ad   : > { %v983_v45 = vrot.slane %v981_v43, 4 }
 0x1ae   : > { %1394 = vrot.lane.b32.xlu1 %v1390_v54, %s2781_s29 }
 0x1af   : > { %v984_v38 = vsel %vm553_vm11, %v982_v44, %v983_v45  ;;  %v987_v4 = vsel %vm985_vm14, %v981_v43, %v983_v45  ;;  %v3266_v44 = vld [vmem:[#allocation2 + $0xc] sm:$0xf] }
 0x1b0   : > { %v986_v47 = vsel %vm985_vm14, %v979_v2, %v984_v38  ;;  %v991_v48 = vadd.f32 %v987_v4, %v965_v39  ;;  %v1540_v49 = vpop.permute.xlu1 %1539  ;;  %v1518_v2 = vperm.slane %v1514_v33, %v2985_v60  ;;  %vm1297_vm14 = vcmask 310272  }
 0x1b1   : > { %1396 = vrot.lane.b32.xlu2 %v1391_v52, %s2781_s29  ;;  %v990_v1 = vadd.f32 %v986_v47, %v964_v27  ;;  %s2783_s29 = smov 15   ;;  %v1544_v30 = vperm.slane %v1540_v49, %v2985_v60 }
 0x1b2   : > { %1448 = vrot.lane.b32.xlu0 %v1443_v46, %s2782_s11  ;;  %v1521_v26 = vmul.f32 %v1518_v2, %v3069_v21  ;;  %v1520_v17 = vmul.f32 %v2618_v40, %v1518_v2 }
 0x1b3   : > { %v1057_v24 = vpop.permute.xlu2 %1056  ;;  %v1546_v39 = vmul.f32 %v2618_v40, %v1544_v30  ;;  %v1547_v43 = vmul.f32 %v1544_v30, %v3069_v21 }
 0x1b4   : > { %v1007_v3 = vpop.permute.xlu0 %1006  ;;  %v1060_v23 = vrot.slane %v1057_v24, 4 }
 0x1b5   : > { %v1009_v55 = vrot.slane %v1007_v3, 4 }
 0x1b6   : > { %1422 = vrot.lane.b32.xlu1 %v1417_v50, %s2780_s27  ;;  %s2784_s27 = smov 16  }
 0x1b7   : > { %v1010_v32 = vsel %vm553_vm11, %v1008_v53, %v1009_v55  ;;  %v1013_v57 = vsel %vm1011_vm4, %v1007_v3, %v1009_v55  ;;  %v3274_v53 = vld [vmem:[#allocation2 + $0x4] sm:$0xff] }
 0x1b8   : > { %v1012_v59 = vsel %vm1011_vm4, %v1005_v56, %v1010_v32  ;;  %v1017_v61 = vadd.f32 %v1013_v57, %v991_v48  ;;  %vm1323_vm4 = vcmask 302080  }
 0x1b9   : > { %1446 = vrot.lane.b32.xlu2 %v1442_v18, %s2782_s11  ;;  %v1566_v63 = vpop.permute.xlu1 %1565  ;;  %v1016_v12 = vadd.f32 %v1012_v59, %v990_v1  ;;  %s2785_s11 = smov 14  }
 0x1ba   : > { %1498 = vrot.lane.b32.xlu0 %v1494_v6, %s2783_s29  ;;  %v1570_v22 = vperm.slane %v1566_v63, %v2985_v60 }
 0x1bb   : > { %v1083_v35 = vpop.permute.xlu2 %1082 }
 0x1bc   : > { %v1033_v5 = vpop.permute.xlu0 %1032  ;;  %v1572_v14 = vmul.f32 %v2618_v40, %v1570_v22  ;;  %v1086_v54 = vrot.slane %v1083_v35, 4  ;;  %v1573_v49 = vmul.f32 %v1570_v22, %v3069_v21 }
 0x1bd   : > { %v1035_v8 = vrot.slane %v1033_v5, 4 }
 0x1be   : > { %1472 = vrot.lane.b32.xlu1 %v1468_v0, %s2784_s27 }
 0x1bf   : > { %v1036_v9 = vsel %vm553_vm11, %v1034_v7, %v1035_v8  ;;  %v1039_v10 = vsel %vm1037_vm2, %v1033_v5, %v1035_v8 }
 0x1c0   : > { %v1038_v11 = vsel %vm1037_vm2, %v1031_v41, %v1036_v9  ;;  %v1043_v13 = vadd.f32 %v1039_v10, %v1017_v61  ;;  %vm1349_vm2 = vcmask 293888  }
 0x1c1   : > { %1474 = vrot.lane.b32.xlu2 %v1469_v31, %s2784_s27  ;;  %v1042_v15 = vadd.f32 %v1038_v11, %v1016_v12  ;;  %s2786_s27 = smov 12  }
 0x1c2   : > { %1526 = vrot.lane.b32.xlu0 %v1521_v26, %s2785_s11  ;;  %v1594_v16 = vpop.permute.xlu1 %1593 }
 0x1c3   : > { %v1109_v19 = vpop.permute.xlu2 %1108  ;;  %v1598_v27 = vperm.slane %v1594_v16, %v2985_v60 }
 0x1c4   : > { %v1059_v56 = vpop.permute.xlu0 %1058  ;;  %v1112_v50 = vrot.slane %v1109_v19, 4 }
 0x1c5   : > { %v1061_v25 = vrot.slane %v1059_v56, 4  ;;  %v1601_v38 = vmul.f32 %v1598_v27, %v3266_v44  ;;  %v1600_v55 = vmul.f32 %v1598_v27, %v3274_v53 }
 0x1c6   : > { %1500 = vrot.lane.b32.xlu1 %v1495_v20, %s2783_s29  ;;  %s2790_s29 = smov 118  }
 0x1c7   : > { %v1062_v28 = vsel %vm553_vm11, %v1060_v23, %v1061_v25  ;;  %v1065_v29 = vsel %vm1063_vm3, %v1059_v56, %v1061_v25 }
 0x1c8   : > { %v1064_v62 = vsel %vm1063_vm3, %v1057_v24, %v1062_v28  ;;  %v1069_v33 = vadd.f32 %v1065_v29, %v1043_v13 }
 0x1c9   : > { %1524 = vrot.lane.b32.xlu2 %v1520_v17, %s2785_s11  ;;  %v1068_v34 = vadd.f32 %v1064_v62, %v1042_v15  ;;  %s2791_s11 = smov 74  }
 0x1ca   : > { %1576 = vrot.lane.b32.xlu0 %v1572_v14, %s2786_s27 }
 0x1cb   : > { %v1135_v36 = vpop.permute.xlu2 %1134  ;;  %v1618_v37 = vpop.permute.xlu1 %1617 }
 0x1cc   : > { %v1085_v41 = vpop.permute.xlu0 %1084  ;;  %v1622_v57 = vperm.slane %v1618_v37, %v2985_v60  ;;  %v1138_v12 = vrot.slane %v1135_v36, 4 }
 0x1cd   : > { %v1087_v42 = vrot.slane %v1085_v41, 4 }
 0x1ce   : > { %1550 = vrot.lane.b32.xlu1 %v1546_v39, %s2700_s21  ;;  %v1624_v61 = vmul.f32 %v1622_v57, %v3274_v53  ;;  %v1625_v5 = vmul.f32 %v1622_v57, %v3266_v44 }
 0x1cf   : > { %v1088_v45 = vsel %vm553_vm11, %v1086_v54, %v1087_v42  ;;  %v1091_v52 = vsel %vm1089_vm5, %v1085_v41, %v1087_v42 }
 0x1d0   : > { %v1090_v4 = vsel %vm1089_vm5, %v1083_v35, %v1088_v45  ;;  %v1095_v46 = vadd.f32 %v1091_v52, %v1069_v33  ;;  %vm1375_vm5 = vcmask 285696  }
 0x1d1   : > { %1552 = vrot.lane.b32.xlu2 %v1547_v43, %s2700_s21  ;;  %v1094_v47 = vadd.f32 %v1090_v4, %v1068_v34  ;;  %s2787_s21 = smov 121  }
 0x1d2   : > { %1606 = vrot.lane.b32.xlu0 %v1601_v38, %s2732_s20 }
 0x1d3   : > { %v1161_v48 = vpop.permute.xlu2 %1160 }
 0x1d4   : > { %v1111_v1 = vpop.permute.xlu0 %1110  ;;  %v1642_v24 = vpop.permute.xlu1 %1641  ;;  %v1164_v16 = vrot.slane %v1161_v48, 4 }
 0x1d5   : > { %v1113_v51 = vrot.slane %v1111_v1, 4  ;;  %v1646_v3 = vperm.slane %v1642_v24, %v2985_v60 }
 0x1d6   : > { %1578 = vrot.lane.b32.xlu1 %v1573_v49, %s2786_s27  ;;  %s2792_s27 = smov 116  }
 0x1d7   : > { %v1114_v40 = vsel %vm553_vm11, %v1112_v50, %v1113_v51  ;;  %v1117_v18 = vsel %vm1115_vm6, %v1111_v1, %v1113_v51  ;;  %v1648_v32 = vmul.f32 %v1646_v3, %v3274_v53  ;;  %v1649_v13 = vmul.f32 %v1646_v3, %v3266_v44 }
 0x1d8   : > { %v1116_v21 = vsel %vm1115_vm6, %v1109_v19, %v1114_v40  ;;  %v1121_v58 = vadd.f32 %v1117_v18, %v1095_v46  ;;  %vm1401_vm6 = vcmask 277504  }
 0x1d9   : > { %1604 = vrot.lane.b32.xlu2 %v1600_v55, %s2732_s20  ;;  %v1120_v6 = vadd.f32 %v1116_v21, %v1094_v47  ;;  %s2789_s20 = smov 119  }
 0x1da   : > { %1652 = vrot.lane.b32.xlu0 %v1648_v32, %s2734_s25 }
 0x1db   : > { %v1187_v59 = vpop.permute.xlu2 %1186 }
 0x1dc   : > { %v1137_v63 = vpop.permute.xlu0 %1136  ;;  %v1190_v62 = vrot.slane %v1187_v59, 4 }
 0x1dd   : > { %v1139_v35 = vrot.slane %v1137_v63, 4  ;;  %v1666_v0 = vpop.permute.xlu1 %1665 }
 0x1de   : > { %v1670_v2 = vperm.slane %v1666_v0, %v2985_v60  ;;  %1628 = vrot.lane.b32.xlu1 %v1624_v61, %s2697_s12 }
 0x1df   : > { %v1140_v7 = vsel %vm553_vm11, %v1138_v12, %v1139_v35  ;;  %v1143_v8 = vsel %vm1141_vm7, %v1137_v63, %v1139_v35 }
 0x1e0   : > { %v1142_v31 = vsel %vm1141_vm7, %v1135_v36, %v1140_v7  ;;  %v1147_v9 = vadd.f32 %v1143_v8, %v1121_v58  ;;  %v1673_v10 = vmul.f32 %v1670_v2, %v3266_v44  ;;  %v1672_v22 = vmul.f32 %v1670_v2, %v3274_v53 }
 0x1e1   : > { %1630 = vrot.lane.b32.xlu2 %v1625_v5, %s2697_s12  ;;  %v1146_v26 = vadd.f32 %v1142_v31, %v1120_v6  ;;  %s2788_s12 = smov 120   ;;  %vm1427_vm7 = vcmask 146432  }
 0x1e2   : > { %1678 = vrot.lane.b32.xlu0 %v1673_v10, %s2787_s21 }
 0x1e3   : > { %v1213_v11 = vpop.permute.xlu2 %1212 }
 0x1e4   : > { %v1163_v15 = vpop.permute.xlu0 %1162  ;;  %v1216_v4 = vrot.slane %v1213_v11, 4 }
 0x1e5   : > { %v1165_v19 = vrot.slane %v1163_v15, 4 }
 0x1e6   : > { %v1691_v20 = vpop.permute.xlu1 %1690  ;;  %1654 = vrot.lane.b32.xlu1 %v1649_v13, %s2734_s25 }
 0x1e7   : > { %v1166_v56 = vsel %vm553_vm11, %v1164_v16, %v1165_v19  ;;  %v1169_v23 = vsel %vm1167_vm8, %v1163_v15, %v1165_v19  ;;  %v1695_v28 = vperm.slane %v1691_v20, %v2985_v60 }
 0x1e8   : > { %v1168_v25 = vsel %vm1167_vm8, %v1161_v48, %v1166_v56  ;;  %v1173_v17 = vadd.f32 %v1169_v23, %v1147_v9  ;;  %vm1453_vm8 = vcmask 138240  }
 0x1e9   : > { %1676 = vrot.lane.b32.xlu2 %v1672_v22, %s2787_s21  ;;  %v1172_v29 = vadd.f32 %v1168_v25, %v1146_v26  ;;  %v1697_v30 = vmul.f32 %v1695_v28, %v3274_v53  ;;  %v1698_v36 = vmul.f32 %v1695_v28, %v3266_v44  ;;  %s2793_s21 = smov 68  }
 0x1eb   : > { %v3295_v33 = vpop.permute.xlu2 %1240 }
 0x1ec   : > { %v1189_v14 = vpop.permute.xlu0 %1188  ;;  %v1243_v57 = vrot.slane %v3295_v33, 4 }
 0x1ed   : > { %v1191_v34 = vrot.slane %v1189_v14, 4 }
 0x1ee   : > { %1701 = vrot.lane.b32.xlu1 %v1697_v30, %s2788_s12  ;;  %v1247_v22 = vsel %vm1245_vm12, %v3295_v33, %v1243_v57 }
 0x1ef   : > { %v1192_v37 = vsel %vm553_vm11, %v1190_v62, %v1191_v34  ;;  %v1195_v39 = vsel %vm1193_vm9, %v1189_v14, %v1191_v34  ;;  %v1716_v27 = vpop.permute.xlu1 %1715 }
 0x1f0   : > { %v1194_v41 = vsel %vm1193_vm9, %v1187_v59, %v1192_v37  ;;  %v1199_v54 = vadd.f32 %v1195_v39, %v1173_v17  ;;  %v1720_v42 = vperm.slane %v1716_v27, %v2985_v60  ;;  %vm1479_vm9 = vcmask 130048  }
 0x1f1   : > { %1703 = vrot.lane.b32.xlu2 %v1698_v36, %s2788_s12  ;;  %v1198_v43 = vadd.f32 %v1194_v41, %v1172_v29  ;;  %s2797_s12 = smov 92  }
 0x1f2   : > { %v1722_v45 = vmul.f32 %v1720_v42, %v3274_v53  ;;  %v1723_v52 = vmul.f32 %v1720_v42, %v3266_v44 }
 0x1f3   : > { %v3302_v47 = vpop.permute.xlu2 %1290 }
 0x1f4   : > { %v1215_v38 = vpop.permute.xlu0 %1214  ;;  %1726 = vrot.lane.b32.xlu0 %v1722_v45, %s2789_s20 }
 0x1f5   : > { %v1217_v46 = vrot.slane %v1215_v38, 4 }
 0x1f6   : > { %1728 = vrot.lane.b32.xlu1 %v1723_v52, %s2789_s20  ;;  %s2798_s20 = smov 44  }
 0x1f7   : > { %v1218_v48 = vsel %vm553_vm11, %v1216_v4, %v1217_v46  ;;  %v1221_v49 = vsel %vm1219_vm10, %v1215_v38, %v1217_v46  ;;  %v1294_v4 = vrot.slane %v3302_v47, 4 }
 0x1f8   : > { %v1225_v1 = vadd.f32 %v1221_v49, %v1199_v54  ;;  %v1741_v24 = vpop.permute.xlu1 %1740  ;;  %v1220_v50 = vsel %vm1219_vm10, %v1213_v11, %v1218_v48  ;;  %vm1505_vm10 = vcmask 121856  }
 0x1f9   : > { %v1745_v51 = vperm.slane %v1741_v24, %v2985_v60  ;;  %v1224_v3 = vadd.f32 %v1220_v50, %v1198_v43 }
 0x1fa   : > { %v1251_v23 = vadd.f32 %v1247_v22, %v1225_v1 }
 0x1fb   : > { %v1747_v55 = vmul.f32 %v1745_v51, %v3274_v53  ;;  %v1748_v40 = vmul.f32 %v1745_v51, %v3266_v44  ;;  %v3309_v21 = vpop.permute.xlu2 %1318 }
 0x1fc   : > { %v1265_v18 = vpop.permute.xlu0 %1264  ;;  %v1321_v30 = vrot.slane %v3309_v21, 4 }
 0x1fd   : > { %1753 = vrot.lane.b32.xlu0 %v1748_v40, %s2790_s29  ;;  %1751 = vrot.lane.b32.xlu2 %v1747_v55, %s2790_s29  ;;  %v1268_v12 = vrot.slane %v1265_v18, 4  ;;  %s2799_s29 = smov 86  }
 0x1fe   : > { %v1325_v37 = vsel %vm1323_vm4, %v3309_v21, %v1321_v30 }
 0x200   : > { %v1239_v32 = vpop.permute.xlu1 %1238 }
 0x201   : > { %v1242_v58 = vrot.slane %v1239_v32, 4 }
 0x203   : > { %v1244_v6 = vsel %vm553_vm11, %v1242_v58, %v1243_v57  ;;  %v3313_v35 = vpop.permute.xlu2 %1368 }
 0x204   : > { %v1246_v59 = vsel %vm1245_vm12, %v1239_v32, %v1244_v6  ;;  %v1293_v61 = vpop.permute.xlu0 %1292  ;;  %vm1531_vm12 = vcmask 113664  }
 0x205   : > { %v1250_v63 = vadd.f32 %v1246_v59, %v1224_v3  ;;  %v1295_v17 = vrot.slane %v1293_v61, 4 }
 0x207   : > { %v1299_v14 = vsel %vm1297_vm14, %v1293_v61, %v1295_v17  ;;  %v1296_v1 = vsel %vm553_vm11, %v1294_v4, %v1295_v17 }
 0x208   : > { %v1267_v53 = vpop.permute.xlu1 %1266  ;;  %v1298_v32 = vsel %vm1297_vm14, %v3302_v47, %v1296_v1  ;;  %vm1583_vm14 = vcmask 97280  }
 0x209   : > { %v1269_v44 = vrot.slane %v1267_v53, 4 }
 0x20b   : > { %v1270_v0 = vsel %vm553_vm11, %v1268_v12, %v1269_v44  ;;  %v3319_v9 = vpop.permute.xlu2 %1396  ;;  %v1273_v56 = vsel %vm1271_vm13, %v1267_v53, %v1269_v44 }
 0x20c   : > { %v1272_v2 = vsel %vm1271_vm13, %v1265_v18, %v1270_v0  ;;  %v1343_v5 = vpop.permute.xlu0 %1342  ;;  %v1277_v28 = vadd.f32 %v1273_v56, %v1251_v23  ;;  %v1399_v45 = vrot.slane %v3319_v9, 4  ;;  %v1372_v18 = vrot.slane %v3313_v35, 4 }
 0x20d   : > { %v1276_v7 = vadd.f32 %v1272_v2, %v1250_v63  ;;  %v1346_v24 = vrot.slane %v1343_v5, 4  ;;  %vm1557_vm13 = vcmask 105472  }
 0x20e   : > { %v1303_v34 = vadd.f32 %v1299_v14, %v1277_v28  ;;  %v1403_v51 = vsel %vm1401_vm6, %v3319_v9, %v1399_v45 }
 0x20f   : > { %v1302_v58 = vadd.f32 %v1298_v32, %v1276_v7 }
 0x210   : > { %v1317_v8 = vpop.permute.xlu1 %1316  ;;  %v1329_v27 = vadd.f32 %v1325_v37, %v1303_v34 }
 0x211   : > { %v1320_v43 = vrot.slane %v1317_v8, 4 }
 0x213   : > { %v3323_v11 = vpop.permute.xlu2 %1446  ;;  %v1322_v50 = vsel %vm553_vm11, %v1320_v43, %v1321_v30 }
 0x214   : > { %v3317_v31 = vpop.permute.xlu0 %1370  ;;  %v1324_v57 = vsel %vm1323_vm4, %v1317_v8, %v1322_v50  ;;  %vm1683_vm4 = vcmask 990208  }
 0x215   : > { %v1373_v41 = vrot.slane %v3317_v31, 4  ;;  %v1328_v53 = vadd.f32 %v1324_v57, %v1302_v58 }
 0x217   : > { %v1377_v52 = vsel %vm1375_vm5, %v3317_v31, %v1373_v41  ;;  %v1374_v12 = vsel %vm553_vm11, %v1372_v18, %v1373_v41 }
 0x218   : > { %v1345_v10 = vpop.permute.xlu1 %1344  ;;  %v1376_v22 = vsel %vm1375_vm5, %v3313_v35, %v1374_v12  ;;  %vm1768_vm5 = vcmask 125952  }
 0x219   : > { %v1347_v62 = vrot.slane %v1345_v10, 4 }
 0x21b   : > { %v3331_v19 = vpop.permute.xlu2 %1474  ;;  %v1351_v39 = vsel %vm1349_vm2, %v1345_v10, %v1347_v62  ;;  %v1348_v55 = vsel %vm553_vm11, %v1346_v24, %v1347_v62 }
 0x21c   : > { %v3321_v26 = vpop.permute.xlu0 %1420  ;;  %v1355_v54 = vadd.f32 %v1351_v39, %v1329_v27  ;;  %v1350_v61 = vsel %vm1349_vm2, %v1343_v5, %v1348_v55  ;;  %v1477_v47 = vrot.slane %v3331_v19, 4  ;;  %vm1708_vm2 = vcmask 982016  }
 0x21d   : > { %v1424_v7 = vrot.slane %v3321_v26, 4  ;;  %v1354_v8 = vadd.f32 %v1350_v61, %v1328_v53 }
 0x21e   : > { %v1381_v46 = vadd.f32 %v1377_v52, %v1355_v54 }
 0x21f   : > { %v1380_v23 = vadd.f32 %v1376_v22, %v1354_v8 }
 0x220   : > { %v3325_v13 = vpop.permute.xlu1 %1394  ;;  %v1407_v40 = vadd.f32 %v1403_v51, %v1381_v46 }
 0x221   : > { %v1398_v6 = vrot.slane %v3325_v13, 4 }
 0x223   : > { %v3340_v29 = vpop.permute.xlu2 %1524  ;;  %v1400_v5 = vsel %vm553_vm11, %v1398_v6, %v1399_v45 }
 0x224   : > { %v3327_v15 = vpop.permute.xlu0 %1448  ;;  %v1528_v24 = vrot.slane %v3340_v29, 4 }
 0x225   : > { %v1451_v21 = vrot.slane %v3327_v15, 4 }
 0x227   : > { %v1455_v0 = vsel %vm1453_vm8, %v3327_v15, %v1451_v21  ;;  %v1402_v15 = vsel %vm1401_vm6, %v3325_v13, %v1400_v5  ;;  %vm1775_vm6 = vcmask 257152  }
 0x228   : > { %v3329_v16 = vpop.permute.xlu1 %1422  ;;  %v1406_v62 = vadd.f32 %v1402_v15, %v1380_v23 }
 0x229   : > { %v1425_v38 = vrot.slane %v3329_v16, 4 }
 0x22b   : > { %v3352_v42 = vpop.permute.xlu2 %1552  ;;  %v1429_v3 = vsel %vm1427_vm7, %v3329_v16, %v1425_v38  ;;  %v1426_v10 = vsel %vm553_vm11, %v1424_v7, %v1425_v38  ;;  %v1481_v16 = vsel %vm1479_vm9, %v3331_v19, %v1477_v47  ;;  %v1450_v19 = vrot.slane %v3323_v11, 4 }
 0x22c   : > { %v3333_v20 = vpop.permute.xlu0 %1498  ;;  %v1433_v59 = vadd.f32 %v1429_v3, %v1407_v40  ;;  %v1428_v30 = vsel %vm1427_vm7, %v3321_v26, %v1426_v10  ;;  %v1555_v41 = vrot.slane %v3352_v42, 4  ;;  %vm1782_vm7 = vcmask 388352  }
 0x22d   : > { %v1452_v13 = vsel %vm553_vm11, %v1450_v19, %v1451_v21  ;;  %v1432_v39 = vadd.f32 %v1428_v30, %v1406_v62 }
 0x22e   : > { %v1459_v31 = vadd.f32 %v1455_v0, %v1433_v59  ;;  %v1454_v38 = vsel %vm1453_vm8, %v3323_v11, %v1452_v13  ;;  %vm1789_vm8 = vcmask 519552  }
 0x22f   : > { %v1458_v46 = vadd.f32 %v1454_v38, %v1432_v39 }
 0x230   : > { %v3338_v25 = vpop.permute.xlu1 %1472  ;;  %v1485_v28 = vadd.f32 %v1481_v16, %v1459_v31 }
 0x231   : > { %v1476_v17 = vrot.slane %v3338_v25, 4 }
 0x233   : > { %v3377_v63 = vpop.permute.xlu2 %1604  ;;  %v1478_v27 = vsel %vm553_vm11, %v1476_v17, %v1477_v47 }
 0x234   : > { %v3344_v36 = vpop.permute.xlu0 %1526  ;;  %v1480_v4 = vsel %vm1479_vm9, %v3338_v25, %v1478_v27 }
 0x235   : > { %v1529_v14 = vrot.slane %v3344_v36, 4  ;;  %v1484_v3 = vadd.f32 %v1480_v4, %v1458_v46 }
 0x237   : > { %v1533_v26 = vsel %vm1531_vm12, %v3344_v36, %v1529_v14  ;;  %v1559_v36 = vsel %vm1557_vm13, %v3352_v42, %v1555_v41  ;;  %v1530_v11 = vsel %vm553_vm11, %v1528_v24, %v1529_v14 }
 0x238   : > { %v3346_v33 = vpop.permute.xlu1 %1500  ;;  %v1532_v42 = vsel %vm1531_vm12, %v3340_v29, %v1530_v11  ;;  %vm1803_vm12 = vcmask 781952  }
 0x239   : > { %v1503_v2 = vrot.slane %v3346_v33, 4 }
 0x23b   : > { %v1507_v56 = vsel %vm1505_vm10, %v3346_v33, %v1503_v2  ;;  %v1631_v37 = vpop.permute.xlu2 %1630  ;;  %v1502_v33 = vrot.slane %v3333_v20, 4 }
 0x23c   : > { %v3359_v48 = vpop.permute.xlu0 %1576  ;;  %v1511_v35 = vadd.f32 %v1507_v56, %v1485_v28  ;;  %v1633_v0 = vrot.slane %v1631_v37, 4 }
 0x23d   : > { %v1504_v43 = vsel %vm553_vm11, %v1502_v33, %v1503_v2  ;;  %v1580_v25 = vrot.slane %v3359_v48, 4 }
 0x23e   : > { %v1537_v45 = vadd.f32 %v1533_v26, %v1511_v35  ;;  %v1506_v50 = vsel %vm1505_vm10, %v3333_v20, %v1504_v43  ;;  %vm1796_vm10 = vcmask 650752  }
 0x23f   : > { %v1510_v18 = vadd.f32 %v1506_v50, %v1484_v3 }
 0x240   : > { %v3361_v49 = vpop.permute.xlu1 %1550  ;;  %v1563_v55 = vadd.f32 %v1559_v36, %v1537_v45 }
 0x241   : > { %v1554_v1 = vrot.slane %v3361_v49, 4  ;;  %v1536_v59 = vadd.f32 %v1532_v42, %v1510_v18 }
 0x243   : > { %v1556_v32 = vsel %vm553_vm11, %v1554_v1, %v1555_v41  ;;  %v1677_v21 = vpop.permute.xlu2 %1676 }
 0x244   : > { %v1607_v9 = vpop.permute.xlu0 %1606  ;;  %v1558_v20 = vsel %vm1557_vm13, %v3361_v49, %v1556_v32  ;;  %v1680_v14 = vrot.slane %v1677_v21, 4  ;;  %vm1810_vm13 = vcmask 913152  }
 0x245   : > { %v1609_v6 = vrot.slane %v1607_v9, 4  ;;  %v1562_v2 = vadd.f32 %v1558_v20, %v1536_v59 }
 0x248   : > { %v1579_v44 = vpop.permute.xlu1 %1578 }
 0x249   : > { %v1581_v54 = vrot.slane %v1579_v44, 4 }
 0x24b   : > { %v1585_v51 = vsel %vm1583_vm14, %v1579_v44, %v1581_v54  ;;  %v1582_v58 = vsel %vm553_vm11, %v1580_v25, %v1581_v54  ;;  %v1608_v44 = vrot.slane %v3377_v63, 4  ;;  %v1704_v22 = vpop.permute.xlu2 %1703 }
 0x24c   : > { %v1653_v52 = vpop.permute.xlu0 %1652  ;;  %v1589_v57 = vadd.f32 %v1585_v51, %v1563_v55  ;;  %v1584_v47 = vsel %vm1583_vm14, %v3359_v48, %v1582_v58  ;;  %v1706_v19 = vrot.slane %v1704_v22, 4  ;;  %vm1817_vm14 = vcmask 1044352  }
 0x24d   : > { %v1610_v5 = vsel %vm553_vm11, %v1608_v44, %v1609_v6  ;;  %v1656_v29 = vrot.slane %v1653_v52, 4  ;;  %v1588_v31 = vadd.f32 %v1584_v47, %v1562_v2  ;;  %v1869_v47 = vld [vmem:[%s3584_s2] sm:$0xf]  ;;  %v1875_v2 = vld [vmem:[%s3588_s6 + $0x8] sm:$0xff] }
 0x24e   : > { %v1615_v61 = vadd.f32 %v1607_v9, %v1589_v57  ;;  %v1611_v15 = vsel %vm630_vm15, %v3377_v63, %v1610_v5  ;;  %vm1733_vm15 = vcmask 973824  }
 0x24f   : > { %v1614_v56 = vadd.f32 %v1611_v15, %v1588_v31  ;;  %v1874_v31 = vld [vmem:[%s3588_s6] sm:$0xff] }
 0x250   : > { %v1629_v34 = vpop.permute.xlu1 %1628  ;;  %v1639_v10 = vadd.f32 %v1631_v37, %v1615_v61 }
 0x251   : > { %v1632_v53 = vrot.slane %v1629_v34, 4 }
 0x253   : > { %v1634_v49 = vsel %vm553_vm11, %v1632_v53, %v1633_v0  ;;  %v1871_v0 = vld [vmem:[%s3586_s4] sm:$0xf] }
 0x254   : > { %v1679_v12 = vpop.permute.xlu0 %1678  ;;  %v1635_v48 = vsel %vm655_vm0, %v1629_v34, %v1634_v49  ;;  %vm1758_vm0 = vcmask 965632  }
 0x255   : > { %v1681_v23 = vrot.slane %v1679_v12, 4  ;;  %v1638_v62 = vadd.f32 %v1635_v48, %v1614_v56 }
 0x257   : > { %v1682_v33 = vsel %vm553_vm11, %v1680_v14, %v1681_v23  ;;  %v1752_v26 = vpop.permute.xlu2 %1751 }
 0x258   : > { %v1655_v40 = vpop.permute.xlu1 %1654  ;;  %v1684_v54 = vsel %vm1683_vm4, %v1677_v21, %v1682_v33  ;;  %v1755_v46 = vrot.slane %v1752_v26, 4 }
 0x259   : > { %v1657_v7 = vrot.slane %v1655_v40, 4  ;;  %v1663_v16 = vadd.f32 %v1655_v40, %v1639_v10 }
 0x25b   : > { %v1658_v9 = vsel %vm553_vm11, %v1656_v29, %v1657_v7  ;;  %v1688_v35 = vadd.f32 %v1679_v12, %v1663_v16  ;;  %v1877_v7 = vld [vmem:[%s3590_s8] sm:$0xf] }
 0x25c   : > { %v1659_v30 = vsel %vm680_vm1, %v1653_v52, %v1658_v9  ;;  %vm1765_vm1 = vcmask 732160   ;;  %v1870_v29 = vld [vmem:[%s3585_s3] sm:$0xf] }
 0x25d   : > { %v1662_v39 = vadd.f32 %v1659_v30, %v1638_v62  ;;  %v1713_v27 = vadd.f32 %v1704_v22, %v1688_v35 }
 0x25f   : > { %v1687_v45 = vadd.f32 %v1684_v54, %v1662_v39 }
 0x260   : > { %v1702_v8 = vpop.permute.xlu1 %1701 }
 0x261   : > { %v1705_v17 = vrot.slane %v1702_v8, 4 }
 0x263   : > { %v1707_v63 = vsel %vm553_vm11, %v1705_v17, %v1706_v19 }
 0x264   : > { %v1709_v43 = vsel %vm1708_vm2, %v1702_v8, %v1707_v63  ;;  %v1878_v8 = vld [vmem:[%s3591_s9] sm:$0xf] }
 0x265   : > { %v1712_v1 = vadd.f32 %v1709_v43, %v1687_v45 }
 0x266   : > { %v1727_v28 = vpop.permute.xlu0 %1726 }
 0x267   : > { %v1730_v34 = vrot.slane %v1727_v28, 4 }
 0x268   : > { %v1729_v37 = vpop.permute.xlu1 %1728 }
 0x269   : > { %v1731_v13 = vrot.slane %v1729_v37, 4  ;;  %v1738_v52 = vadd.f32 %v1729_v37, %v1713_v27  ;;  %v2800_v37 = vmov 4.0  }
 0x26a   : > { %2595 = vrcp.f32 %v2800_v37 }
 0x26b   : > { %v1732_v41 = vsel %vm553_vm11, %v1730_v34, %v1731_v13 }
 0x26c   : > { %v1734_v38 = vsel %vm1733_vm15, %v1727_v28, %v1732_v41 }
 0x26d   : > { %v1737_v50 = vadd.f32 %v1734_v38, %v1712_v1 }
 0x26f   : > { %v1754_v4 = vpop.permute.xlu0 %1753 }
 0x270   : > { %v1756_v24 = vrot.slane %v1754_v4, 4  ;;  %v1763_v36 = vadd.f32 %v1754_v4, %v1738_v52  ;;  %v2596_v34 = vpop.eup %2595 }
 0x271   : > { %v1911_v27 = vmul.f32 4.0, %v2596_v34 }
 0x272   : > { %v1757_v51 = vsel %vm553_vm11, %v1755_v46, %v1756_v24  ;;  %1766 = vst.msk [vmem:[#allocation3 + $0x8] sm:$0xf] %vm1765_vm1, %v1763_v36 }
 0x273   : > { %v1759_v3 = vsel %vm1758_vm0, %v1752_v26, %v1757_v51  ;;  %v1912_v41 = vsub.f32 1.0, %v1911_v27 }
 0x274   : > { %v1762_v55 = vadd.f32 %v1759_v3, %v1737_v50 }
 0x275   : > { %v1913_v4 = vmul.f32 %v2596_v34, %v1912_v41 }
 0x276   : > { %1764 = vst [vmem:[#allocation3] sm:$0xff] %v1762_v55 }
 0x277   : > { %v1914_v50 = vadd.f32 %v2596_v34, %v1913_v4 }
 0x279   : > { %v1845_v20 = vld [vmem:[#allocation3 + $0x8] sm:$0xf] }
 0x27a   : > { %v1851_v59 = vld [vmem:[#allocation3 + $0x8] sm:$0xf] }
 0x27b   : > { %v1857_v53 = vld [vmem:[#allocation3 + $0x8] sm:$0xf] }
 0x27c   : > { %v1863_v44 = vld [vmem:[#allocation3 + $0x8] sm:$0xf] }
 0x27d   : > { %v1837_v40 = vld [vmem:[#allocation3 + $0x4] sm:$0xff]  ;;  %v1770_v25 = vld [vmem:[#allocation3] sm:$0xf] }
 0x27e   : > { %v1819_v11 = vld [vmem:[#allocation3 + $0x4] sm:$0xf]  ;;  %1839 = vrot.lane.b32.xlu2 %v1837_v40, %s2761_s26  ;;  %1772 = vrot.lane.b32.xlu0 %v1770_v25, %s2734_s25  ;;  %v1767_v18 = vld [vmem:[#allocation3] sm:$0xf]  ;;  %s2794_s26 = smov 110   ;;  %s2795_s25 = smov 98  }
 0x27f   : > { %1821 = vrot.lane.b32.xlu1 %v1819_v11, %s2755_s30  ;;  %1769 = vst.msk [vmem:[#allocation4] sm:$0xf] %vm1768_vm5, %v1767_v18  ;;  %v1825_v32 = vld [vmem:[#allocation3 + $0x4] sm:$0xf]  ;;  %v1777_v57 = vld [vmem:[#allocation3] sm:$0xf] }
 0x280   : > { %v1831_v21 = vld [vmem:[#allocation3 + $0x4] sm:$0xf]  ;;  %v1784_v58 = vld [vmem:[#allocation3] sm:$0xf]  ;;  %s2796_s30 = smov 50  }
 0x281   : > { %v1791_v42 = vld [vmem:[#allocation3] sm:$0xf]  ;;  %v1805_v61 = vld [vmem:[#allocation3 + $0x4] sm:$0xf] }
 0x282   : > { %v1798_v6 = vld [vmem:[#allocation3] sm:$0xf]  ;;  %v1812_v12 = vld [vmem:[#allocation3 + $0x4] sm:$0xf] }
 0x286   : > { %1779 = vrot.lane.b32.xlu2 %v1777_v57, %s2792_s27  ;;  %1833 = vrot.lane.b32.xlu0 %v1831_v21, %s2793_s21 }
 0x287   : > { %1827 = vrot.lane.b32.xlu1 %v1825_v32, %s2791_s11  ;;  %s2385_s11 = sshll.u32 %s2878_s17, 3 }
 0x288   : > { %s2300_s21 = scalar_lea.hbm %s3592_s10, %s2385_s11 }
 0x28e   : > { %1793 = vrot.lane.b32.xlu2 %v1791_v42, %s2739_s28  ;;  %1847 = vrot.lane.b32.xlu0 %v1845_v20, %s2772_s18  ;;  %s3596_s28 = smov 38  }
 0x28f   : > { %1786 = vrot.lane.b32.xlu1 %v1784_v58, %s2794_s26 }
 0x296   : > { %1853 = vrot.lane.b32.xlu2 %v1851_v59, %s2796_s30  ;;  %1807 = vrot.lane.b32.xlu0 %v1805_v61, %s2797_s12  ;;  %s2304_s30 = sshll.u32 %s2300_s21, 4  ;;  %s2305_s30 = int_to_ptr.hbm [resolvable:$true] %s2304_s30 }
 0x297   : > { %1800 = vrot.lane.b32.xlu1 %v1798_v6, %s2795_s25  ;;  %s2633_s12 = sshra.s32 %s2305_s30, 4  ;;  %s2634_s12 = int_to_ptr.hbm [resolvable:$true] %s2633_s12 }
 0x298   : > { %p2640_p0 = scmp.lt.s32.totalorder %s2634_s12, %s3592_s10 }
 0x29e   : > { %1814 = vrot.lane.b32.xlu2 %v1812_v12, %s2799_s29  ;;  %1865 = vrot.lane.b32.xlu0 %v1863_v44, %s3596_s28  ;;  %s350_s29 = sand.u32 1, %s2673_s14  }
 0x29f   : > { %1859 = vrot.lane.b32.xlu1 %v1857_v53, %s2798_s20  ;;  %s2368_s28 = sshll.u32 %s350_s29, 3  ;;  %s2289_s17 = scalar_lea.sflag [#allocation6], %s350_s29 }
 0x2a0   : > { %s352_s26 = scalar_lea.vmem [#allocation5], %s2368_s28  ;;  %s2635_s20 = scalar_lea.hbm %s2634_s12, 8 }
 0x2a1   : > { %s2302_s25 = sshll.u32 %s352_s26, 4  ;;  %p2636_p11 = scmp.ne.s32.totalorder %s2634_s12, %s2635_s20  ;;  %s2303_s25 = int_to_ptr.vmem [resolvable:$true] %s2302_s25 }
 0x2a2   : > { %s2639_s28 = scalar_lea.hbm %s3592_s10, 16 }
 0x2a3   : > { %p2637_p12 = pnand %p2636_p11, %p2895_p5  ;;  %p2641_p1 = scmp.lt.s32.totalorder %s2639_s28, %s2635_s20 }
 0x2a5   : > { %p2638_p13 = pneg %p2637_p12  ;;  %p2642_p2 = por %p2641_p1, %p2640_p0 }
 0x2a6   : > { %1988 = vperm.xlu0 %2566, %v1871_v0   ;;  %1978 = vperm.xlu2 %2594, %v1870_v29  }
 0x2a7   : > { %1882 = vperm.xlu1 %2593, %v1869_v47   ;;  %p2643_p3 = pnand %p2642_p2, %p2638_p13 }
 0x2ae   : > { %2229 = vperm.xlu0 %2566, %v1877_v7   ;;  %1998 = vperm.xlu2 %2594, %v1874_v31  }
 0x2af   : > { %2003 = vperm.xlu1 %2593, %v1875_v2  }
 0x2b7   : > { %2277 = vperm.xlu1 %2593, %v1878_v8  }
 0x2d8   : > { %v1840_v5 = vpop.permute.xlu2 %1839 }
 0x2d9   : > { %v1841_v16 = vrot.slane %v1840_v5, 4 }
 0x2db   : > { %v1842_v56 = vsel %vm1063_vm3, %v1840_v5, %v1841_v16  ;;  %vm1915_vm3 = vweird.f32 %v2596_v34 }
 0x2dc   : > { %v1916_v11 = vsel %vm1915_vm3, %v2596_v34, %v1914_v50 }
 0x2e0   : > { %v1780_v49 = vpop.permute.xlu2 %1779 }
 0x2e8   : > { %v1794_v22 = vpop.permute.xlu2 %1793 }
 0x2f0   : > { %v1773_v9 = vpop.permute.xlu0 %1772  ;;  %v1854_v23 = vpop.permute.xlu2 %1853 }
 0x2f1   : > { %v1822_v10 = vpop.permute.xlu1 %1821  ;;  %1776 = vst.msk [vmem:[#allocation4] sm:$0xf] %vm1775_vm6, %v1773_v9 }
 0x2f2   : > { %1824 = vst.msk [vmem:[#allocation4 + $0x4] sm:$0xf] %vm1768_vm5, %v1822_v10 }
 0x2f3   : > { %1783 = vst.msk [vmem:[#allocation4] sm:$0xf] %vm1782_vm7, %v1780_v49 }
 0x2f8   : > { %v1834_v48 = vpop.permute.xlu0 %1833  ;;  %v1815_v19 = vpop.permute.xlu2 %1814 }
 0x2f9   : > { %v1828_v15 = vpop.permute.xlu1 %1827 }
 0x2fa   : > { %1830 = vst.msk [vmem:[#allocation4 + $0x4] sm:$0xf] %vm1775_vm6, %v1828_v15  ;;  %vm2010_vm6 = vcmask 31744  }
 0x2fb   : > { %1836 = vst.msk [vmem:[#allocation4 + $0x4] sm:$0xf] %vm1782_vm7, %v1834_v48 }
 0x2fc   : > { %1844 = vst.msk [vmem:[#allocation4 + $0x4] sm:$0xf] %vm1789_vm8, %v1842_v56 }
 0x300   : > { %v1848_v28 = vpop.permute.xlu0 %1847 }
 0x301   : > { %v1787_v17 = vpop.permute.xlu1 %1786  ;;  %1850 = vst.msk [vmem:[#allocation4 + $0x4] sm:$0xf] %vm1796_vm10, %v1848_v28 }
 0x302   : > { %1790 = vst.msk [vmem:[#allocation4] sm:$0xf] %vm1789_vm8, %v1787_v17 }
 0x303   : > { %1797 = vst.msk [vmem:[#allocation4] sm:$0xf] %vm1796_vm10, %v1794_v22 }
 0x304   : > { %1856 = vst.msk [vmem:[#allocation4 + $0x4] sm:$0xf] %vm1803_vm12, %v1854_v23 }
 0x308   : > { %v1808_v14 = vpop.permute.xlu0 %1807 }
 0x309   : > { %v1801_v30 = vpop.permute.xlu1 %1800 }
 0x30a   : > { %1804 = vst.msk [vmem:[#allocation4] sm:$0xf] %vm1803_vm12, %v1801_v30 }
 0x30b   : > { %1811 = vst.msk [vmem:[#allocation4] sm:$0xf] %vm1810_vm13, %v1808_v14 }
 0x30c   : > { %1818 = vst.msk [vmem:[#allocation4] sm:$0xf] %vm1817_vm14, %v1815_v19 }
 0x310   : > { %v1866_v35 = vpop.permute.xlu0 %1865 }
 0x311   : > { %v1860_v62 = vpop.permute.xlu1 %1859 }
 0x312   : > { %1862 = vst.msk [vmem:[#allocation4 + $0x4] sm:$0xf] %vm1810_vm13, %v1860_v62 }
 0x313   : > { %1868 = vst.msk [vmem:[#allocation4 + $0x4] sm:$0xf] %vm1817_vm14, %v1866_v35 }
 0x318   : > { %v1989_v41 = vpop.permute.xlu0 %1988 }
 0x319   : > { %v1883_v13 = vpop.permute.xlu1 %1882 }
 0x31a   : > { %v1879_v33 = vld [vmem:[#allocation4] sm:$0xff]  ;;  %v1887_v39 = vperm.slane %v1883_v13, %v2985_v60 }
 0x31c   : > { %v1889_v63 = vadd.f32 %v1887_v39, %v1879_v33  ;;  %v1979_v39 = vpop.permute.xlu2 %1978 }
 0x31d   : > { %v1983_v27 = vperm.slane %v1979_v39, %v2985_v60 }
 0x31e   : > { %1891 = vst [vmem:[#allocation1] ss:$2 sm:$0xff] %v1889_v63 }
 0x325   : > { %v1892_v26 = vld.sshfl [vmem:[#allocation1] sm:$0xff pattern:$0x75316420]  ;;  %v1893_v54 = vld.sshfl [vmem:[#allocation1 + $0x8] sm:$0xff pattern:$0x75316420] }
 0x326   : > { %v1896_v43 = vsel %vm553_vm11, %v1892_v26, 0.0  ;;  %v1903_v45 = vsel %vm553_vm11, %v1893_v54, 0.0 }
 0x327   : > { %v1897_v52 = vrot.slane %v1896_v43, 4  ;;  %v1904_v38 = vrot.slane %v1903_v45, 4 }
 0x329   : > { %v1898_v46 = vadd.f32 %v1897_v52, %v1896_v43  ;;  %v1905_v1 = vadd.f32 %v1904_v38, %v1903_v45  ;;  %v1993_v43 = vperm.slane %v1989_v41, %v2985_v60  ;;  %v1872_v38 = vld [vmem:[%s3587_s5] sm:$0xff]  ;;  %v1873_v60 = vld [vmem:[%s3587_s5 + $0x8] sm:$0xff] }
 0x32b   : > { %v1899_v24 = vrot.slane %v1898_v46, 2  ;;  %v1906_v36 = vrot.slane %v1905_v1, 2 }
 0x32d   : > { %v1900_v51 = vadd.f32 %v1899_v24, %v1898_v46  ;;  %v1907_v3 = vadd.f32 %v1906_v36, %v1905_v1  ;;  %v1999_v1 = vpop.permute.xlu2 %1998 }
 0x32f   : > { %v1901_v55 = vrot.slane %v1900_v51, 1  ;;  %v1908_v40 = vrot.slane %v1907_v3, 1 }
 0x331   : > { %v1902_v25 = vadd.f32 %v1901_v55, %v1900_v51  ;;  %v1909_v18 = vadd.f32 %v1908_v40, %v1907_v3 }
 0x333   : > { %v1918_v32 = vmul.f32 %v1916_v11, %v1909_v18  ;;  %v1917_v57 = vmul.f32 %v1916_v11, %v1902_v25 }
 0x335   : > { %v1921_v21 = vrot.slane %v1918_v32, 4 }
 0x337   : > { %v1922_v58 = vsel %vm553_vm11, %v1917_v57, %v1921_v21  ;;  %v2004_v21 = vpop.permute.xlu1 %2003 }
 0x338   : > { %v1924_v42 = vsub.f32 %v1889_v63, %v1922_v58 }
 0x33a   : > { %v1925_v20 = vmul.f32 %v1924_v42, %v1924_v42 }
 0x33c   : > { %1927 = vst [vmem:[#allocation1] ss:$2 sm:$0xff] %v1925_v20 }
 0x343   : > { %v1929_v6 = vld.sshfl [vmem:[#allocation1 + $0x8] sm:$0xff pattern:$0x75316420]  ;;  %v1928_v59 = vld.sshfl [vmem:[#allocation1] sm:$0xff pattern:$0x75316420] }
 0x344   : > { %v1939_v61 = vsel %vm553_vm11, %v1929_v6, 0.0  ;;  %v1932_v53 = vsel %vm553_vm11, %v1928_v59, 0.0 }
 0x345   : > { %v1940_v12 = vrot.slane %v1939_v61, 4  ;;  %v1933_v44 = vrot.slane %v1932_v53, 4 }
 0x347   : > { %v1941_v47 = vadd.f32 %v1940_v12, %v1939_v61  ;;  %v1934_v0 = vadd.f32 %v1933_v44, %v1932_v53 }
 0x349   : > { %v1942_v2 = vrot.slane %v1941_v47, 2  ;;  %v1935_v7 = vrot.slane %v1934_v0, 2 }
 0x34b   : > { %v1943_v8 = vadd.f32 %v1942_v2, %v1941_v47  ;;  %v1936_v5 = vadd.f32 %v1935_v7, %v1934_v0 }
 0x34d   : > { %v1944_v29 = vrot.slane %v1943_v8, 1  ;;  %v1937_v31 = vrot.slane %v1936_v5, 1 }
 0x34f   : > { %v1945_v49 = vadd.f32 %v1944_v29, %v1943_v8  ;;  %v1938_v10 = vadd.f32 %v1937_v31, %v1936_v5 }
 0x351   : > { %v1947_v9 = vmul.f32 %v1945_v49, %v1916_v11  ;;  %v1946_v16 = vmul.f32 %v1938_v10, %v1916_v11 }
 0x353   : > { %v1948_v22 = vadd.f32 1e-06, %v1946_v16  ;;  %v1949_v15 = vadd.f32 1e-06, %v1947_v9 }
 0x355   : > { %2597 = vrsqrt.f32 %v1948_v22  ;;  %vm1966_vm15 = vweird.f32 %v1949_v15  ;;  %vm1956_vm1 = vweird.f32 %v1948_v22 }
 0x356   : > { %2599 = vrsqrt.f32 %v1949_v15 }
 0x35b   : > { %v2598_v48 = vpop.eup %2597 }
 0x35c   : > { %v2600_v56 = vpop.eup %2599  ;;  %v1951_v23 = vmul.f32 %v2598_v48, %v1948_v22  ;;  %vm1957_vm2 = vweird.f32 %v2598_v48 }
 0x35d   : > { %v1961_v17 = vmul.f32 %v2600_v56, %v1949_v15  ;;  %vm1967_vm4 = vweird.f32 %v2600_v56  ;;  %vm1958_vm5 = vmor %vm1956_vm1, %vm1957_vm2 }
 0x35e   : > { %v1952_v28 = vmul.f32 %v2598_v48, %v1951_v23  ;;  %vm1968_vm0 = vmor %vm1966_vm15, %vm1967_vm4 }
 0x35f   : > { %v1962_v30 = vmul.f32 %v2600_v56, %v1961_v17 }
 0x360   : > { %v1953_v14 = vmul.f32 0.5, %v1952_v28 }
 0x361   : > { %v1963_v19 = vmul.f32 0.5, %v1962_v30 }
 0x362   : > { %v1954_v62 = vsub.f32 1.5, %v1953_v14 }
 0x363   : > { %v1964_v35 = vsub.f32 1.5, %v1963_v19 }
 0x364   : > { %v1955_v37 = vmul.f32 %v2598_v48, %v1954_v62 }
 0x365   : > { %v1965_v13 = vmul.f32 %v2600_v56, %v1964_v35 }
 0x366   : > { %v1959_v34 = vsel %vm1958_vm5, %v2598_v48, %v1955_v37 }
 0x367   : > { %v1969_v33 = vsel %vm1968_vm0, %v2600_v56, %v1965_v13 }
 0x368   : > { %v1972_v63 = vrot.slane %v1969_v33, 4 }
 0x36a   : > { %v1973_v26 = vsel %vm553_vm11, %v1959_v34, %v1972_v63 }
 0x36b   : > { %v1975_v54 = vmul.f32 %v1973_v26, %v1924_v42 }
 0x36d   : > { %v1985_v45 = vmul.f32 %v1983_v27, %v1975_v54 }
 0x36f   : > { %v1995_v52 = vadd.f32 %v1993_v43, %v1985_v45 }
 0x371   : > { %2007 = vst [vmem:[#allocation1] ss:$2 sm:$0xff] %v1995_v52 }
 0x378   : > { %v2008_v4 = vld.sshfl [vmem:[#allocation1] sm:$0xff pattern:$0x75316420]  ;;  %v2009_v46 = vld.sshfl [vmem:[#allocation1 + $0x8] sm:$0xff pattern:$0x75316420] }
 0x379   : > { %2371 = vmatpush.msk.msra.mxu0 %vm553_vm11, %v2008_v4  ;;  %2374 = vmatpush.msk.msra.mxu1 %vm553_vm11, %v2009_v46 }
 0x37a   : > { %2372 = vmatmul.msk.f32.vlgmr.msra.gmra.mxu0 %vm2010_vm6, %v1872_v38  ;;  %2375 = vmatmul.msk.f32.vlgmr.msra.gmra.mxu1 %vm2010_vm6, %v1872_v38 }
 0x382   : > { %2373 = vmatmul.msk.f32.gmra.mxu0 %vm2010_vm6, %v1873_v60  ;;  %2376 = vmatmul.msk.f32.gmra.mxu1 %vm2010_vm6, %v1873_v60 }
 0x3f7   : > { %v2038_v24 = vpop.f32.mrf.mxu0  ;;  %v2061_v36 = vpop.f32.mrf.mxu1 }
 0x3f8   : > { %v3487_v50 = vadd.f32 %v2038_v24, %v1999_v1  ;;  %v3489_v51 = vadd.f32 %v2061_v36, %v1999_v1 }
 0x3fa   : > { %v3492_v3 = vmul.f32 0.70710677, %v3487_v50  ;;  %v3495_v55 = vmul.f32 0.70710677, %v3489_v51 }
 0x3fc   : > { %v2083_v40 = vand.u32 2147483647, %v3492_v3  ;;  %v2084_v11 = vand.u32 2147483647, %v3495_v55 }
 0x3fe   : > { %v2087_v25 = vmul.f32 0.3275911, %v2083_v40  ;;  %v2088_v18 = vmul.f32 0.3275911, %v2084_v11  ;;  %v2191_v10 = vsub.f32 0.0, %v2083_v40  ;;  %v2192_v23 = vsub.f32 0.0, %v2084_v11 }
 0x3ff   : > { %v2041_v32 = vpop.f32.mrf.mxu0  ;;  %v2064_v57 = vpop.f32.mrf.mxu1 }
 0x400   : > { %v2091_v58 = vadd.f32 1.0, %v2087_v25  ;;  %v2092_v42 = vadd.f32 1.0, %v2088_v18  ;;  %v3499_v20 = vadd.f32 %v2041_v32, %v2004_v21  ;;  %v3501_v6 = vadd.f32 %v2064_v57, %v2004_v21 }
 0x401   : > { %v2195_v30 = vmul.f32 %v2191_v10, %v2083_v40  ;;  %v2196_v34 = vmul.f32 %v2192_v23, %v2084_v11 }
 0x402   : > { %2601 = vrcp.f32 %v2091_v58  ;;  %v3504_v59 = vmul.f32 0.70710677, %v3499_v20  ;;  %v3507_v61 = vmul.f32 0.70710677, %v3501_v6  ;;  %v2106_v9 = vand.u32 2147483648, %v2091_v58 }
 0x403   : > { %2603 = vrcp.f32 %v2092_v42  ;;  %v2104_v22 = vand.u32 2147483647, %v2091_v58  ;;  %v2121_v15 = vand.u32 2147483648, %v2092_v42  ;;  %v2119_v56 = vand.u32 2147483647, %v2092_v42 }
 0x404   : > { %v3510_v53 = vand.u32 2147483647, %v3504_v59  ;;  %v3513_v12 = vand.u32 2147483647, %v3507_v61  ;;  %vm2100_vm10 = vweird.f32 %v2091_v58  ;;  %v2107_v14 = vor.u32 1.1754944e-38, %v2106_v9 }
 0x405   : > { %vm2115_vm13 = vweird.f32 %v2092_v42  ;;  %vm2105_vm14 = vcmp.eq.f32.partialorder %v2104_v22, 8.507059e+37  ;;  %v2122_v13 = vor.u32 1.1754944e-38, %v2121_v15  ;;  %vm2120_vm4 = vcmp.eq.f32.partialorder %v2119_v56, 8.507059e+37 }
 0x406   : > { %v2089_v44 = vmul.f32 0.3275911, %v3510_v53  ;;  %v2090_v47 = vmul.f32 0.3275911, %v3513_v12  ;;  %v2193_v36 = vsub.f32 0.0, %v3510_v53 }
 0x408   : > { %v2602_v0 = vpop.eup %2601  ;;  %v2093_v8 = vadd.f32 1.0, %v2089_v44  ;;  %v3517_v5 = vadd.f32 1.0, %v2090_v47 }
 0x409   : > { %v2604_v2 = vpop.eup %2603  ;;  %v2096_v7 = vmul.f32 %v2602_v0, %v2091_v58  ;;  %vm2101_vm7 = vweird.f32 %v2602_v0 }
 0x40a   : > { %v2111_v29 = vmul.f32 %v2604_v2, %v2092_v42  ;;  %2605 = vrcp.f32 %v2093_v8  ;;  %vm2116_vm8 = vweird.f32 %v2604_v2  ;;  %vm2102_vm12 = vmor %vm2100_vm10, %vm2101_vm7  ;;  %v2134_v43 = vand.u32 2147483647, %v2093_v8 }
 0x40b   : > { %v2097_v31 = vsub.f32 1.0, %v2096_v7  ;;  %2607 = vrcp.f32 %v3517_v5  ;;  %vm2117_vm3 = vmor %vm2115_vm13, %vm2116_vm8  ;;  %v2136_v45 = vand.u32 2147483648, %v2093_v8  ;;  %v2151_v4 = vand.u32 2147483648, %v3517_v5 }
 0x40c   : > { %v2112_v49 = vsub.f32 1.0, %v2111_v29  ;;  %v2149_v1 = vand.u32 2147483647, %v3517_v5  ;;  %vm2130_vm0 = vweird.f32 %v2093_v8  ;;  %vm2145_vm5 = vweird.f32 %v3517_v5 }
 0x40d   : > { %v2098_v16 = vmul.f32 %v2602_v0, %v2097_v31  ;;  %v2137_v25 = vor.u32 1.1754944e-38, %v2136_v45  ;;  %vm2135_vm6 = vcmp.eq.f32.partialorder %v2134_v43, 8.507059e+37  ;;  %v2152_v21 = vor.u32 1.1754944e-38, %v2151_v4 }
 0x40e   : > { %v2113_v48 = vmul.f32 %v2604_v2, %v2112_v49  ;;  %vm2150_vm8 = vcmp.eq.f32.partialorder %v2149_v1, 8.507059e+37  ;;  %v2199_v29 = vmul.f32 1.442695, %v2195_v30  ;;  %vm2075_vm10 = vcmp.ge.f32.partialorder %v3492_v3, 0.0 }
 0x40f   : > { %v2099_v17 = vadd.f32 %v2602_v0, %v2098_v16  ;;  %v2197_v16 = vmul.f32 %v2193_v36, %v3510_v53  ;;  %vm2077_vm13 = vcmp.ge.f32.partialorder %v3504_v59, 0.0  ;;  %v2070_v59 = vmul.f32 0.5, %v3501_v6 }
 0x410   : > { %v2606_v28 = vpop.eup %2605  ;;  %v2114_v19 = vadd.f32 %v2604_v2, %v2113_v48  ;;  %2609 = vpow2.f32 %v2199_v29 }
 0x411   : > { %v2608_v62 = vpop.eup %2607  ;;  %v2126_v35 = vmul.f32 %v2606_v28, %v2093_v8  ;;  %v2103_v37 = vsel %vm2102_vm12, %v2602_v0, %v2099_v17  ;;  %vm2131_vm2 = vweird.f32 %v2606_v28  ;;  %v2194_v0 = vsub.f32 0.0, %v3513_v12 }
 0x412   : > { %v2141_v33 = vmul.f32 %v2608_v62, %v3517_v5  ;;  %v3522_v39 = vsel %vm2105_vm14, %v2107_v14, %v2103_v37  ;;  %v2118_v63 = vsel %vm2117_vm3, %v2604_v2, %v2114_v19  ;;  %vm2146_vm15 = vweird.f32 %v2608_v62  ;;  %vm2132_vm1 = vmor %vm2130_vm0, %vm2131_vm2 }
 0x413   : > { %v2127_v27 = vsub.f32 1.0, %v2126_v35  ;;  %v2155_v41 = vmul.f32 1.0614054, %v3522_v39  ;;  %v2123_v26 = vsel %vm2120_vm4, %v2122_v13, %v2118_v63  ;;  %vm2147_vm7 = vmor %vm2145_vm5, %vm2146_vm15  ;;  %v2201_v5 = vmul.f32 1.442695, %v2196_v34 }
 0x414   : > { %v2142_v54 = vsub.f32 1.0, %v2141_v33  ;;  %v2156_v52 = vmul.f32 1.0614054, %v2123_v26  ;;  %v2198_v48 = vmul.f32 %v2194_v0, %v3513_v12  ;;  %v2203_v19 = vmul.f32 1.442695, %v2197_v16 }
 0x415   : > { %v2128_v38 = vmul.f32 %v2606_v28, %v2127_v27  ;;  %v2159_v46 = vadd.f32 -1.4531521, %v2155_v41  ;;  %2611 = vpow2.f32 %v2201_v5  ;;  %vm2076_vm12 = vcmp.ge.f32.partialorder %v3495_v55, 0.0 }
 0x416   : > { %v2143_v60 = vmul.f32 %v2608_v62, %v2142_v54  ;;  %v2160_v24 = vadd.f32 -1.4531521, %v2156_v52  ;;  %v2205_v37 = vmul.f32 1.442695, %v2198_v48  ;;  %v2610_v12 = vpop.eup %2609  ;;  %2613 = vpow2.f32 %v2203_v19 }
 0x417   : > { %v2129_v40 = vadd.f32 %v2606_v28, %v2128_v38  ;;  %v2163_v11 = vmul.f32 %v2159_v46, %v3522_v39  ;;  %vm2078_vm14 = vcmp.ge.f32.partialorder %v3507_v61, 0.0 }
 0x418   : > { %v2144_v18 = vadd.f32 %v2608_v62, %v2143_v60  ;;  %v2164_v32 = vmul.f32 %v2160_v24, %v2123_v26  ;;  %2615 = vpow2.f32 %v2205_v37 }
 0x419   : > { %v2133_v57 = vsel %vm2132_vm1, %v2606_v28, %v2129_v40  ;;  %v2167_v58 = vadd.f32 1.4214138, %v2163_v11  ;;  %v2801_v11 = vmov -1.0  }
 0x41a   : > { %v2138_v42 = vsel %vm2135_vm6, %v2137_v25, %v2133_v57  ;;  %v2148_v44 = vsel %vm2147_vm7, %v2608_v62, %v2144_v18  ;;  %v2168_v47 = vadd.f32 1.4214138, %v2164_v32  ;;  %v2079_v25 = vsel %vm2075_vm10, 1.0, %v2801_v11 }
 0x41b   : > { %v2157_v2 = vmul.f32 1.0614054, %v2138_v42  ;;  %v2153_v7 = vsel %vm2150_vm8, %v2152_v21, %v2148_v44  ;;  %v2171_v8 = vmul.f32 %v2167_v58, %v3522_v39  ;;  %v2612_v41 = vpop.eup %2611  ;;  %v2080_v57 = vsel %vm2076_vm12, 1.0, %v2801_v11 }
 0x41c   : > { %v2158_v31 = vmul.f32 1.0614054, %v2153_v7  ;;  %v2172_v49 = vmul.f32 %v2168_v47, %v2123_v26  ;;  %v2614_v1 = vpop.eup %2613  ;;  %v2081_v3 = vsel %vm2077_vm13, 1.0, %v2801_v11  ;;  %v2082_v44 = vsel %vm2078_vm14, 1.0, %v2801_v11 }
 0x41d   : > { %v2161_v10 = vadd.f32 -1.4531521, %v2157_v2  ;;  %v2175_v9 = vadd.f32 -0.28449672, %v2171_v8  ;;  %v2069_v47 = vmul.f32 0.5, %v3499_v20  ;;  %v2067_v8 = vmul.f32 0.5, %v3487_v50 }
 0x41e   : > { %v2162_v22 = vadd.f32 -1.4531521, %v2158_v31  ;;  %v2176_v15 = vadd.f32 -0.28449672, %v2172_v49  ;;  %v2616_v24 = vpop.eup %2615  ;;  %v2068_v31 = vmul.f32 0.5, %v3489_v51  ;;  %v2230_v51 = vpop.permute.xlu0 %2229 }
 0x41f   : > { %v2165_v56 = vmul.f32 %v2161_v10, %v2138_v42  ;;  %v2179_v23 = vmul.f32 %v2175_v9, %v3522_v39  ;;  %v1876_v20 = vld [vmem:[%s3589_s7] sm:$0xf] }
 0x420   : > { %v2166_v17 = vmul.f32 %v2162_v22, %v2153_v7  ;;  %v2180_v28 = vmul.f32 %v2176_v15, %v2123_v26  ;;  %v2278_v22 = vpop.permute.xlu1 %2277 }
 0x421   : > { %v2169_v14 = vadd.f32 1.4214138, %v2165_v56  ;;  %v2183_v30 = vadd.f32 0.2548296, %v2179_v23 }
 0x422   : > { %v2170_v62 = vadd.f32 1.4214138, %v2166_v17  ;;  %v2184_v35 = vadd.f32 0.2548296, %v2180_v28 }
 0x423   : > { %v2173_v13 = vmul.f32 %v2169_v14, %v2138_v42  ;;  %v2187_v53 = vmul.f32 %v2183_v30, %v3522_v39 }
 0x424   : > { %v2174_v33 = vmul.f32 %v2170_v62, %v2153_v7  ;;  %v2188_v63 = vmul.f32 %v2184_v35, %v2123_v26 }
 0x425   : > { %v2177_v34 = vadd.f32 -0.28449672, %v2173_v13  ;;  %v2207_v43 = vmul.f32 %v2610_v12, %v2187_v53 }
 0x426   : > { %v2178_v27 = vadd.f32 -0.28449672, %v2174_v33  ;;  %v2208_v52 = vmul.f32 %v2612_v41, %v2188_v63 }
 0x427   : > { %v2181_v54 = vmul.f32 %v2177_v34, %v2138_v42  ;;  %v2211_v60 = vsub.f32 1.0, %v2207_v43 }
 0x428   : > { %v2182_v45 = vmul.f32 %v2178_v27, %v2153_v7  ;;  %v2212_v26 = vsub.f32 1.0, %v2208_v52 }
 0x429   : > { %v2185_v38 = vadd.f32 0.2548296, %v2181_v54  ;;  %v2215_v32 = vmul.f32 %v2211_v60, %v2079_v25 }
 0x42a   : > { %v2186_v4 = vadd.f32 0.2548296, %v2182_v45  ;;  %v2216_v58 = vmul.f32 %v2212_v26, %v2080_v57 }
 0x42b   : > { %v2189_v46 = vmul.f32 %v2185_v38, %v2138_v42  ;;  %v2219_v2 = vadd.f32 1.0, %v2215_v32 }
 0x42c   : > { %v2190_v39 = vmul.f32 %v2186_v4, %v2153_v7  ;;  %v2220_v7 = vadd.f32 1.0, %v2216_v58 }
 0x42d   : > { %v2209_v36 = vmul.f32 %v2614_v1, %v2189_v46  ;;  %v2223_v5 = vmul.f32 %v2219_v2, %v2067_v8 }
 0x42e   : > { %v2210_v40 = vmul.f32 %v2616_v24, %v2190_v39  ;;  %v2224_v10 = vmul.f32 %v2220_v7, %v2068_v31 }
 0x42f   : > { %v2213_v18 = vsub.f32 1.0, %v2209_v36 }
 0x430   : > { %v2214_v21 = vsub.f32 1.0, %v2210_v40 }
 0x431   : > { %v2217_v42 = vmul.f32 %v2213_v18, %v2081_v3 }
 0x432   : > { %v2218_v55 = vmul.f32 %v2214_v21, %v2082_v44 }
 0x433   : > { %v2221_v0 = vadd.f32 1.0, %v2217_v42 }
 0x434   : > { %v2222_v61 = vadd.f32 1.0, %v2218_v55 }
 0x435   : > { %v2225_v29 = vmul.f32 %v2221_v0, %v2069_v47 }
 0x436   : > { %v2226_v49 = vmul.f32 %v2222_v61, %v2070_v59 }
 0x437   : > { %2249 = vmatpush.msra.mxu2 %v2225_v29 }
 0x438   : > { %2269 = vmatpush.msra.mxu3 %v2226_v49 }
 0x439   : > { %2250 = vmatpush.msra.mxu2 %v2223_v5 }
 0x43a   : > { %2270 = vmatpush.msra.mxu3 %v2224_v10  ;;  %2377 = vmatmul.msk.f32.vlgmr.msra.gmra.mxu2 %vm1479_vm9, %v1876_v20 }
 0x43b   : > { %2378 = vmatmul.msk.f32.vlgmr.msra.gmra.mxu3 %vm1479_vm9, %v1876_v20 }
 0x4bd   : > { %v2252_v50 = vpop.f32.mrf.mxu2 }
 0x4be   : > { %v2272_v6 = vpop.f32.mrf.mxu3  ;;  %v2253_v9 = vadd.f32 %v2252_v50, %v2230_v51 }
 0x4bf   : > { %v2273_v16 = vadd.f32 %v2272_v6, %v2230_v51 }
 0x4c0   : > { %v2280_v48 = vmul.f32 %v2278_v22, %v2253_v9 }
 0x4c1   : > { %v2281_v15 = vmul.f32 %v2278_v22, %v2273_v16 }
 0x4c3   : > { %v2284_v56 = vrot.slane %v2281_v15, 4 }
 0x4c5   : > { %v2285_v23 = vsel %vm553_vm11, %v2280_v48, %v2284_v56 }
 0x4c6   : > { %2287 = vst [vmem:[%s352_s26] sm:$0xff] %v2285_v23 }
 0x4c7   : > { %2646 = shalt.err (!%p2643_p3)
}
 0x4c8   : > { %2386 = dma.vmem_to_hbm [thread:$0]  (%p2895_p5), %s2303_s25, 128, %s2305_s30, %s2289_s17  }
 0x4c9 PF: > { %p2392_p4 = scmp.ge.s32.totalorder %s2681_s16, 2  ;;  %s2316_s29 = sand.u32 1, %s2669_s13  }
 0x4ca   : > { %s2317_s26 = scalar_lea.sflag [#allocation6], %s2316_s29 }
 0x4cb   : > { %p2389_p7 = pnand %p2392_p4, %p2899_p6 }
 0x4cd   : > { %p2390_p8 = pneg %p2389_p7 }
 0x4cf   : > { %2664 = dma.done.wait (%p2390_p8), %s2317_s26, 128  }
 0x4d0   : > { %2666 = vsyncadd (%p2390_p8), %s2317_s26, 4294967168  ;;  %p20_p9 = scmp.ge.s32.totalorder %s2882_s19, 4   ;;  %s3597_s13 = smov %s2673_s14 }
 0x4d1   : > { %s3598_s14 = smov %s2677_s15  ;;  %s3599_s15 = smov %s2893_s22 }
 0x4d2   : > { %s3600_s16 = smov %s2882_s19  ;;  %22 = sbr.rel (!%p20_p9) target bundleno = 3 (0x3), region = 95 }
 0x4d7   :  { %2323 = vsyncpa [#allocation6], 1 }
 0x4d8   :  { %2325 = vsyncpa [#allocation6 + $0x1], 1 }

</bundles_post_ra>
